<compile_context>
chip_gen: v5e
topology: v5e:2x2
jax: 0.10.0
libtpu: 0.0.40
codegen_flags: <defaults>
</compile_context>

<pallas_src>
import functools

import jax
import jax.numpy as jnp
from jax.experimental import pallas as pl
from jax.experimental.pallas import tpu as pltpu

_SUBLANES = 8
_LANES = 128


def _round_up(x, m):
    return ((x + m - 1) // m) * m


def _tpu_defaults():
    """Generation-aware tile sizes / VMEM budget (best-effort query, safe fallbacks)."""
    kind = ""
    try:
        kind = jax.devices()[0].device_kind.lower()
    except Exception:
        pass
    vmem_cap = None
    try:
        vmem_cap = int(pltpu.get_tpu_info().vmem_capacity_bytes)
    except Exception:
        vmem_cap = None
    is_v7 = "v7" in kind
    is_v5e = ("v5e" in kind) or ("v5 lite" in kind) or ("v5lite" in kind)
    if vmem_cap is None or vmem_cap <= 0:
        vmem_cap = (64 if is_v7 else 128) * 1024 * 1024
    # Never request all of physical VMEM (compiler scratch/semaphores need headroom):
    # ~48 MiB on v7x (64 MiB physical), ~96 MiB on v5e/v6e (128 MiB physical).
    vmem_limit = int(max(min(vmem_cap * 3 // 4, 100 * 1024 * 1024), 32 * 1024 * 1024))
    if is_v5e:
        tb_max, tc_default = 128, 8    # 128 rows fill the 4x128x128 MXU; keep stores modest
    elif is_v7:
        tb_max, tc_default = 256, 8    # 256-wide MXU, but only 64 MiB VMEM -> small time chunk
    else:                              # v6e (and default for other/unknown chips)
        tb_max, tc_default = 256, 16   # 128 MiB VMEM -> bigger time chunk amortizes grid overhead
    return {"vmem_limit": vmem_limit, "tb_max": tb_max, "tc_default": tc_default,
            "split_batch": is_v7}


_HW = _tpu_defaults()


# ---------------------------------------------------------------------------
# Generic tiled matmul + bias kernel (hoisted X @ W_ih + b gate precompute and
# the decoder Linear).  bf16 MXU inputs, f32 accumulate, configurable out dtype.
# ---------------------------------------------------------------------------
def _matmul_bias_kernel(x_ref, w_ref, b_ref, o_ref):
    acc = jnp.dot(x_ref[...].astype(w_ref.dtype), w_ref[...],
                  preferred_element_type=jnp.float32) + b_ref[...]
    o_ref[...] = acc.astype(o_ref.dtype)


def matmul_bias(x, w, b, *, tm_max, tn_max, out_dtype=jnp.float32):
    """x: (M, K); w: (K, N) bf16; b: (1, N) f32  ->  (M, N) out_dtype.

    Tile maxima control the HBM streaming pattern:
      * tn_max >= N : W is grid-resident (read from HBM exactly once), X streams by rows.
      * tm_max >= M : X is grid-resident, each W column block is read exactly once.
    """
    M, K = x.shape
    N = w.shape[1]
    tm = min(tm_max, _round_up(M, _SUBLANES))
    tn = min(tn_max, _round_up(N, _LANES))
    Mp = _round_up(M, tm)
    Np = _round_up(N, tn)
    if Mp != M:
        x = jnp.pad(x, ((0, Mp - M), (0, 0)))
    if Np != N:
        w = jnp.pad(w, ((0, 0), (0, Np - N)))
        b = jnp.pad(b, ((0, 0), (0, Np - N)))

    out = pl.pallas_call(
        _matmul_bias_kernel,
        out_shape=jax.ShapeDtypeStruct((Mp, Np), out_dtype),
        grid_spec=pltpu.PrefetchScalarGridSpec(
            num_scalar_prefetch=0,
            grid=(Mp // tm, Np // tn),
            in_specs=[
                pl.BlockSpec((tm, K), lambda i, j: (i, 0)),
                pl.BlockSpec((K, tn), lambda i, j: (0, j)),
                pl.BlockSpec((1, tn), lambda i, j: (0, j)),
            ],
            out_specs=pl.BlockSpec((tm, tn), lambda i, j: (i, j)),
        ),
        compiler_params=pltpu.CompilerParams(
            dimension_semantics=("parallel", "parallel"),
            vmem_limit_bytes=_HW["vmem_limit"]),
    )(x, w, b)
    return out[:M, :N]


def input_projection(x_tmajor, w_ih_pad, b_pad):
    """x: (Tp, Bp, D) bf16 -> G = x @ W_ih + b : (Tp, Bp, 4*Hp) bf16."""
    Tp, Bp, D = x_tmajor.shape
    G4 = w_ih_pad.shape[1]
    # Keep W_ih grid-resident (one HBM read) whenever its double-buffered footprint fits
    # comfortably in the VMEM budget; otherwise fall back to 512-wide column tiles.
    w_bytes = D * G4 * 2
    tn_max = G4 if 4 * w_bytes <= _HW["vmem_limit"] else 512
    g = matmul_bias(x_tmajor.reshape(Tp * Bp, D), w_ih_pad, b_pad,
                    tm_max=512, tn_max=tn_max, out_dtype=jnp.bfloat16)
    return g.reshape(Tp, Bp, G4)


# ---------------------------------------------------------------------------
# LSTM recurrence kernel.
# Grid = (batch tiles [parallel], time chunks [arbitrary]).  Each grid step runs
# `tc` time steps (unrolled fori_loop).  h/c state lives in the VMEM-resident
# h_n/c_n output blocks (constant block index along the time axis).
# Packed-sequence semantics via the per-row length mask: padded steps do not
# update h/c and their outputs are zero.
# ---------------------------------------------------------------------------
def _sigmoid(x):
    # One EUP transcendental per element (tanh) instead of exp + divide.
    return 0.5 * jnp.tanh(0.5 * x) + 0.5


def _lstm_rec_kernel(g_ref, whh_ref, h0_ref, c0_ref, len_ref,
                     y_ref, hn_ref, cn_ref):
    c_idx = pl.program_id(1)
    tc = g_ref.shape[0]
    Hp = hn_ref.shape[-1]

    @pl.when(c_idx == 0)
    def _():
        hn_ref[...] = h0_ref[...]
        cn_ref[...] = c0_ref[...]

    t0 = c_idx * tc

    def step(i, carry):
        h = hn_ref[...]                                  # (tb, Hp) f32 state
        c = cn_ref[...]
        # bf16-streamed precomputed gates, upcast; recurrent matmul accumulates in f32.
        gates = g_ref[i].astype(jnp.float32) + jnp.dot(
            h.astype(whh_ref.dtype), whh_ref[...],
            preferred_element_type=jnp.float32)
        # Gate slices are 128-lane aligned (Hp is a multiple of 128).
        i_g = _sigmoid(gates[:, 0 * Hp:1 * Hp])
        f_g = _sigmoid(gates[:, 1 * Hp:2 * Hp])
        g_g = jnp.tanh(gates[:, 2 * Hp:3 * Hp])
        o_g = _sigmoid(gates[:, 3 * Hp:4 * Hp])
        c_new = f_g * c + i_g * g_g
        h_new = o_g * jnp.tanh(c_new)
        mask = (t0 + i) < len_ref[...]                   # (tb, 1) packed-seq mask
        hn_ref[...] = jnp.where(mask, h_new, h)
        cn_ref[...] = jnp.where(mask, c_new, c)
        y_ref[i] = jnp.where(mask, h_new, 0.0).astype(y_ref.dtype)
        return carry

    jax.lax.fori_loop(0, tc, step, 0, unroll=True)


def lstm_recurrence(g, w_hh_pad, h0, c0, lengths_col, *, tb, tc):
    """g: (Tp, Bp, 4Hp) bf16; w_hh: (Hp, 4Hp) bf16; h0/c0: (Bp, Hp) f32;
       lengths_col: (Bp, 1) int32.  Returns y (Tp, Bp, Hp) bf16, h_n, c_n (Bp, Hp) f32."""
    Tp, Bp, G4 = g.shape
    Hp = h0.shape[-1]
    grid = (Bp // tb, Tp // tc)

    grid_spec = pltpu.PrefetchScalarGridSpec(
        num_scalar_prefetch=0,
        grid=grid,
        in_specs=[
            pl.BlockSpec((tc, tb, G4), lambda b, c: (c, b, 0)),   # precomputed gates G_t (bf16)
            pl.BlockSpec((Hp, G4), lambda b, c: (0, 0)),          # W_hh (constant index -> 1 DMA)
            pl.BlockSpec((tb, Hp), lambda b, c: (b, 0)),          # h0
            pl.BlockSpec((tb, Hp), lambda b, c: (b, 0)),          # c0
            pl.BlockSpec((tb, 1), lambda b, c: (b, 0)),           # lengths
        ],
        out_specs=[
            pl.BlockSpec((tc, tb, Hp), lambda b, c: (c, b, 0)),   # y
            pl.BlockSpec((tb, Hp), lambda b, c: (b, 0)),          # h_n (state accumulator)
            pl.BlockSpec((tb, Hp), lambda b, c: (b, 0)),          # c_n (state accumulator)
        ],
    )
    return pl.pallas_call(
        _lstm_rec_kernel,
        out_shape=(jax.ShapeDtypeStruct((Tp, Bp, Hp), jnp.bfloat16),
                   jax.ShapeDtypeStruct((Bp, Hp), jnp.float32),
                   jax.ShapeDtypeStruct((Bp, Hp), jnp.float32)),
        grid_spec=grid_spec,
        compiler_params=pltpu.CompilerParams(
            dimension_semantics=("parallel", "arbitrary"),
            vmem_limit_bytes=_HW["vmem_limit"]),
    )(g, w_hh_pad, h0, c0, lengths_col)


# ---------------------------------------------------------------------------
# Full RNNModel forward (glue in plain JAX; hot paths in Pallas).
# max_len is a static int (pad_packed_sequence length) -> no device->host sync.
# ---------------------------------------------------------------------------
@functools.partial(jax.jit, static_argnums=(4,))
def rnn_model_forward(prepared, input_ids, hidden, lengths, max_len):
    h0_all, c0_all = hidden                 # each (nlayers, B, H)
    B, T = input_ids.shape
    L, _, H = h0_all.shape
    Hp = _round_up(H, _LANES)

    B8 = _round_up(B, _SUBLANES)
    if _HW["split_batch"] and B8 >= 2 * _SUBLANES:
        # >= 2 batch tiles so both v7x TensorCores get recurrence work.
        tb = min(_HW["tb_max"], _round_up((B8 + 1) // 2, _SUBLANES))
    else:
        tb = min(_HW["tb_max"], B8)
    Bp = _round_up(B8, tb)
    tc = min(T, _HW["tc_default"])
    Tp = _round_up(T, tc)

    # Embedding lookup (gather, plain JAX), directly time-major, bf16 table with
    # 128-padded columns (lane-aligned K for the layer-0 projection).
    x = jnp.take(prepared["encoder"], input_ids.T, axis=0)         # (T, B, Dp) bf16
    x = jnp.pad(x, ((0, Tp - T), (0, Bp - B), (0, 0)))
    # nn.Dropout: identity in eval mode.

    # Padded batch rows get length 0 -> never update state, outputs stay zero.
    lengths_col = jnp.pad(lengths.astype(jnp.int32), (0, Bp - B)).reshape(Bp, 1)

    h_n, c_n = [], []
    for l in range(L):
        w_ih_p, w_hh_p, b_p = prepared["lstm"][l]
        g = input_projection(x, w_ih_p, b_p)                       # (Tp, Bp, 4Hp) bf16
        h0 = jnp.pad(h0_all[l], ((0, Bp - B), (0, Hp - H)))
        c0 = jnp.pad(c0_all[l], ((0, Bp - B), (0, Hp - H)))
        y, h_l, c_l = lstm_recurrence(g, w_hh_p, h0, c0, lengths_col, tb=tb, tc=tc)
        x = y                              # inter-layer dropout = identity (eval), bf16
        h_n.append(h_l[:B, :H])
        c_n.append(c_l[:B, :H])
    h_n = jnp.stack(h_n)                                           # (nlayers, B, H)
    c_n = jnp.stack(c_n)

    # Decoder over the first max_len steps (pad_packed_sequence truncation).
    # Padded positions have y == 0, so decoded there equals the (zero) bias, matching
    # PyTorch applying the Linear to the zero-padded unpacked output.
    # Row-resident tiling: tm covers all max_len*B rows (one M tile for realistic sizes)
    # -> the large (Hp, ntoken) decoder weight is streamed from HBM exactly once.
    y_dec = x[:max_len, :B, :].reshape(max_len * B, Hp)            # bf16
    dec_flat = matmul_bias(y_dec, prepared["dec_w"], prepared["dec_b"],
                           tm_max=4096, tn_max=512, out_dtype=jnp.float32)
    decoded = jnp.transpose(dec_flat.reshape(max_len, B, -1), (1, 0, 2))
    return decoded, (h_n, c_n)


# ---------------------------------------------------------------------------
# Parameter construction (matches RNNModel.__init__ / init_weights) and
# preparation (per-gate padding to 128 lanes, 128-padded ninp, bf16 weights).
# ---------------------------------------------------------------------------
def make_params(key, ntoken, ninp, nhid, nlayers):
    initrange = 0.1
    stdv = 1.0 / jnp.sqrt(nhid)
    keys = jax.random.split(key, 2 + 4 * nlayers)
    params = {}
    params["encoder"] = jax.random.uniform(keys[0], (ntoken, ninp),
                                           minval=-initrange, maxval=initrange,
                                           dtype=jnp.float32)
    dec_w = jax.random.uniform(keys[1], (ntoken, nhid),
                               minval=-initrange, maxval=initrange, dtype=jnp.float32)
    params["dec_w_t"] = dec_w.T                                    # (nhid, ntoken)
    params["dec_b"] = jnp.zeros((ntoken,), jnp.float32)
    params["lstm"] = []
    for l in range(nlayers):
        d_in = ninp if l == 0 else nhid
        k0, k1, k2, k3 = keys[2 + 4 * l: 6 + 4 * l]
        # PyTorch stores (4H, d_in)/(4H, H); we store transposed for right-matmul.
        w_ih = jax.random.uniform(k0, (d_in, 4 * nhid), minval=-stdv, maxval=stdv,
                                  dtype=jnp.float32)
        w_hh = jax.random.uniform(k1, (nhid, 4 * nhid), minval=-stdv, maxval=stdv,
                                  dtype=jnp.float32)
        b_ih = jax.random.uniform(k2, (4 * nhid,), minval=-stdv, maxval=stdv,
                                  dtype=jnp.float32)
        b_hh = jax.random.uniform(k3, (4 * nhid,), minval=-stdv, maxval=stdv,
                                  dtype=jnp.float32)
        params["lstm"].append((w_ih, w_hh, b_ih + b_hh))           # combined bias (4H,)
    return params


def _pad_gates(w, b, h, h_pad, rows_pad):
    """Pad (rows, 4h)/(4h,) so each of the 4 gates occupies a 128-aligned h_pad slot."""
    rows = w.shape[0]
    w4 = w.reshape(rows, 4, h)
    w4 = jnp.pad(w4, ((0, rows_pad - rows), (0, 0), (0, h_pad - h)))
    b4 = jnp.pad(b.reshape(4, h), ((0, 0), (0, h_pad - h)))
    return w4.reshape(rows_pad, 4 * h_pad), b4.reshape(1, 4 * h_pad)


def prepare_params(raw):
    ninp = raw["encoder"].shape[1]
    H = raw["lstm"][0][1].shape[0]          # w_hh is (H, 4H)
    Hp = _round_up(H, _LANES)
    Dp = _round_up(ninp, _LANES)
    prepared = {
        # bf16 table with lane-aligned (zero-padded) columns: gather is half the bytes and
        # the layer-0 contraction dim K is already 128-aligned (no relayout in the kernel).
        "encoder": jnp.pad(raw["encoder"], ((0, 0), (0, Dp - ninp))).astype(jnp.bfloat16),
    }
    lstm = []
    for l, (w_ih, w_hh, b) in enumerate(raw["lstm"]):
        rows_pad = Dp if l == 0 else Hp     # padded input rows are zero (padded x cols are zero)
        w_ih_p, b_p = _pad_gates(w_ih, b, H, Hp, rows_pad)
        w_hh_p, _ = _pad_gates(w_hh, b, H, Hp, Hp)
        lstm.append((w_ih_p.astype(jnp.bfloat16), w_hh_p.astype(jnp.bfloat16), b_p))
    prepared["lstm"] = lstm
    prepared["dec_w"] = jnp.pad(raw["dec_w_t"], ((0, Hp - H), (0, 0))).astype(jnp.bfloat16)
    prepared["dec_b"] = raw["dec_b"].reshape(1, -1)
    return prepared


# ---------------------------------------------------------------------------
# Pure-JAX reference (mirrors the kernel's precision: bf16 weights/activations,
# bf16-quantized gate precompute G, f32 gate math, tanh-based sigmoid).
# ---------------------------------------------------------------------------
def _lstm_layer_ref(x, w_ih, w_hh, b, h0, c0, lengths):
    T, B, _ = x.shape
    H = h0.shape[-1]
    w_ih_b = w_ih.astype(jnp.bfloat16)
    w_hh_b = w_hh.astype(jnp.bfloat16)
    g_all = (jnp.einsum("tbd,dg->tbg", x, w_ih_b,
                        preferred_element_type=jnp.float32) + b).astype(jnp.bfloat16)
    h, c = h0, c0
    ys = []
    for t in range(T):
        gates = g_all[t].astype(jnp.float32) + jnp.dot(
            h.astype(jnp.bfloat16), w_hh_b, preferred_element_type=jnp.float32)
        i_g = _sigmoid(gates[:, :H])
        f_g = _sigmoid(gates[:, H:2 * H])
        g_g = jnp.tanh(gates[:, 2 * H:3 * H])
        o_g = _sigmoid(gates[:, 3 * H:])
        c_new = f_g * c + i_g * g_g
        h_new = o_g * jnp.tanh(c_new)
        mask = (t < lengths).reshape(B, 1)
        h = jnp.where(mask, h_new, h)
        c = jnp.where(mask, c_new, c)
        ys.append(jnp.where(mask, h_new, 0.0).astype(jnp.bfloat16))
    return jnp.stack(ys), h, c


def rnn_model_forward_ref(params, input_ids, hidden, lengths, max_len):
    h0_all, c0_all = hidden
    embs = jnp.take(params["encoder"], input_ids, axis=0)
    x = jnp.transpose(embs, (1, 0, 2)).astype(jnp.bfloat16)
    h_n, c_n = [], []
    for l, (w_ih, w_hh, b) in enumerate(params["lstm"]):
        x, h_l, c_l = _lstm_layer_ref(x, w_ih, w_hh, b, h0_all[l], c0_all[l], lengths)
        h_n.append(h_l)
        c_n.append(c_l)
    y_out = x[:max_len]
    dec = (jnp.einsum("tbh,hv->tbv", y_out, params["dec_w_t"].astype(jnp.bfloat16),
                      preferred_element_type=jnp.float32) + params["dec_b"])
    return jnp.transpose(dec, (1, 0, 2)), (jnp.stack(h_n), jnp.stack(c_n))


if __name__ == "__main__":
    # Small shapes consistent with the module's forward.
    ntoken, ninp, nhid, nlayers = 64, 32, 32, 2
    B, T = 2, 8

    key = jax.random.PRNGKey(0)
    k_par, k_tok = jax.random.split(key)
    raw_params = make_params(k_par, ntoken, ninp, nhid, nlayers)
    prepared = prepare_params(raw_params)

    input_ids = jax.random.randint(k_tok, (B, T), 0, ntoken, dtype=jnp.int32)
    # pack_padded_sequence (enforce_sorted=True) expects descending lengths.
    lengths = jnp.array([T, 5], dtype=jnp.int32)
    max_len = int(lengths.max())            # static; concrete outside jit -> no sync in-graph
    # init_hidden(bsz) for LSTM: zeros for h and c.
    hidden = (jnp.zeros((nlayers, B, nhid), jnp.float32),
              jnp.zeros((nlayers, B, nhid), jnp.float32))

    decoded, (h_n, c_n) = rnn_model_forward(prepared, input_ids, hidden, lengths, max_len)
    jax.block_until_ready((decoded, h_n, c_n))

    # Verify against the pure-JAX reference.  Both paths quantize the gate precompute G
    # to bf16; tolerance covers rare bf16 rounding-boundary flips caused by differing
    # f32 accumulation order (Pallas MXU vs XLA einsum) — typical max diff is ~1e-3.
    dec_ref, (h_ref, c_ref) = rnn_model_forward_ref(raw_params, input_ids, hidden,
                                                    lengths, max_len)
    assert decoded.shape == (B, max_len, ntoken)
    assert h_n.shape == (nlayers, B, nhid) and c_n.shape == (nlayers, B, nhid)
    assert jnp.allclose(decoded, dec_ref, rtol=1e-2, atol=1e-2), \
        float(jnp.max(jnp.abs(decoded - dec_ref)))
    assert jnp.allclose(h_n, h_ref, rtol=1e-2, atol=1e-2), \
        float(jnp.max(jnp.abs(h_n - h_ref)))
    assert jnp.allclose(c_n, c_ref, rtol=1e-2, atol=1e-2), \
        float(jnp.max(jnp.abs(c_n - c_ref)))

    print("KERNEL_OK")
</pallas_src>

<mosaic_0001>
module attributes {stable_mosaic.version = 11 : i64} {
  func.func @_matmul_bias_kernel(%arg0: i32, %arg1: i32, %arg2: memref<64x128xbf16, #tpu.memory_space<vmem>>, %arg3: memref<128x512xbf16, #tpu.memory_space<vmem>>, %arg4: memref<1x512xf32, #tpu.memory_space<vmem>>, %arg5: memref<64x512xbf16, #tpu.memory_space<vmem>>) attributes {dimension_semantics = [#tpu.dimension_semantics<parallel>, #tpu.dimension_semantics<parallel>], iteration_bounds = array<i64: 1, 1>, scalar_prefetch = 0 : i64, scratch_operands = 0 : i64, tpu.core_type = #tpu.core_type<tc>, window_params = [{transform_indices = @transform_0, window_bounds = array<i64: 64, 128>}, {transform_indices = @transform_1, window_bounds = array<i64: 128, 512>}, {transform_indices = @transform_2, window_bounds = array<i64: 1, 512>}, {transform_indices = @transform_3, window_bounds = array<i64: 64, 512>}]} {
    %c0 = arith.constant 0 : index
    %c0_0 = arith.constant 0 : index
    %0 = vector.load %arg2[%c0, %c0_0] : memref<64x128xbf16, #tpu.memory_space<vmem>>, vector<64x128xbf16>
    %c0_1 = arith.constant 0 : index
    %c0_2 = arith.constant 0 : index
    %1 = vector.load %arg3[%c0_1, %c0_2] : memref<128x512xbf16, #tpu.memory_space<vmem>>, vector<128x512xbf16>
    %cst = arith.constant dense<0.000000e+00> : vector<64x512xf32>
    %2 = tpu.matmul %0, %1, %cst {dimension_numbers = #tpu.dot_dimension_numbers<[1], [0], [0], [1], [0, 0, 1, 1], [], []>} : vector<64x128xbf16>, vector<128x512xbf16>, vector<64x512xf32> -> vector<64x512xf32>
    %c0_3 = arith.constant 0 : index
    %c0_4 = arith.constant 0 : index
    %3 = vector.load %arg4[%c0_3, %c0_4] : memref<1x512xf32, #tpu.memory_space<vmem>>, vector<1x512xf32>
    %4 = vector.broadcast %3 : vector<1x512xf32> to vector<64x512xf32>
    %5 = arith.addf %2, %4 : vector<64x512xf32>
    %6 = arith.truncf %5 : vector<64x512xf32> to vector<64x512xbf16>
    %c0_5 = arith.constant 0 : index
    %c0_6 = arith.constant 0 : index
    %7 = vector.load %arg5[%c0_5, %c0_6] : memref<64x512xbf16, #tpu.memory_space<vmem>>, vector<64x512xbf16>
    tpu.vector_store %arg5[%c0_5, %c0_6], %6 {strides = array<i32>} : memref<64x512xbf16, #tpu.memory_space<vmem>>, vector<64x512xbf16>,
    return
  }
  func.func @transform_0(%arg0: i32, %arg1: i32) -> (i32, i32) {
    %c0_i32 = arith.constant 0 : i32
    %c0_i32_0 = arith.constant 0 : i32
    return %arg0, %c0_i32 : i32, i32
  }
  func.func @transform_1(%arg0: i32, %arg1: i32) -> (i32, i32) {
    %c0_i32 = arith.constant 0 : i32
    %c0_i32_0 = arith.constant 0 : i32
    return %c0_i32, %arg1 : i32, i32
  }
  func.func @transform_2(%arg0: i32, %arg1: i32) -> (i32, i32) {
    %c0_i32 = arith.constant 0 : i32
    %c0_i32_0 = arith.constant 0 : i32
    return %c0_i32, %arg1 : i32, i32
  }
  func.func @transform_3(%arg0: i32, %arg1: i32) -> (i32, i32) {
    %c0_i32 = arith.constant 0 : i32
    return %arg0, %arg1 : i32, i32
  }
}

module attributes {stable_mosaic.version = 11 : i64} {
  func.func @_matmul_bias_kernel(%arg0: i32, %arg1: i32, %arg2: memref<16x128xbf16, #tpu.memory_space<vmem>>, %arg3: memref<128x128xbf16, #tpu.memory_space<vmem>>, %arg4: memref<1x128xf32, #tpu.memory_space<vmem>>, %arg5: memref<16x128xf32, #tpu.memory_space<vmem>>) attributes {dimension_semantics = [#tpu.dimension_semantics<parallel>, #tpu.dimension_semantics<parallel>], iteration_bounds = array<i64: 1, 1>, scalar_prefetch = 0 : i64, scratch_operands = 0 : i64, tpu.core_type = #tpu.core_type<tc>, window_params = [{transform_indices = @transform_0, window_bounds = array<i64: 16, 128>}, {transform_indices = @transform_1, window_bounds = array<i64: 128, 128>}, {transform_indices = @transform_2, window_bounds = array<i64: 1, 128>}, {transform_indices = @transform_3, window_bounds = array<i64: 16, 128>}]} {
    %c0 = arith.constant 0 : index
    %c0_0 = arith.constant 0 : index
    %0 = vector.load %arg2[%c0, %c0_0] : memref<16x128xbf16, #tpu.memory_space<vmem>>, vector<16x128xbf16>
    %c0_1 = arith.constant 0 : index
    %c0_2 = arith.constant 0 : index
    %1 = vector.load %arg3[%c0_1, %c0_2] : memref<128x128xbf16, #tpu.memory_space<vmem>>, vector<128x128xbf16>
    %cst = arith.constant dense<0.000000e+00> : vector<16x128xf32>
    %2 = tpu.matmul %0, %1, %cst {dimension_numbers = #tpu.dot_dimension_numbers<[1], [0], [0], [1], [0, 0, 1, 1], [], []>} : vector<16x128xbf16>, vector<128x128xbf16>, vector<16x128xf32> -> vector<16x128xf32>
    %c0_3 = arith.constant 0 : index
    %c0_4 = arith.constant 0 : index
    %3 = vector.load %arg4[%c0_3, %c0_4] : memref<1x128xf32, #tpu.memory_space<vmem>>, vector<1x128xf32>
    %4 = vector.broadcast %3 : vector<1x128xf32> to vector<16x128xf32>
    %5 = arith.addf %2, %4 : vector<16x128xf32>
    %c0_5 = arith.constant 0 : index
    %c0_6 = arith.constant 0 : index
    %6 = vector.load %arg5[%c0_5, %c0_6] : memref<16x128xf32, #tpu.memory_space<vmem>>, vector<16x128xf32>
    tpu.vector_store %arg5[%c0_5, %c0_6], %5 {strides = array<i32>} : memref<16x128xf32, #tpu.memory_space<vmem>>, vector<16x128xf32>,
    return
  }
  func.func @transform_0(%arg0: i32, %arg1: i32) -> (i32, i32) {
    %c0_i32 = arith.constant 0 : i32
    %c0_i32_0 = arith.constant 0 : i32
    return %arg0, %c0_i32 : i32, i32
  }
  func.func @transform_1(%arg0: i32, %arg1: i32) -> (i32, i32) {
    %c0_i32 = arith.constant 0 : i32
    %c0_i32_0 = arith.constant 0 : i32
    return %c0_i32, %arg1 : i32, i32
  }
  func.func @transform_2(%arg0: i32, %arg1: i32) -> (i32, i32) {
    %c0_i32 = arith.constant 0 : i32
    %c0_i32_0 = arith.constant 0 : i32
    return %c0_i32, %arg1 : i32, i32
  }
  func.func @transform_3(%arg0: i32, %arg1: i32) -> (i32, i32) {
    %c0_i32 = arith.constant 0 : i32
    return %arg0, %arg1 : i32, i32
  }
}

module attributes {stable_mosaic.version = 11 : i64} {
  func.func @_lstm_rec_kernel(%arg0: i32, %arg1: i32, %arg2: memref<8x8x512xbf16, #tpu.memory_space<vmem>>, %arg3: memref<128x512xbf16, #tpu.memory_space<vmem>>, %arg4: memref<8x128xf32, #tpu.memory_space<vmem>>, %arg5: memref<8x128xf32, #tpu.memory_space<vmem>>, %arg6: memref<8x1xi32, #tpu.memory_space<vmem>>, %arg7: memref<8x8x128xbf16, #tpu.memory_space<vmem>>, %arg8: memref<8x128xf32, #tpu.memory_space<vmem>>, %arg9: memref<8x128xf32, #tpu.memory_space<vmem>>) attributes {dimension_semantics = [#tpu.dimension_semantics<parallel>, #tpu.dimension_semantics<arbitrary>], iteration_bounds = array<i64: 1, 1>, scalar_prefetch = 0 : i64, scratch_operands = 0 : i64, tpu.core_type = #tpu.core_type<tc>, window_params = [{transform_indices = @transform_0, window_bounds = array<i64: 8, 8, 512>}, {pipeline_mode = #tpu.pipeline_mode<synchronous>, transform_indices = @transform_1, window_bounds = array<i64: 128, 512>}, {transform_indices = @transform_2, window_bounds = array<i64: 8, 128>}, {transform_indices = @transform_3, window_bounds = array<i64: 8, 128>}, {transform_indices = @transform_4, window_bounds = array<i64: 8, 1>}, {transform_indices = @transform_5, window_bounds = array<i64: 8, 8, 128>}, {transform_indices = @transform_6, window_bounds = array<i64: 8, 128>}, {transform_indices = @transform_7, window_bounds = array<i64: 8, 128>}]} {
    %c0_i32 = arith.constant 0 : i32
    %0 = arith.cmpi eq, %arg1, %c0_i32 : i32
    %1 = arith.extui %0 : i1 to i32
    %c0_i32_0 = arith.constant 0 : i32
    %2 = arith.cmpi ne, %1, %c0_i32_0 : i32
    scf.if %2 {
      %c0_217 = arith.constant 0 : index
      %c0_218 = arith.constant 0 : index
      %500 = vector.load %arg4[%c0_217, %c0_218] : memref<8x128xf32, #tpu.memory_space<vmem>>, vector<8x128xf32>
      %c0_219 = arith.constant 0 : index
      %c0_220 = arith.constant 0 : index
      %501 = vector.load %arg8[%c0_219, %c0_220] : memref<8x128xf32, #tpu.memory_space<vmem>>, vector<8x128xf32>
      tpu.vector_store %arg8[%c0_219, %c0_220], %500 {strides = array<i32>} : memref<8x128xf32, #tpu.memory_space<vmem>>, vector<8x128xf32>,
      %c0_221 = arith.constant 0 : index
      %c0_222 = arith.constant 0 : index
      %502 = vector.load %arg5[%c0_221, %c0_222] : memref<8x128xf32, #tpu.memory_space<vmem>>, vector<8x128xf32>
      %c0_223 = arith.constant 0 : index
      %c0_224 = arith.constant 0 : index
      %503 = vector.load %arg9[%c0_223, %c0_224] : memref<8x128xf32, #tpu.memory_space<vmem>>, vector<8x128xf32>
      tpu.vector_store %arg9[%c0_223, %c0_224], %502 {strides = array<i32>} : memref<8x128xf32, #tpu.memory_space<vmem>>, vector<8x128xf32>,
    } else {
    }
    %c8_i32 = arith.constant 8 : i32
    %3 = arith.muli %arg1, %c8_i32 : i32
    %c0_i32_1 = arith.constant 0 : i32
    %c0 = arith.constant 0 : index
    %c0_2 = arith.constant 0 : index
    %4 = vector.load %arg8[%c0, %c0_2] : memref<8x128xf32, #tpu.memory_space<vmem>>, vector<8x128xf32>
    %c0_3 = arith.constant 0 : index
    %c0_4 = arith.constant 0 : index
    %5 = vector.load %arg9[%c0_3, %c0_4] : memref<8x128xf32, #tpu.memory_space<vmem>>, vector<8x128xf32>
    %6 = arith.index_cast %c0_i32_1 : i32 to index
    %c0_5 = arith.constant 0 : index
    %c0_6 = arith.constant 0 : index
    %7 = vector.load %arg2[%6, %c0_5, %c0_6] : memref<8x8x512xbf16, #tpu.memory_space<vmem>>, vector<1x8x512xbf16>
    %8 = vector.shape_cast %7 : vector<1x8x512xbf16> to vector<8x512xbf16>
    %9 = arith.extf %8 : vector<8x512xbf16> to vector<8x512xf32>
    %10 = arith.truncf %4 : vector<8x128xf32> to vector<8x128xbf16>
    %c0_7 = arith.constant 0 : index
    %c0_8 = arith.constant 0 : index
    %11 = vector.load %arg3[%c0_7, %c0_8] : memref<128x512xbf16, #tpu.memory_space<vmem>>, vector<128x512xbf16>
    %cst = arith.constant dense<0.000000e+00> : vector<8x512xf32>
    %12 = tpu.matmul %10, %11, %cst {dimension_numbers = #tpu.dot_dimension_numbers<[1], [0], [0], [1], [0, 0, 1, 1], [], []>} : vector<8x128xbf16>, vector<128x512xbf16>, vector<8x512xf32> -> vector<8x512xf32>
    %13 = arith.addf %9, %12 : vector<8x512xf32>
    %14 = vector.extract_strided_slice %13 {offsets = [0, 0], sizes = [8, 128], strides = [1, 1]} : vector<8x512xf32> to vector<8x128xf32>
    %cst_9 = arith.constant 5.000000e-01 : f32
    %15 = vector.broadcast %cst_9 : f32 to vector<8x128xf32>
    %16 = arith.mulf %15, %14 : vector<8x128xf32>
    %17 = math.tanh %16 : vector<8x128xf32>
    %cst_10 = arith.constant 5.000000e-01 : f32
    %18 = vector.broadcast %cst_10 : f32 to vector<8x128xf32>
    %19 = arith.mulf %18, %17 : vector<8x128xf32>
    %cst_11 = arith.constant 5.000000e-01 : f32
    %20 = vector.broadcast %cst_11 : f32 to vector<8x128xf32>
    %21 = arith.addf %19, %20 : vector<8x128xf32>
    %22 = vector.extract_strided_slice %13 {offsets = [0, 128], sizes = [8, 128], strides = [1, 1]} : vector<8x512xf32> to vector<8x128xf32>
    %cst_12 = arith.constant 5.000000e-01 : f32
    %23 = vector.broadcast %cst_12 : f32 to vector<8x128xf32>
    %24 = arith.mulf %23, %22 : vector<8x128xf32>
    %25 = math.tanh %24 : vector<8x128xf32>
    %cst_13 = arith.constant 5.000000e-01 : f32
    %26 = vector.broadcast %cst_13 : f32 to vector<8x128xf32>
    %27 = arith.mulf %26, %25 : vector<8x128xf32>
    %cst_14 = arith.constant 5.000000e-01 : f32
    %28 = vector.broadcast %cst_14 : f32 to vector<8x128xf32>
    %29 = arith.addf %27, %28 : vector<8x128xf32>
    %30 = vector.extract_strided_slice %13 {offsets = [0, 256], sizes = [8, 128], strides = [1, 1]} : vector<8x512xf32> to vector<8x128xf32>
    %31 = math.tanh %30 : vector<8x128xf32>
    %32 = vector.extract_strided_slice %13 {offsets = [0, 384], sizes = [8, 128], strides = [1, 1]} : vector<8x512xf32> to vector<8x128xf32>
    %cst_15 = arith.constant 5.000000e-01 : f32
    %33 = vector.broadcast %cst_15 : f32 to vector<8x128xf32>
    %34 = arith.mulf %33, %32 : vector<8x128xf32>
    %35 = math.tanh %34 : vector<8x128xf32>
    %cst_16 = arith.constant 5.000000e-01 : f32
    %36 = vector.broadcast %cst_16 : f32 to vector<8x128xf32>
    %37 = arith.mulf %36, %35 : vector<8x128xf32>
    %cst_17 = arith.constant 5.000000e-01 : f32
    %38 = vector.broadcast %cst_17 : f32 to vector<8x128xf32>
    %39 = arith.addf %37, %38 : vector<8x128xf32>
    %40 = arith.mulf %29, %5 : vector<8x128xf32>
    %41 = arith.mulf %21, %31 : vector<8x128xf32>
    %42 = arith.addf %40, %41 : vector<8x128xf32>
    %43 = math.tanh %42 : vector<8x128xf32>
    %44 = arith.mulf %39, %43 : vector<8x128xf32>
    %45 = arith.addi %3, %c0_i32_1 : i32
    %c0_18 = arith.constant 0 : index
    %c0_19 = arith.constant 0 : index
    %46 = vector.load %arg6[%c0_18, %c0_19] : memref<8x1xi32, #tpu.memory_space<vmem>>, vector<8x1xi32>
    %47 = vector.broadcast %45 : i32 to vector<8x1xi32>
    %48 = arith.cmpi slt, %47, %46 : vector<8x1xi32>
    %49 = vector.shape_cast %48 : vector<8x1xi1> to vector<8x1xi1>
    %50 = vector.broadcast %49 : vector<8x1xi1> to vector<8x128xi1>
    %51 = arith.select %50, %44, %4 : vector<8x128xi1>, vector<8x128xf32>
    %c0_20 = arith.constant 0 : index
    %c0_21 = arith.constant 0 : index
    %52 = vector.load %arg8[%c0_20, %c0_21] : memref<8x128xf32, #tpu.memory_space<vmem>>, vector<8x128xf32>
    tpu.vector_store %arg8[%c0_20, %c0_21], %51 {strides = array<i32>} : memref<8x128xf32, #tpu.memory_space<vmem>>, vector<8x128xf32>,
    %53 = vector.shape_cast %48 : vector<8x1xi1> to vector<8x1xi1>
    %54 = vector.broadcast %53 : vector<8x1xi1> to vector<8x128xi1>
    %55 = arith.select %54, %42, %5 : vector<8x128xi1>, vector<8x128xf32>
    %c0_22 = arith.constant 0 : index
    %c0_23 = arith.constant 0 : index
    %56 = vector.load %arg9[%c0_22, %c0_23] : memref<8x128xf32, #tpu.memory_space<vmem>>, vector<8x128xf32>
    tpu.vector_store %arg9[%c0_22, %c0_23], %55 {strides = array<i32>} : memref<8x128xf32, #tpu.memory_space<vmem>>, vector<8x128xf32>,
    %cst_24 = arith.constant 0.000000e+00 : f32
    %57 = vector.shape_cast %48 : vector<8x1xi1> to vector<8x1xi1>
    %58 = vector.broadcast %57 : vector<8x1xi1> to vector<8x128xi1>
    %59 = vector.broadcast %cst_24 : f32 to vector<8x128xf32>
    %60 = arith.select %58, %44, %59 : vector<8x128xi1>, vector<8x128xf32>
    %61 = arith.truncf %60 : vector<8x128xf32> to vector<8x128xbf16>
    %62 = arith.index_cast %c0_i32_1 : i32 to index
    %c0_25 = arith.constant 0 : index
    %c0_26 = arith.constant 0 : index
    %63 = vector.load %arg7[%62, %c0_25, %c0_26] : memref<8x8x128xbf16, #tpu.memory_space<vmem>>, vector<1x8x128xbf16>
    %64 = vector.shape_cast %63 : vector<1x8x128xbf16> to vector<8x128xbf16>
    %65 = vector.shape_cast %61 : vector<8x128xbf16> to vector<1x8x128xbf16>
    tpu.vector_store %arg7[%62, %c0_25, %c0_26], %65 {strides = array<i32>} : memref<8x8x128xbf16, #tpu.memory_space<vmem>>, vector<1x8x128xbf16>,
    %c1_i32 = arith.constant 1 : i32
    %c0_27 = arith.constant 0 : index
    %c0_28 = arith.constant 0 : index
    %66 = vector.load %arg8[%c0_27, %c0_28] : memref<8x128xf32, #tpu.memory_space<vmem>>, vector<8x128xf32>
    %c0_29 = arith.constant 0 : index
    %c0_30 = arith.constant 0 : index
    %67 = vector.load %arg9[%c0_29, %c0_30] : memref<8x128xf32, #tpu.memory_space<vmem>>, vector<8x128xf32>
    %68 = arith.index_cast %c1_i32 : i32 to index
    %c0_31 = arith.constant 0 : index
    %c0_32 = arith.constant 0 : index
    %69 = vector.load %arg2[%68, %c0_31, %c0_32] : memref<8x8x512xbf16, #tpu.memory_space<vmem>>, vector<1x8x512xbf16>
    %70 = vector.shape_cast %69 : vector<1x8x512xbf16> to vector<8x512xbf16>
    %71 = arith.extf %70 : vector<8x512xbf16> to vector<8x512xf32>
    %72 = arith.truncf %66 : vector<8x128xf32> to vector<8x128xbf16>
    %c0_33 = arith.constant 0 : index
    %c0_34 = arith.constant 0 : index
    %73 = vector.load %arg3[%c0_33, %c0_34] : memref<128x512xbf16, #tpu.memory_space<vmem>>, vector<128x512xbf16>
    %cst_35 = arith.constant dense<0.000000e+00> : vector<8x512xf32>
    %74 = tpu.matmul %72, %73, %cst_35 {dimension_numbers = #tpu.dot_dimension_numbers<[1], [0], [0], [1], [0, 0, 1, 1], [], []>} : vector<8x128xbf16>, vector<128x512xbf16>, vector<8x512xf32> -> vector<8x512xf32>
    %75 = arith.addf %71, %74 : vector<8x512xf32>
    %76 = vector.extract_strided_slice %75 {offsets = [0, 0], sizes = [8, 128], strides = [1, 1]} : vector<8x512xf32> to vector<8x128xf32>
    %cst_36 = arith.constant 5.000000e-01 : f32
    %77 = vector.broadcast %cst_36 : f32 to vector<8x128xf32>
    %78 = arith.mulf %77, %76 : vector<8x128xf32>
    %79 = math.tanh %78 : vector<8x128xf32>
    %cst_37 = arith.constant 5.000000e-01 : f32
    %80 = vector.broadcast %cst_37 : f32 to vector<8x128xf32>
    %81 = arith.mulf %80, %79 : vector<8x128xf32>
    %cst_38 = arith.constant 5.000000e-01 : f32
    %82 = vector.broadcast %cst_38 : f32 to vector<8x128xf32>
    %83 = arith.addf %81, %82 : vector<8x128xf32>
    %84 = vector.extract_strided_slice %75 {offsets = [0, 128], sizes = [8, 128], strides = [1, 1]} : vector<8x512xf32> to vector<8x128xf32>
    %cst_39 = arith.constant 5.000000e-01 : f32
    %85 = vector.broadcast %cst_39 : f32 to vector<8x128xf32>
    %86 = arith.mulf %85, %84 : vector<8x128xf32>
    %87 = math.tanh %86 : vector<8x128xf32>
    %cst_40 = arith.constant 5.000000e-01 : f32
    %88 = vector.broadcast %cst_40 : f32 to vector<8x128xf32>
    %89 = arith.mulf %88, %87 : vector<8x128xf32>
    %cst_41 = arith.constant 5.000000e-01 : f32
    %90 = vector.broadcast %cst_41 : f32 to vector<8x128xf32>
    %91 = arith.addf %89, %90 : vector<8x128xf32>
    %92 = vector.extract_strided_slice %75 {offsets = [0, 256], sizes = [8, 128], strides = [1, 1]} : vector<8x512xf32> to vector<8x128xf32>
    %93 = math.tanh %92 : vector<8x128xf32>
    %94 = vector.extract_strided_slice %75 {offsets = [0, 384], sizes = [8, 128], strides = [1, 1]} : vector<8x512xf32> to vector<8x128xf32>
    %cst_42 = arith.constant 5.000000e-01 : f32
    %95 = vector.broadcast %cst_42 : f32 to vector<8x128xf32>
    %96 = arith.mulf %95, %94 : vector<8x128xf32>
    %97 = math.tanh %96 : vector<8x128xf32>
    %cst_43 = arith.constant 5.000000e-01 : f32
    %98 = vector.broadcast %cst_43 : f32 to vector<8x128xf32>
    %99 = arith.mulf %98, %97 : vector<8x128xf32>
    %cst_44 = arith.constant 5.000000e-01 : f32
    %100 = vector.broadcast %cst_44 : f32 to vector<8x128xf32>
    %101 = arith.addf %99, %100 : vector<8x128xf32>
    %102 = arith.mulf %91, %67 : vector<8x128xf32>
    %103 = arith.mulf %83, %93 : vector<8x128xf32>
    %104 = arith.addf %102, %103 : vector<8x128xf32>
    %105 = math.tanh %104 : vector<8x128xf32>
    %106 = arith.mulf %101, %105 : vector<8x128xf32>
    %107 = arith.addi %3, %c1_i32 : i32
    %c0_45 = arith.constant 0 : index
    %c0_46 = arith.constant 0 : index
    %108 = vector.load %arg6[%c0_45, %c0_46] : memref<8x1xi32, #tpu.memory_space<vmem>>, vector<8x1xi32>
    %109 = vector.broadcast %107 : i32 to vector<8x1xi32>
    %110 = arith.cmpi slt, %109, %108 : vector<8x1xi32>
    %111 = vector.shape_cast %110 : vector<8x1xi1> to vector<8x1xi1>
    %112 = vector.broadcast %111 : vector<8x1xi1> to vector<8x128xi1>
    %113 = arith.select %112, %106, %66 : vector<8x128xi1>, vector<8x128xf32>
    %c0_47 = arith.constant 0 : index
    %c0_48 = arith.constant 0 : index
    %114 = vector.load %arg8[%c0_47, %c0_48] : memref<8x128xf32, #tpu.memory_space<vmem>>, vector<8x128xf32>
    tpu.vector_store %arg8[%c0_47, %c0_48], %113 {strides = array<i32>} : memref<8x128xf32, #tpu.memory_space<vmem>>, vector<8x128xf32>,
    %115 = vector.shape_cast %110 : vector<8x1xi1> to vector<8x1xi1>
    %116 = vector.broadcast %115 : vector<8x1xi1> to vector<8x128xi1>
    %117 = arith.select %116, %104, %67 : vector<8x128xi1>, vector<8x128xf32>
    %c0_49 = arith.constant 0 : index
    %c0_50 = arith.constant 0 : index
    %118 = vector.load %arg9[%c0_49, %c0_50] : memref<8x128xf32, #tpu.memory_space<vmem>>, vector<8x128xf32>
    tpu.vector_store %arg9[%c0_49, %c0_50], %117 {strides = array<i32>} : memref<8x128xf32, #tpu.memory_space<vmem>>, vector<8x128xf32>,
    %cst_51 = arith.constant 0.000000e+00 : f32
    %119 = vector.shape_cast %110 : vector<8x1xi1> to vector<8x1xi1>
    %120 = vector.broadcast %119 : vector<8x1xi1> to vector<8x128xi1>
    %121 = vector.broadcast %cst_51 : f32 to vector<8x128xf32>
    %122 = arith.select %120, %106, %121 : vector<8x128xi1>, vector<8x128xf32>
    %123 = arith.truncf %122 : vector<8x128xf32> to vector<8x128xbf16>
    %124 = arith.index_cast %c1_i32 : i32 to index
    %c0_52 = arith.constant 0 : index
    %c0_53 = arith.constant 0 : index
    %125 = vector.load %arg7[%124, %c0_52, %c0_53] : memref<8x8x128xbf16, #tpu.memory_space<vmem>>, vector<1x8x128xbf16>
    %126 = vector.shape_cast %125 : vector<1x8x128xbf16> to vector<8x128xbf16>
    %127 = vector.shape_cast %123 : vector<8x128xbf16> to vector<1x8x128xbf16>
    tpu.vector_store %arg7[%124, %c0_52, %c0_53], %127 {strides = array<i32>} : memref<8x8x128xbf16, #tpu.memory_space<vmem>>, vector<1x8x128xbf16>,
    %c2_i32 = arith.constant 2 : i32
    %c0_54 = arith.constant 0 : index
    %c0_55 = arith.constant 0 : index
    %128 = vector.load %arg8[%c0_54, %c0_55] : memref<8x128xf32, #tpu.memory_space<vmem>>, vector<8x128xf32>
    %c0_56 = arith.constant 0 : index
    %c0_57 = arith.constant 0 : index
    %129 = vector.load %arg9[%c0_56, %c0_57] : memref<8x128xf32, #tpu.memory_space<vmem>>, vector<8x128xf32>
    %130 = arith.index_cast %c2_i32 : i32 to index
    %c0_58 = arith.constant 0 : index
    %c0_59 = arith.constant 0 : index
    %131 = vector.load %arg2[%130, %c0_58, %c0_59] : memref<8x8x512xbf16, #tpu.memory_space<vmem>>, vector<1x8x512xbf16>
    %132 = vector.shape_cast %131 : vector<1x8x512xbf16> to vector<8x512xbf16>
    %133 = arith.extf %132 : vector<8x512xbf16> to vector<8x512xf32>
    %134 = arith.truncf %128 : vector<8x128xf32> to vector<8x128xbf16>
    %c0_60 = arith.constant 0 : index
    %c0_61 = arith.constant 0 : index
    %135 = vector.load %arg3[%c0_60, %c0_61] : memref<128x512xbf16, #tpu.memory_space<vmem>>, vector<128x512xbf16>
    %cst_62 = arith.constant dense<0.000000e+00> : vector<8x512xf32>
    %136 = tpu.matmul %134, %135, %cst_62 {dimension_numbers = #tpu.dot_dimension_numbers<[1], [0], [0], [1], [0, 0, 1, 1], [], []>} : vector<8x128xbf16>, vector<128x512xbf16>, vector<8x512xf32> -> vector<8x512xf32>
    %137 = arith.addf %133, %136 : vector<8x512xf32>
    %138 = vector.extract_strided_slice %137 {offsets = [0, 0], sizes = [8, 128], strides = [1, 1]} : vector<8x512xf32> to vector<8x128xf32>
    %cst_63 = arith.constant 5.000000e-01 : f32
    %139 = vector.broadcast %cst_63 : f32 to vector<8x128xf32>
    %140 = arith.mulf %139, %138 : vector<8x128xf32>
    %141 = math.tanh %140 : vector<8x128xf32>
    %cst_64 = arith.constant 5.000000e-01 : f32
    %142 = vector.broadcast %cst_64 : f32 to vector<8x128xf32>
    %143 = arith.mulf %142, %141 : vector<8x128xf32>
    %cst_65 = arith.constant 5.000000e-01 : f32
    %144 = vector.broadcast %cst_65 : f32 to vector<8x128xf32>
    %145 = arith.addf %143, %144 : vector<8x128xf32>
    %146 = vector.extract_strided_slice %137 {offsets = [0, 128], sizes = [8, 128], strides = [1, 1]} : vector<8x512xf32> to vector<8x128xf32>
    %cst_66 = arith.constant 5.000000e-01 : f32
    %147 = vector.broadcast %cst_66 : f32 to vector<8x128xf32>
    %148 = arith.mulf %147, %146 : vector<8x128xf32>
    %149 = math.tanh %148 : vector<8x128xf32>
    %cst_67 = arith.constant 5.000000e-01 : f32
    %150 = vector.broadcast %cst_67 : f32 to vector<8x128xf32>
    %151 = arith.mulf %150, %149 : vector<8x128xf32>
    %cst_68 = arith.constant 5.000000e-01 : f32
    %152 = vector.broadcast %cst_68 : f32 to vector<8x128xf32>
    %153 = arith.addf %151, %152 : vector<8x128xf32>
    %154 = vector.extract_strided_slice %137 {offsets = [0, 256], sizes = [8, 128], strides = [1, 1]} : vector<8x512xf32> to vector<8x128xf32>
    %155 = math.tanh %154 : vector<8x128xf32>
    %156 = vector.extract_strided_slice %137 {offsets = [0, 384], sizes = [8, 128], strides = [1, 1]} : vector<8x512xf32> to vector<8x128xf32>
    %cst_69 = arith.constant 5.000000e-01 : f32
    %157 = vector.broadcast %cst_69 : f32 to vector<8x128xf32>
    %158 = arith.mulf %157, %156 : vector<8x128xf32>
    %159 = math.tanh %158 : vector<8x128xf32>
    %cst_70 = arith.constant 5.000000e-01 : f32
    %160 = vector.broadcast %cst_70 : f32 to vector<8x128xf32>
    %161 = arith.mulf %160, %159 : vector<8x128xf32>
    %cst_71 = arith.constant 5.000000e-01 : f32
    %162 = vector.broadcast %cst_71 : f32 to vector<8x128xf32>
    %163 = arith.addf %161, %162 : vector<8x128xf32>
    %164 = arith.mulf %153, %129 : vector<8x128xf32>
    %165 = arith.mulf %145, %155 : vector<8x128xf32>
    %166 = arith.addf %164, %165 : vector<8x128xf32>
    %167 = math.tanh %166 : vector<8x128xf32>
    %168 = arith.mulf %163, %167 : vector<8x128xf32>
    %169 = arith.addi %3, %c2_i32 : i32
    %c0_72 = arith.constant 0 : index
    %c0_73 = arith.constant 0 : index
    %170 = vector.load %arg6[%c0_72, %c0_73] : memref<8x1xi32, #tpu.memory_space<vmem>>, vector<8x1xi32>
    %171 = vector.broadcast %169 : i32 to vector<8x1xi32>
    %172 = arith.cmpi slt, %171, %170 : vector<8x1xi32>
    %173 = vector.shape_cast %172 : vector<8x1xi1> to vector<8x1xi1>
    %174 = vector.broadcast %173 : vector<8x1xi1> to vector<8x128xi1>
    %175 = arith.select %174, %168, %128 : vector<8x128xi1>, vector<8x128xf32>
    %c0_74 = arith.constant 0 : index
    %c0_75 = arith.constant 0 : index
    %176 = vector.load %arg8[%c0_74, %c0_75] : memref<8x128xf32, #tpu.memory_space<vmem>>, vector<8x128xf32>
    tpu.vector_store %arg8[%c0_74, %c0_75], %175 {strides = array<i32>} : memref<8x128xf32, #tpu.memory_space<vmem>>, vector<8x128xf32>,
    %177 = vector.shape_cast %172 : vector<8x1xi1> to vector<8x1xi1>
    %178 = vector.broadcast %177 : vector<8x1xi1> to vector<8x128xi1>
    %179 = arith.select %178, %166, %129 : vector<8x128xi1>, vector<8x128xf32>
    %c0_76 = arith.constant 0 : index
    %c0_77 = arith.constant 0 : index
    %180 = vector.load %arg9[%c0_76, %c0_77] : memref<8x128xf32, #tpu.memory_space<vmem>>, vector<8x128xf32>
    tpu.vector_store %arg9[%c0_76, %c0_77], %179 {strides = array<i32>} : memref<8x128xf32, #tpu.memory_space<vmem>>, vector<8x128xf32>,
    %cst_78 = arith.constant 0.000000e+00 : f32
    %181 = vector.shape_cast %172 : vector<8x1xi1> to vector<8x1xi1>
    %182 = vector.broadcast %181 : vector<8x1xi1> to vector<8x128xi1>
    %183 = vector.broadcast %cst_78 : f32 to vector<8x128xf32>
    %184 = arith.select %182, %168, %183 : vector<8x128xi1>, vector<8x128xf32>
    %185 = arith.truncf %184 : vector<8x128xf32> to vector<8x128xbf16>
    %186 = arith.index_cast %c2_i32 : i32 to index
    %c0_79 = arith.constant 0 : index
    %c0_80 = arith.constant 0 : index
    %187 = vector.load %arg7[%186, %c0_79, %c0_80] : memref<8x8x128xbf16, #tpu.memory_space<vmem>>, vector<1x8x128xbf16>
    %188 = vector.shape_cast %187 : vector<1x8x128xbf16> to vector<8x128xbf16>
    %189 = vector.shape_cast %185 : vector<8x128xbf16> to vector<1x8x128xbf16>
    tpu.vector_store %arg7[%186, %c0_79, %c0_80], %189 {strides = array<i32>} : memref<8x8x128xbf16, #tpu.memory_space<vmem>>, vector<1x8x128xbf16>,
    %c3_i32 = arith.constant 3 : i32
    %c0_81 = arith.constant 0 : index
    %c0_82 = arith.constant 0 : index
    %190 = vector.load %arg8[%c0_81, %c0_82] : memref<8x128xf32, #tpu.memory_space<vmem>>, vector<8x128xf32>
    %c0_83 = arith.constant 0 : index
    %c0_84 = arith.constant 0 : index
    %191 = vector.load %arg9[%c0_83, %c0_84] : memref<8x128xf32, #tpu.memory_space<vmem>>, vector<8x128xf32>
    %192 = arith.index_cast %c3_i32 : i32 to index
    %c0_85 = arith.constant 0 : index
    %c0_86 = arith.constant 0 : index
    %193 = vector.load %arg2[%192, %c0_85, %c0_86] : memref<8x8x512xbf16, #tpu.memory_space<vmem>>, vector<1x8x512xbf16>
    %194 = vector.shape_cast %193 : vector<1x8x512xbf16> to vector<8x512xbf16>
    %195 = arith.extf %194 : vector<8x512xbf16> to vector<8x512xf32>
    %196 = arith.truncf %190 : vector<8x128xf32> to vector<8x128xbf16>
    %c0_87 = arith.constant 0 : index
    %c0_88 = arith.constant 0 : index
    %197 = vector.load %arg3[%c0_87, %c0_88] : memref<128x512xbf16, #tpu.memory_space<vmem>>, vector<128x512xbf16>
    %cst_89 = arith.constant dense<0.000000e+00> : vector<8x512xf32>
    %198 = tpu.matmul %196, %197, %cst_89 {dimension_numbers = #tpu.dot_dimension_numbers<[1], [0], [0], [1], [0, 0, 1, 1], [], []>} : vector<8x128xbf16>, vector<128x512xbf16>, vector<8x512xf32> -> vector<8x512xf32>
    %199 = arith.addf %195, %198 : vector<8x512xf32>
    %200 = vector.extract_strided_slice %199 {offsets = [0, 0], sizes = [8, 128], strides = [1, 1]} : vector<8x512xf32> to vector<8x128xf32>
    %cst_90 = arith.constant 5.000000e-01 : f32
    %201 = vector.broadcast %cst_90 : f32 to vector<8x128xf32>
    %202 = arith.mulf %201, %200 : vector<8x128xf32>
    %203 = math.tanh %202 : vector<8x128xf32>
    %cst_91 = arith.constant 5.000000e-01 : f32
    %204 = vector.broadcast %cst_91 : f32 to vector<8x128xf32>
    %205 = arith.mulf %204, %203 : vector<8x128xf32>
    %cst_92 = arith.constant 5.000000e-01 : f32
    %206 = vector.broadcast %cst_92 : f32 to vector<8x128xf32>
    %207 = arith.addf %205, %206 : vector<8x128xf32>
    %208 = vector.extract_strided_slice %199 {offsets = [0, 128], sizes = [8, 128], strides = [1, 1]} : vector<8x512xf32> to vector<8x128xf32>
    %cst_93 = arith.constant 5.000000e-01 : f32
    %209 = vector.broadcast %cst_93 : f32 to vector<8x128xf32>
    %210 = arith.mulf %209, %208 : vector<8x128xf32>
    %211 = math.tanh %210 : vector<8x128xf32>
    %cst_94 = arith.constant 5.000000e-01 : f32
    %212 = vector.broadcast %cst_94 : f32 to vector<8x128xf32>
    %213 = arith.mulf %212, %211 : vector<8x128xf32>
    %cst_95 = arith.constant 5.000000e-01 : f32
    %214 = vector.broadcast %cst_95 : f32 to vector<8x128xf32>
    %215 = arith.addf %213, %214 : vector<8x128xf32>
    %216 = vector.extract_strided_slice %199 {offsets = [0, 256], sizes = [8, 128], strides = [1, 1]} : vector<8x512xf32> to vector<8x128xf32>
    %217 = math.tanh %216 : vector<8x128xf32>
    %218 = vector.extract_strided_slice %199 {offsets = [0, 384], sizes = [8, 128], strides = [1, 1]} : vector<8x512xf32> to vector<8x128xf32>
    %cst_96 = arith.constant 5.000000e-01 : f32
    %219 = vector.broadcast %cst_96 : f32 to vector<8x128xf32>
    %220 = arith.mulf %219, %218 : vector<8x128xf32>
    %221 = math.tanh %220 : vector<8x128xf32>
    %cst_97 = arith.constant 5.000000e-01 : f32
    %222 = vector.broadcast %cst_97 : f32 to vector<8x128xf32>
    %223 = arith.mulf %222, %221 : vector<8x128xf32>
    %cst_98 = arith.constant 5.000000e-01 : f32
    %224 = vector.broadcast %cst_98 : f32 to vector<8x128xf32>
    %225 = arith.addf %223, %224 : vector<8x128xf32>
    %226 = arith.mulf %215, %191 : vector<8x128xf32>
    %227 = arith.mulf %207, %217 : vector<8x128xf32>
    %228 = arith.addf %226, %227 : vector<8x128xf32>
    %229 = math.tanh %228 : vector<8x128xf32>
    %230 = arith.mulf %225, %229 : vector<8x128xf32>
    %231 = arith.addi %3, %c3_i32 : i32
    %c0_99 = arith.constant 0 : index
    %c0_100 = arith.constant 0 : index
    %232 = vector.load %arg6[%c0_99, %c0_100] : memref<8x1xi32, #tpu.memory_space<vmem>>, vector<8x1xi32>
    %233 = vector.broadcast %231 : i32 to vector<8x1xi32>
    %234 = arith.cmpi slt, %233, %232 : vector<8x1xi32>
    %235 = vector.shape_cast %234 : vector<8x1xi1> to vector<8x1xi1>
    %236 = vector.broadcast %235 : vector<8x1xi1> to vector<8x128xi1>
    %237 = arith.select %236, %230, %190 : vector<8x128xi1>, vector<8x128xf32>
    %c0_101 = arith.constant 0 : index
    %c0_102 = arith.constant 0 : index
    %238 = vector.load %arg8[%c0_101, %c0_102] : memref<8x128xf32, #tpu.memory_space<vmem>>, vector<8x128xf32>
    tpu.vector_store %arg8[%c0_101, %c0_102], %237 {strides = array<i32>} : memref<8x128xf32, #tpu.memory_space<vmem>>, vector<8x128xf32>,
    %239 = vector.shape_cast %234 : vector<8x1xi1> to vector<8x1xi1>
    %240 = vector.broadcast %239 : vector<8x1xi1> to vector<8x128xi1>
    %241 = arith.select %240, %228, %191 : vector<8x128xi1>, vector<8x128xf32>
    %c0_103 = arith.constant 0 : index
    %c0_104 = arith.constant 0 : index
    %242 = vector.load %arg9[%c0_103, %c0_104] : memref<8x128xf32, #tpu.memory_space<vmem>>, vector<8x128xf32>
    tpu.vector_store %arg9[%c0_103, %c0_104], %241 {strides = array<i32>} : memref<8x128xf32, #tpu.memory_space<vmem>>, vector<8x128xf32>,
    %cst_105 = arith.constant 0.000000e+00 : f32
    %243 = vector.shape_cast %234 : vector<8x1xi1> to vector<8x1xi1>
    %244 = vector.broadcast %243 : vector<8x1xi1> to vector<8x128xi1>
    %245 = vector.broadcast %cst_105 : f32 to vector<8x128xf32>
    %246 = arith.select %244, %230, %245 : vector<8x128xi1>, vector<8x128xf32>
    %247 = arith.truncf %246 : vector<8x128xf32> to vector<8x128xbf16>
    %248 = arith.index_cast %c3_i32 : i32 to index
    %c0_106 = arith.constant 0 : index
    %c0_107 = arith.constant 0 : index
    %249 = vector.load %arg7[%248, %c0_106, %c0_107] : memref<8x8x128xbf16, #tpu.memory_space<vmem>>, vector<1x8x128xbf16>
    %250 = vector.shape_cast %249 : vector<1x8x128xbf16> to vector<8x128xbf16>
    %251 = vector.shape_cast %247 : vector<8x128xbf16> to vector<1x8x128xbf16>
    tpu.vector_store %arg7[%248, %c0_106, %c0_107], %251 {strides = array<i32>} : memref<8x8x128xbf16, #tpu.memory_space<vmem>>, vector<1x8x128xbf16>,
    %c4_i32 = arith.constant 4 : i32
    %c0_108 = arith.constant 0 : index
    %c0_109 = arith.constant 0 : index
    %252 = vector.load %arg8[%c0_108, %c0_109] : memref<8x128xf32, #tpu.memory_space<vmem>>, vector<8x128xf32>
    %c0_110 = arith.constant 0 : index
    %c0_111 = arith.constant 0 : index
    %253 = vector.load %arg9[%c0_110, %c0_111] : memref<8x128xf32, #tpu.memory_space<vmem>>, vector<8x128xf32>
    %254 = arith.index_cast %c4_i32 : i32 to index
    %c0_112 = arith.constant 0 : index
    %c0_113 = arith.constant 0 : index
    %255 = vector.load %arg2[%254, %c0_112, %c0_113] : memref<8x8x512xbf16, #tpu.memory_space<vmem>>, vector<1x8x512xbf16>
    %256 = vector.shape_cast %255 : vector<1x8x512xbf16> to vector<8x512xbf16>
    %257 = arith.extf %256 : vector<8x512xbf16> to vector<8x512xf32>
    %258 = arith.truncf %252 : vector<8x128xf32> to vector<8x128xbf16>
    %c0_114 = arith.constant 0 : index
    %c0_115 = arith.constant 0 : index
    %259 = vector.load %arg3[%c0_114, %c0_115] : memref<128x512xbf16, #tpu.memory_space<vmem>>, vector<128x512xbf16>
    %cst_116 = arith.constant dense<0.000000e+00> : vector<8x512xf32>
    %260 = tpu.matmul %258, %259, %cst_116 {dimension_numbers = #tpu.dot_dimension_numbers<[1], [0], [0], [1], [0, 0, 1, 1], [], []>} : vector<8x128xbf16>, vector<128x512xbf16>, vector<8x512xf32> -> vector<8x512xf32>
    %261 = arith.addf %257, %260 : vector<8x512xf32>
    %262 = vector.extract_strided_slice %261 {offsets = [0, 0], sizes = [8, 128], strides = [1, 1]} : vector<8x512xf32> to vector<8x128xf32>
    %cst_117 = arith.constant 5.000000e-01 : f32
    %263 = vector.broadcast %cst_117 : f32 to vector<8x128xf32>
    %264 = arith.mulf %263, %262 : vector<8x128xf32>
    %265 = math.tanh %264 : vector<8x128xf32>
    %cst_118 = arith.constant 5.000000e-01 : f32
    %266 = vector.broadcast %cst_118 : f32 to vector<8x128xf32>
    %267 = arith.mulf %266, %265 : vector<8x128xf32>
    %cst_119 = arith.constant 5.000000e-01 : f32
    %268 = vector.broadcast %cst_119 : f32 to vector<8x128xf32>
    %269 = arith.addf %267, %268 : vector<8x128xf32>
    %270 = vector.extract_strided_slice %261 {offsets = [0, 128], sizes = [8, 128], strides = [1, 1]} : vector<8x512xf32> to vector<8x128xf32>
    %cst_120 = arith.constant 5.000000e-01 : f32
    %271 = vector.broadcast %cst_120 : f32 to vector<8x128xf32>
    %272 = arith.mulf %271, %270 : vector<8x128xf32>
    %273 = math.tanh %272 : vector<8x128xf32>
    %cst_121 = arith.constant 5.000000e-01 : f32
    %274 = vector.broadcast %cst_121 : f32 to vector<8x128xf32>
    %275 = arith.mulf %274, %273 : vector<8x128xf32>
    %cst_122 = arith.constant 5.000000e-01 : f32
    %276 = vector.broadcast %cst_122 : f32 to vector<8x128xf32>
    %277 = arith.addf %275, %276 : vector<8x128xf32>
    %278 = vector.extract_strided_slice %261 {offsets = [0, 256], sizes = [8, 128], strides = [1, 1]} : vector<8x512xf32> to vector<8x128xf32>
    %279 = math.tanh %278 : vector<8x128xf32>
    %280 = vector.extract_strided_slice %261 {offsets = [0, 384], sizes = [8, 128], strides = [1, 1]} : vector<8x512xf32> to vector<8x128xf32>
    %cst_123 = arith.constant 5.000000e-01 : f32
    %281 = vector.broadcast %cst_123 : f32 to vector<8x128xf32>
    %282 = arith.mulf %281, %280 : vector<8x128xf32>
    %283 = math.tanh %282 : vector<8x128xf32>
    %cst_124 = arith.constant 5.000000e-01 : f32
    %284 = vector.broadcast %cst_124 : f32 to vector<8x128xf32>
    %285 = arith.mulf %284, %283 : vector<8x128xf32>
    %cst_125 = arith.constant 5.000000e-01 : f32
    %286 = vector.broadcast %cst_125 : f32 to vector<8x128xf32>
    %287 = arith.addf %285, %286 : vector<8x128xf32>
    %288 = arith.mulf %277, %253 : vector<8x128xf32>
    %289 = arith.mulf %269, %279 : vector<8x128xf32>
    %290 = arith.addf %288, %289 : vector<8x128xf32>
    %291 = math.tanh %290 : vector<8x128xf32>
    %292 = arith.mulf %287, %291 : vector<8x128xf32>
    %293 = arith.addi %3, %c4_i32 : i32
    %c0_126 = arith.constant 0 : index
    %c0_127 = arith.constant 0 : index
    %294 = vector.load %arg6[%c0_126, %c0_127] : memref<8x1xi32, #tpu.memory_space<vmem>>, vector<8x1xi32>
    %295 = vector.broadcast %293 : i32 to vector<8x1xi32>
    %296 = arith.cmpi slt, %295, %294 : vector<8x1xi32>
    %297 = vector.shape_cast %296 : vector<8x1xi1> to vector<8x1xi1>
    %298 = vector.broadcast %297 : vector<8x1xi1> to vector<8x128xi1>
    %299 = arith.select %298, %292, %252 : vector<8x128xi1>, vector<8x128xf32>
    %c0_128 = arith.constant 0 : index
    %c0_129 = arith.constant 0 : index
    %300 = vector.load %arg8[%c0_128, %c0_129] : memref<8x128xf32, #tpu.memory_space<vmem>>, vector<8x128xf32>
    tpu.vector_store %arg8[%c0_128, %c0_129], %299 {strides = array<i32>} : memref<8x128xf32, #tpu.memory_space<vmem>>, vector<8x128xf32>,
    %301 = vector.shape_cast %296 : vector<8x1xi1> to vector<8x1xi1>
    %302 = vector.broadcast %301 : vector<8x1xi1> to vector<8x128xi1>
    %303 = arith.select %302, %290, %253 : vector<8x128xi1>, vector<8x128xf32>
    %c0_130 = arith.constant 0 : index
    %c0_131 = arith.constant 0 : index
    %304 = vector.load %arg9[%c0_130, %c0_131] : memref<8x128xf32, #tpu.memory_space<vmem>>, vector<8x128xf32>
    tpu.vector_store %arg9[%c0_130, %c0_131], %303 {strides = array<i32>} : memref<8x128xf32, #tpu.memory_space<vmem>>, vector<8x128xf32>,
    %cst_132 = arith.constant 0.000000e+00 : f32
    %305 = vector.shape_cast %296 : vector<8x1xi1> to vector<8x1xi1>
    %306 = vector.broadcast %305 : vector<8x1xi1> to vector<8x128xi1>
    %307 = vector.broadcast %cst_132 : f32 to vector<8x128xf32>
    %308 = arith.select %306, %292, %307 : vector<8x128xi1>, vector<8x128xf32>
    %309 = arith.truncf %308 : vector<8x128xf32> to vector<8x128xbf16>
    %310 = arith.index_cast %c4_i32 : i32 to index
    %c0_133 = arith.constant 0 : index
    %c0_134 = arith.constant 0 : index
    %311 = vector.load %arg7[%310, %c0_133, %c0_134] : memref<8x8x128xbf16, #tpu.memory_space<vmem>>, vector<1x8x128xbf16>
    %312 = vector.shape_cast %311 : vector<1x8x128xbf16> to vector<8x128xbf16>
    %313 = vector.shape_cast %309 : vector<8x128xbf16> to vector<1x8x128xbf16>
    tpu.vector_store %arg7[%310, %c0_133, %c0_134], %313 {strides = array<i32>} : memref<8x8x128xbf16, #tpu.memory_space<vmem>>, vector<1x8x128xbf16>,
    %c5_i32 = arith.constant 5 : i32
    %c0_135 = arith.constant 0 : index
    %c0_136 = arith.constant 0 : index
    %314 = vector.load %arg8[%c0_135, %c0_136] : memref<8x128xf32, #tpu.memory_space<vmem>>, vector<8x128xf32>
    %c0_137 = arith.constant 0 : index
    %c0_138 = arith.constant 0 : index
    %315 = vector.load %arg9[%c0_137, %c0_138] : memref<8x128xf32, #tpu.memory_space<vmem>>, vector<8x128xf32>
    %316 = arith.index_cast %c5_i32 : i32 to index
    %c0_139 = arith.constant 0 : index
    %c0_140 = arith.constant 0 : index
    %317 = vector.load %arg2[%316, %c0_139, %c0_140] : memref<8x8x512xbf16, #tpu.memory_space<vmem>>, vector<1x8x512xbf16>
    %318 = vector.shape_cast %317 : vector<1x8x512xbf16> to vector<8x512xbf16>
    %319 = arith.extf %318 : vector<8x512xbf16> to vector<8x512xf32>
    %320 = arith.truncf %314 : vector<8x128xf32> to vector<8x128xbf16>
    %c0_141 = arith.constant 0 : index
    %c0_142 = arith.constant 0 : index
    %321 = vector.load %arg3[%c0_141, %c0_142] : memref<128x512xbf16, #tpu.memory_space<vmem>>, vector<128x512xbf16>
    %cst_143 = arith.constant dense<0.000000e+00> : vector<8x512xf32>
    %322 = tpu.matmul %320, %321, %cst_143 {dimension_numbers = #tpu.dot_dimension_numbers<[1], [0], [0], [1], [0, 0, 1, 1], [], []>} : vector<8x128xbf16>, vector<128x512xbf16>, vector<8x512xf32> -> vector<8x512xf32>
    %323 = arith.addf %319, %322 : vector<8x512xf32>
    %324 = vector.extract_strided_slice %323 {offsets = [0, 0], sizes = [8, 128], strides = [1, 1]} : vector<8x512xf32> to vector<8x128xf32>
    %cst_144 = arith.constant 5.000000e-01 : f32
    %325 = vector.broadcast %cst_144 : f32 to vector<8x128xf32>
    %326 = arith.mulf %325, %324 : vector<8x128xf32>
    %327 = math.tanh %326 : vector<8x128xf32>
    %cst_145 = arith.constant 5.000000e-01 : f32
    %328 = vector.broadcast %cst_145 : f32 to vector<8x128xf32>
    %329 = arith.mulf %328, %327 : vector<8x128xf32>
    %cst_146 = arith.constant 5.000000e-01 : f32
    %330 = vector.broadcast %cst_146 : f32 to vector<8x128xf32>
    %331 = arith.addf %329, %330 : vector<8x128xf32>
    %332 = vector.extract_strided_slice %323 {offsets = [0, 128], sizes = [8, 128], strides = [1, 1]} : vector<8x512xf32> to vector<8x128xf32>
    %cst_147 = arith.constant 5.000000e-01 : f32
    %333 = vector.broadcast %cst_147 : f32 to vector<8x128xf32>
    %334 = arith.mulf %333, %332 : vector<8x128xf32>
    %335 = math.tanh %334 : vector<8x128xf32>
    %cst_148 = arith.constant 5.000000e-01 : f32
    %336 = vector.broadcast %cst_148 : f32 to vector<8x128xf32>
    %337 = arith.mulf %336, %335 : vector<8x128xf32>
    %cst_149 = arith.constant 5.000000e-01 : f32
    %338 = vector.broadcast %cst_149 : f32 to vector<8x128xf32>
    %339 = arith.addf %337, %338 : vector<8x128xf32>
    %340 = vector.extract_strided_slice %323 {offsets = [0, 256], sizes = [8, 128], strides = [1, 1]} : vector<8x512xf32> to vector<8x128xf32>
    %341 = math.tanh %340 : vector<8x128xf32>
    %342 = vector.extract_strided_slice %323 {offsets = [0, 384], sizes = [8, 128], strides = [1, 1]} : vector<8x512xf32> to vector<8x128xf32>
    %cst_150 = arith.constant 5.000000e-01 : f32
    %343 = vector.broadcast %cst_150 : f32 to vector<8x128xf32>
    %344 = arith.mulf %343, %342 : vector<8x128xf32>
    %345 = math.tanh %344 : vector<8x128xf32>
    %cst_151 = arith.constant 5.000000e-01 : f32
    %346 = vector.broadcast %cst_151 : f32 to vector<8x128xf32>
    %347 = arith.mulf %346, %345 : vector<8x128xf32>
    %cst_152 = arith.constant 5.000000e-01 : f32
    %348 = vector.broadcast %cst_152 : f32 to vector<8x128xf32>
    %349 = arith.addf %347, %348 : vector<8x128xf32>
    %350 = arith.mulf %339, %315 : vector<8x128xf32>
    %351 = arith.mulf %331, %341 : vector<8x128xf32>
    %352 = arith.addf %350, %351 : vector<8x128xf32>
    %353 = math.tanh %352 : vector<8x128xf32>
    %354 = arith.mulf %349, %353 : vector<8x128xf32>
    %355 = arith.addi %3, %c5_i32 : i32
    %c0_153 = arith.constant 0 : index
    %c0_154 = arith.constant 0 : index
    %356 = vector.load %arg6[%c0_153, %c0_154] : memref<8x1xi32, #tpu.memory_space<vmem>>, vector<8x1xi32>
    %357 = vector.broadcast %355 : i32 to vector<8x1xi32>
    %358 = arith.cmpi slt, %357, %356 : vector<8x1xi32>
    %359 = vector.shape_cast %358 : vector<8x1xi1> to vector<8x1xi1>
    %360 = vector.broadcast %359 : vector<8x1xi1> to vector<8x128xi1>
    %361 = arith.select %360, %354, %314 : vector<8x128xi1>, vector<8x128xf32>
    %c0_155 = arith.constant 0 : index
    %c0_156 = arith.constant 0 : index
    %362 = vector.load %arg8[%c0_155, %c0_156] : memref<8x128xf32, #tpu.memory_space<vmem>>, vector<8x128xf32>
    tpu.vector_store %arg8[%c0_155, %c0_156], %361 {strides = array<i32>} : memref<8x128xf32, #tpu.memory_space<vmem>>, vector<8x128xf32>,
    %363 = vector.shape_cast %358 : vector<8x1xi1> to vector<8x1xi1>
    %364 = vector.broadcast %363 : vector<8x1xi1> to vector<8x128xi1>
    %365 = arith.select %364, %352, %315 : vector<8x128xi1>, vector<8x128xf32>
    %c0_157 = arith.constant 0 : index
    %c0_158 = arith.constant 0 : index
    %366 = vector.load %arg9[%c0_157, %c0_158] : memref<8x128xf32, #tpu.memory_space<vmem>>, vector<8x128xf32>
    tpu.vector_store %arg9[%c0_157, %c0_158], %365 {strides = array<i32>} : memref<8x128xf32, #tpu.memory_space<vmem>>, vector<8x128xf32>,
    %cst_159 = arith.constant 0.000000e+00 : f32
    %367 = vector.shape_cast %358 : vector<8x1xi1> to vector<8x1xi1>
    %368 = vector.broadcast %367 : vector<8x1xi1> to vector<8x128xi1>
    %369 = vector.broadcast %cst_159 : f32 to vector<8x128xf32>
    %370 = arith.select %368, %354, %369 : vector<8x128xi1>, vector<8x128xf32>
    %371 = arith.truncf %370 : vector<8x128xf32> to vector<8x128xbf16>
    %372 = arith.index_cast %c5_i32 : i32 to index
    %c0_160 = arith.constant 0 : index
    %c0_161 = arith.constant 0 : index
    %373 = vector.load %arg7[%372, %c0_160, %c0_161] : memref<8x8x128xbf16, #tpu.memory_space<vmem>>, vector<1x8x128xbf16>
    %374 = vector.shape_cast %373 : vector<1x8x128xbf16> to vector<8x128xbf16>
    %375 = vector.shape_cast %371 : vector<8x128xbf16> to vector<1x8x128xbf16>
    tpu.vector_store %arg7[%372, %c0_160, %c0_161], %375 {strides = array<i32>} : memref<8x8x128xbf16, #tpu.memory_space<vmem>>, vector<1x8x128xbf16>,
    %c6_i32 = arith.constant 6 : i32
    %c0_162 = arith.constant 0 : index
    %c0_163 = arith.constant 0 : index
    %376 = vector.load %arg8[%c0_162, %c0_163] : memref<8x128xf32, #tpu.memory_space<vmem>>, vector<8x128xf32>
    %c0_164 = arith.constant 0 : index
    %c0_165 = arith.constant 0 : index
    %377 = vector.load %arg9[%c0_164, %c0_165] : memref<8x128xf32, #tpu.memory_space<vmem>>, vector<8x128xf32>
    %378 = arith.index_cast %c6_i32 : i32 to index
    %c0_166 = arith.constant 0 : index
    %c0_167 = arith.constant 0 : index
    %379 = vector.load %arg2[%378, %c0_166, %c0_167] : memref<8x8x512xbf16, #tpu.memory_space<vmem>>, vector<1x8x512xbf16>
    %380 = vector.shape_cast %379 : vector<1x8x512xbf16> to vector<8x512xbf16>
    %381 = arith.extf %380 : vector<8x512xbf16> to vector<8x512xf32>
    %382 = arith.truncf %376 : vector<8x128xf32> to vector<8x128xbf16>
    %c0_168 = arith.constant 0 : index
    %c0_169 = arith.constant 0 : index
    %383 = vector.load %arg3[%c0_168, %c0_169] : memref<128x512xbf16, #tpu.memory_space<vmem>>, vector<128x512xbf16>
    %cst_170 = arith.constant dense<0.000000e+00> : vector<8x512xf32>
    %384 = tpu.matmul %382, %383, %cst_170 {dimension_numbers = #tpu.dot_dimension_numbers<[1], [0], [0], [1], [0, 0, 1, 1], [], []>} : vector<8x128xbf16>, vector<128x512xbf16>, vector<8x512xf32> -> vector<8x512xf32>
    %385 = arith.addf %381, %384 : vector<8x512xf32>
    %386 = vector.extract_strided_slice %385 {offsets = [0, 0], sizes = [8, 128], strides = [1, 1]} : vector<8x512xf32> to vector<8x128xf32>
    %cst_171 = arith.constant 5.000000e-01 : f32
    %387 = vector.broadcast %cst_171 : f32 to vector<8x128xf32>
    %388 = arith.mulf %387, %386 : vector<8x128xf32>
    %389 = math.tanh %388 : vector<8x128xf32>
    %cst_172 = arith.constant 5.000000e-01 : f32
    %390 = vector.broadcast %cst_172 : f32 to vector<8x128xf32>
    %391 = arith.mulf %390, %389 : vector<8x128xf32>
    %cst_173 = arith.constant 5.000000e-01 : f32
    %392 = vector.broadcast %cst_173 : f32 to vector<8x128xf32>
    %393 = arith.addf %391, %392 : vector<8x128xf32>
    %394 = vector.extract_strided_slice %385 {offsets = [0, 128], sizes = [8, 128], strides = [1, 1]} : vector<8x512xf32> to vector<8x128xf32>
    %cst_174 = arith.constant 5.000000e-01 : f32
    %395 = vector.broadcast %cst_174 : f32 to vector<8x128xf32>
    %396 = arith.mulf %395, %394 : vector<8x128xf32>
    %397 = math.tanh %396 : vector<8x128xf32>
    %cst_175 = arith.constant 5.000000e-01 : f32
    %398 = vector.broadcast %cst_175 : f32 to vector<8x128xf32>
    %399 = arith.mulf %398, %397 : vector<8x128xf32>
    %cst_176 = arith.constant 5.000000e-01 : f32
    %400 = vector.broadcast %cst_176 : f32 to vector<8x128xf32>
    %401 = arith.addf %399, %400 : vector<8x128xf32>
    %402 = vector.extract_strided_slice %385 {offsets = [0, 256], sizes = [8, 128], strides = [1, 1]} : vector<8x512xf32> to vector<8x128xf32>
    %403 = math.tanh %402 : vector<8x128xf32>
    %404 = vector.extract_strided_slice %385 {offsets = [0, 384], sizes = [8, 128], strides = [1, 1]} : vector<8x512xf32> to vector<8x128xf32>
    %cst_177 = arith.constant 5.000000e-01 : f32
    %405 = vector.broadcast %cst_177 : f32 to vector<8x128xf32>
    %406 = arith.mulf %405, %404 : vector<8x128xf32>
    %407 = math.tanh %406 : vector<8x128xf32>
    %cst_178 = arith.constant 5.000000e-01 : f32
    %408 = vector.broadcast %cst_178 : f32 to vector<8x128xf32>
    %409 = arith.mulf %408, %407 : vector<8x128xf32>
    %cst_179 = arith.constant 5.000000e-01 : f32
    %410 = vector.broadcast %cst_179 : f32 to vector<8x128xf32>
    %411 = arith.addf %409, %410 : vector<8x128xf32>
    %412 = arith.mulf %401, %377 : vector<8x128xf32>
    %413 = arith.mulf %393, %403 : vector<8x128xf32>
    %414 = arith.addf %412, %413 : vector<8x128xf32>
    %415 = math.tanh %414 : vector<8x128xf32>
    %416 = arith.mulf %411, %415 : vector<8x128xf32>
    %417 = arith.addi %3, %c6_i32 : i32
    %c0_180 = arith.constant 0 : index
    %c0_181 = arith.constant 0 : index
    %418 = vector.load %arg6[%c0_180, %c0_181] : memref<8x1xi32, #tpu.memory_space<vmem>>, vector<8x1xi32>
    %419 = vector.broadcast %417 : i32 to vector<8x1xi32>
    %420 = arith.cmpi slt, %419, %418 : vector<8x1xi32>
    %421 = vector.shape_cast %420 : vector<8x1xi1> to vector<8x1xi1>
    %422 = vector.broadcast %421 : vector<8x1xi1> to vector<8x128xi1>
    %423 = arith.select %422, %416, %376 : vector<8x128xi1>, vector<8x128xf32>
    %c0_182 = arith.constant 0 : index
    %c0_183 = arith.constant 0 : index
    %424 = vector.load %arg8[%c0_182, %c0_183] : memref<8x128xf32, #tpu.memory_space<vmem>>, vector<8x128xf32>
    tpu.vector_store %arg8[%c0_182, %c0_183], %423 {strides = array<i32>} : memref<8x128xf32, #tpu.memory_space<vmem>>, vector<8x128xf32>,
    %425 = vector.shape_cast %420 : vector<8x1xi1> to vector<8x1xi1>
    %426 = vector.broadcast %425 : vector<8x1xi1> to vector<8x128xi1>
    %427 = arith.select %426, %414, %377 : vector<8x128xi1>, vector<8x128xf32>
    %c0_184 = arith.constant 0 : index
    %c0_185 = arith.constant 0 : index
    %428 = vector.load %arg9[%c0_184, %c0_185] : memref<8x128xf32, #tpu.memory_space<vmem>>, vector<8x128xf32>
    tpu.vector_store %arg9[%c0_184, %c0_185], %427 {strides = array<i32>} : memref<8x128xf32, #tpu.memory_space<vmem>>, vector<8x128xf32>,
    %cst_186 = arith.constant 0.000000e+00 : f32
    %429 = vector.shape_cast %420 : vector<8x1xi1> to vector<8x1xi1>
    %430 = vector.broadcast %429 : vector<8x1xi1> to vector<8x128xi1>
    %431 = vector.broadcast %cst_186 : f32 to vector<8x128xf32>
    %432 = arith.select %430, %416, %431 : vector<8x128xi1>, vector<8x128xf32>
    %433 = arith.truncf %432 : vector<8x128xf32> to vector<8x128xbf16>
    %434 = arith.index_cast %c6_i32 : i32 to index
    %c0_187 = arith.constant 0 : index
    %c0_188 = arith.constant 0 : index
    %435 = vector.load %arg7[%434, %c0_187, %c0_188] : memref<8x8x128xbf16, #tpu.memory_space<vmem>>, vector<1x8x128xbf16>
    %436 = vector.shape_cast %435 : vector<1x8x128xbf16> to vector<8x128xbf16>
    %437 = vector.shape_cast %433 : vector<8x128xbf16> to vector<1x8x128xbf16>
    tpu.vector_store %arg7[%434, %c0_187, %c0_188], %437 {strides = array<i32>} : memref<8x8x128xbf16, #tpu.memory_space<vmem>>, vector<1x8x128xbf16>,
    %c7_i32 = arith.constant 7 : i32
    %c0_189 = arith.constant 0 : index
    %c0_190 = arith.constant 0 : index
    %438 = vector.load %arg8[%c0_189, %c0_190] : memref<8x128xf32, #tpu.memory_space<vmem>>, vector<8x128xf32>
    %c0_191 = arith.constant 0 : index
    %c0_192 = arith.constant 0 : index
    %439 = vector.load %arg9[%c0_191, %c0_192] : memref<8x128xf32, #tpu.memory_space<vmem>>, vector<8x128xf32>
    %440 = arith.index_cast %c7_i32 : i32 to index
    %c0_193 = arith.constant 0 : index
    %c0_194 = arith.constant 0 : index
    %441 = vector.load %arg2[%440, %c0_193, %c0_194] : memref<8x8x512xbf16, #tpu.memory_space<vmem>>, vector<1x8x512xbf16>
    %442 = vector.shape_cast %441 : vector<1x8x512xbf16> to vector<8x512xbf16>
    %443 = arith.extf %442 : vector<8x512xbf16> to vector<8x512xf32>
    %444 = arith.truncf %438 : vector<8x128xf32> to vector<8x128xbf16>
    %c0_195 = arith.constant 0 : index
    %c0_196 = arith.constant 0 : index
    %445 = vector.load %arg3[%c0_195, %c0_196] : memref<128x512xbf16, #tpu.memory_space<vmem>>, vector<128x512xbf16>
    %cst_197 = arith.constant dense<0.000000e+00> : vector<8x512xf32>
    %446 = tpu.matmul %444, %445, %cst_197 {dimension_numbers = #tpu.dot_dimension_numbers<[1], [0], [0], [1], [0, 0, 1, 1], [], []>} : vector<8x128xbf16>, vector<128x512xbf16>, vector<8x512xf32> -> vector<8x512xf32>
    %447 = arith.addf %443, %446 : vector<8x512xf32>
    %448 = vector.extract_strided_slice %447 {offsets = [0, 0], sizes = [8, 128], strides = [1, 1]} : vector<8x512xf32> to vector<8x128xf32>
    %cst_198 = arith.constant 5.000000e-01 : f32
    %449 = vector.broadcast %cst_198 : f32 to vector<8x128xf32>
    %450 = arith.mulf %449, %448 : vector<8x128xf32>
    %451 = math.tanh %450 : vector<8x128xf32>
    %cst_199 = arith.constant 5.000000e-01 : f32
    %452 = vector.broadcast %cst_199 : f32 to vector<8x128xf32>
    %453 = arith.mulf %452, %451 : vector<8x128xf32>
    %cst_200 = arith.constant 5.000000e-01 : f32
    %454 = vector.broadcast %cst_200 : f32 to vector<8x128xf32>
    %455 = arith.addf %453, %454 : vector<8x128xf32>
    %456 = vector.extract_strided_slice %447 {offsets = [0, 128], sizes = [8, 128], strides = [1, 1]} : vector<8x512xf32> to vector<8x128xf32>
    %cst_201 = arith.constant 5.000000e-01 : f32
    %457 = vector.broadcast %cst_201 : f32 to vector<8x128xf32>
    %458 = arith.mulf %457, %456 : vector<8x128xf32>
    %459 = math.tanh %458 : vector<8x128xf32>
    %cst_202 = arith.constant 5.000000e-01 : f32
    %460 = vector.broadcast %cst_202 : f32 to vector<8x128xf32>
    %461 = arith.mulf %460, %459 : vector<8x128xf32>
    %cst_203 = arith.constant 5.000000e-01 : f32
    %462 = vector.broadcast %cst_203 : f32 to vector<8x128xf32>
    %463 = arith.addf %461, %462 : vector<8x128xf32>
    %464 = vector.extract_strided_slice %447 {offsets = [0, 256], sizes = [8, 128], strides = [1, 1]} : vector<8x512xf32> to vector<8x128xf32>
    %465 = math.tanh %464 : vector<8x128xf32>
    %466 = vector.extract_strided_slice %447 {offsets = [0, 384], sizes = [8, 128], strides = [1, 1]} : vector<8x512xf32> to vector<8x128xf32>
    %cst_204 = arith.constant 5.000000e-01 : f32
    %467 = vector.broadcast %cst_204 : f32 to vector<8x128xf32>
    %468 = arith.mulf %467, %466 : vector<8x128xf32>
    %469 = math.tanh %468 : vector<8x128xf32>
    %cst_205 = arith.constant 5.000000e-01 : f32
    %470 = vector.broadcast %cst_205 : f32 to vector<8x128xf32>
    %471 = arith.mulf %470, %469 : vector<8x128xf32>
    %cst_206 = arith.constant 5.000000e-01 : f32
    %472 = vector.broadcast %cst_206 : f32 to vector<8x128xf32>
    %473 = arith.addf %471, %472 : vector<8x128xf32>
    %474 = arith.mulf %463, %439 : vector<8x128xf32>
    %475 = arith.mulf %455, %465 : vector<8x128xf32>
    %476 = arith.addf %474, %475 : vector<8x128xf32>
    %477 = math.tanh %476 : vector<8x128xf32>
    %478 = arith.mulf %473, %477 : vector<8x128xf32>
    %479 = arith.addi %3, %c7_i32 : i32
    %c0_207 = arith.constant 0 : index
    %c0_208 = arith.constant 0 : index
    %480 = vector.load %arg6[%c0_207, %c0_208] : memref<8x1xi32, #tpu.memory_space<vmem>>, vector<8x1xi32>
    %481 = vector.broadcast %479 : i32 to vector<8x1xi32>
    %482 = arith.cmpi slt, %481, %480 : vector<8x1xi32>
    %483 = vector.shape_cast %482 : vector<8x1xi1> to vector<8x1xi1>
    %484 = vector.broadcast %483 : vector<8x1xi1> to vector<8x128xi1>
    %485 = arith.select %484, %478, %438 : vector<8x128xi1>, vector<8x128xf32>
    %c0_209 = arith.constant 0 : index
    %c0_210 = arith.constant 0 : index
    %486 = vector.load %arg8[%c0_209, %c0_210] : memref<8x128xf32, #tpu.memory_space<vmem>>, vector<8x128xf32>
    tpu.vector_store %arg8[%c0_209, %c0_210], %485 {strides = array<i32>} : memref<8x128xf32, #tpu.memory_space<vmem>>, vector<8x128xf32>,
    %487 = vector.shape_cast %482 : vector<8x1xi1> to vector<8x1xi1>
    %488 = vector.broadcast %487 : vector<8x1xi1> to vector<8x128xi1>
    %489 = arith.select %488, %476, %439 : vector<8x128xi1>, vector<8x128xf32>
    %c0_211 = arith.constant 0 : index
    %c0_212 = arith.constant 0 : index
    %490 = vector.load %arg9[%c0_211, %c0_212] : memref<8x128xf32, #tpu.memory_space<vmem>>, vector<8x128xf32>
    tpu.vector_store %arg9[%c0_211, %c0_212], %489 {strides = array<i32>} : memref<8x128xf32, #tpu.memory_space<vmem>>, vector<8x128xf32>,
    %cst_213 = arith.constant 0.000000e+00 : f32
    %491 = vector.shape_cast %482 : vector<8x1xi1> to vector<8x1xi1>
    %492 = vector.broadcast %491 : vector<8x1xi1> to vector<8x128xi1>
    %493 = vector.broadcast %cst_213 : f32 to vector<8x128xf32>
    %494 = arith.select %492, %478, %493 : vector<8x128xi1>, vector<8x128xf32>
    %495 = arith.truncf %494 : vector<8x128xf32> to vector<8x128xbf16>
    %496 = arith.index_cast %c7_i32 : i32 to index
    %c0_214 = arith.constant 0 : index
    %c0_215 = arith.constant 0 : index
    %497 = vector.load %arg7[%496, %c0_214, %c0_215] : memref<8x8x128xbf16, #tpu.memory_space<vmem>>, vector<1x8x128xbf16>
    %498 = vector.shape_cast %497 : vector<1x8x128xbf16> to vector<8x128xbf16>
    %499 = vector.shape_cast %495 : vector<8x128xbf16> to vector<1x8x128xbf16>
    tpu.vector_store %arg7[%496, %c0_214, %c0_215], %499 {strides = array<i32>} : memref<8x8x128xbf16, #tpu.memory_space<vmem>>, vector<1x8x128xbf16>,
    %c8_i32_216 = arith.constant 8 : i32
    return
  }
  func.func @transform_0(%arg0: i32, %arg1: i32) -> (i32, i32, i32) {
    %c0_i32 = arith.constant 0 : i32
    %c0_i32_0 = arith.constant 0 : i32
    return %arg1, %arg0, %c0_i32 : i32, i32, i32
  }
  func.func @transform_1(%arg0: i32, %arg1: i32) -> (i32, i32) {
    %c0_i32 = arith.constant 0 : i32
    %c0_i32_0 = arith.constant 0 : i32
    %c0_i32_1 = arith.constant 0 : i32
    return %c0_i32, %c0_i32_0 : i32, i32
  }
  func.func @transform_2(%arg0: i32, %arg1: i32) -> (i32, i32) {
    %c0_i32 = arith.constant 0 : i32
    %c0_i32_0 = arith.constant 0 : i32
    return %arg0, %c0_i32 : i32, i32
  }
  func.func @transform_3(%arg0: i32, %arg1: i32) -> (i32, i32) {
    %c0_i32 = arith.constant 0 : i32
    %c0_i32_0 = arith.constant 0 : i32
    return %arg0, %c0_i32 : i32, i32
  }
  func.func @transform_4(%arg0: i32, %arg1: i32) -> (i32, i32) {
    %c0_i32 = arith.constant 0 : i32
    %c0_i32_0 = arith.constant 0 : i32
    return %arg0, %c0_i32 : i32, i32
  }
  func.func @transform_5(%arg0: i32, %arg1: i32) -> (i32, i32, i32) {
    %c0_i32 = arith.constant 0 : i32
    %c0_i32_0 = arith.constant 0 : i32
    return %arg1, %arg0, %c0_i32 : i32, i32, i32
  }
  func.func @transform_6(%arg0: i32, %arg1: i32) -> (i32, i32) {
    %c0_i32 = arith.constant 0 : i32
    %c0_i32_0 = arith.constant 0 : i32
    return %arg0, %c0_i32 : i32, i32
  }
  func.func @transform_7(%arg0: i32, %arg1: i32) -> (i32, i32) {
    %c0_i32 = arith.constant 0 : i32
    %c0_i32_0 = arith.constant 0 : i32
    return %arg0, %c0_i32 : i32, i32
  }
}

</mosaic_0001>

<bundles_post_ra>
// kernel: rnn_model_forward.9
= control target key start
LH: loop header
LB: loop body
LE: loop exit
PB: predicated region body
PF: predicated region fallthrough
CT: control target
= control target key end

     0   :  { %s212_s1 = inlined_call_operand.vmem [shape: bf16[128,128], index: 1, kind: input, shape index: {}]   ;;  %s213_s2 = inlined_call_operand.vmem [shape: f32[1,128], index: 2, kind: input, shape index: {}]   ;;  %s214_s0 = inlined_call_operand.vmem [shape: bf16[16,128], index: 0, kind: input, shape index: {}]   ;;  %s215_s3 = inlined_call_operand.vmem [shape: f32[16,128], index: 3, kind: output, shape index: {}]  }
   0x1   :  { %v154_v0 = vld [vmem:[%s212_s1 + $0x38] sm:$0xff]  ;;  %v153_v1 = vld [vmem:[%s212_s1 + $0x30] sm:$0xff]  ;;  %v152_v2 = vld [vmem:[%s212_s1 + $0x28] sm:$0xff] }
   0x2   :  { %90 = vmatpush.bf16.msra.mxu0 %v154_v0  ;;  %v151_v3 = vld [vmem:[%s212_s1 + $0x20] sm:$0xff]  ;;  %v150_v4 = vld [vmem:[%s212_s1 + $0x18] sm:$0xff]  ;;  %v149_v5 = vld [vmem:[%s212_s1 + $0x10] sm:$0xff] }
   0x3   :  { %v148_v6 = vld [vmem:[%s212_s1 + $0x8] sm:$0xff]  ;;  %v147_v7 = vld [vmem:[%s212_s1] sm:$0xff] }
   0x4   :  { %v146_v8 = vld [vmem:[%s214_s0] sm:$0xff] }
   0x5   :  { %v155_v9 = vld [vmem:[%s213_s2] ss:$0 sm:$0xff] }
   0x6   :  { %91 = vmatpush.bf16.msra.mxu0 %v153_v1 }
   0xa   :  { %92 = vmatpush.bf16.msra.mxu0 %v152_v2 }
   0xe   :  { %93 = vmatpush.bf16.msra.mxu0 %v151_v3 }
  0x12   :  { %94 = vmatpush.bf16.msra.mxu0 %v150_v4 }
  0x16   :  { %95 = vmatpush.bf16.msra.mxu0 %v149_v5 }
  0x1a   :  { %96 = vmatpush.bf16.msra.mxu0 %v148_v6 }
  0x1e   :  { %97 = vmatpush.bf16.msra.mxu0 %v147_v7 }
  0x21   :  { %98 = vmatmul.bf16.vlgmr.msra.gmra.mxu0 %v146_v8 }
  0x9e   :  { %v99_v10 = vpop.f32.mrf.mxu0 }
  0x9f   :  { %v100_v11 = vadd.f32 %v155_v9, %v99_v10 }
  0xa1   :  { %104 = vst [vmem:[%s215_s3] sm:$0xff] %v100_v11 }
  0xa6   :  { %v101_v12 = vpop.f32.mrf.mxu0 }
  0xa7   :  { %v102_v13 = vadd.f32 %v155_v9, %v101_v12 }
  0xa9   :  { %105 = vst [vmem:[%s215_s3 + $0x8] sm:$0xff] %v102_v13 }

// kernel: rnn_model_forward.5
= control target key start
LH: loop header
LB: loop body
LE: loop exit
PB: predicated region body
PF: predicated region fallthrough
CT: control target
= control target key end

     0   :  { %8 = vsyncpa [#allocation3], 0  ;;  %s626_s15 = smov [#allocation2]   ;;  %s627_s17 = smov 256   ;;  %s755_s0 = inlined_call_operand.vmem [shape: bf16[64,128], index: 0, kind: input, shape index: {}]   ;;  %s756_s1 = inlined_call_operand.hbm [shape: bf16[128,512], index: 1, kind: input, shape index: {}]   ;;  %s757_s2 = inlined_call_operand.vmem [shape: f32[1,512], index: 2, kind: input, shape index: {}]   ;;  %s758_s3 = inlined_call_operand.vmem [shape: bf16[64,512], index: 3, kind: output, shape index: {}]  }
   0x1   :  { %s15_s14 = sshll.u32 %s756_s1, 4  ;;  %s17_s16 = sshll.u32 %s626_s15, 4  ;;  %s16_s14 = int_to_ptr.hbm [resolvable:$true] %s15_s14  ;;  %s18_s16 = int_to_ptr.vmem [resolvable:$true] %s17_s16 }
   0x2   :  { %s628_s18 = smov 16  }
   0x3   :  { %23 = dma.hbm_to_vmem [thread:$0]  %s16_s14, 4096, %s18_s16, [#allocation3], %s627_s17, %s627_s17, %s628_s18  }
   0x4   :  { %624 = dma.done.wait [#allocation3], 4096  }
   0x5   :  { %625 = vsyncadd [#allocation3], 4294963200  ;;  %v547_v0 = vld [vmem:[#allocation2 + $0xe0] sm:$0xf]  ;;  %v595_v1 = vld [vmem:[#allocation2 + $0xec] sm:$0xf0] }
   0x6   :  { %v593_v2 = vld [vmem:[#allocation2 + $0xe4] sm:$0xf]  ;;  %v548_v3 = vor.u32 %v595_v1, %v547_v0  ;;  %v549_v4 = vld [vmem:[#allocation2 + $0xf0] sm:$0xf0]  ;;  %v555_v5 = vld [vmem:[#allocation2 + $0xe8] sm:$0xf] }
   0x7   :  { %v596_v6 = vld [vmem:[#allocation2 + $0xf4] sm:$0xf0]  ;;  %v552_v7 = vor.u32 %v593_v2, %v549_v4  ;;  %v594_v9 = vld [vmem:[#allocation2 + $0xec] sm:$0xf]  ;;  %v557_v10 = vld [vmem:[#allocation2 + $0xf8] sm:$0xf0] }
   0x8   :  { %v556_v8 = vor.u32 %v596_v6, %v555_v5  ;;  %v531_v11 = vld [vmem:[#allocation2 + $0xc0] sm:$0xf]  ;;  %264 = vmatpush.bf16.msra.mxu0 %v548_v3  ;;  %v560_v12 = vor.u32 %v594_v9, %v557_v10  ;;  %v591_v13 = vld [vmem:[#allocation2 + $0xcc] sm:$0xf0]  ;;  %v589_v14 = vld [vmem:[#allocation2 + $0xc4] sm:$0xf] }
   0x9   :  { %v533_v15 = vld [vmem:[#allocation2 + $0xd0] sm:$0xf0]  ;;  %293 = vmatpush.bf16.msra.mxu1 %v552_v7  ;;  %v532_v16 = vor.u32 %v591_v13, %v531_v11  ;;  %v539_v18 = vld [vmem:[#allocation2 + $0xc8] sm:$0xf]  ;;  %v592_v19 = vld [vmem:[#allocation2 + $0xd4] sm:$0xf0] }
   0xa   :  { %322 = vmatpush.bf16.msra.mxu2 %v556_v8  ;;  %v536_v17 = vor.u32 %v589_v14, %v533_v15  ;;  %v590_v20 = vld [vmem:[#allocation2 + $0xcc] sm:$0xf]  ;;  %351 = vmatpush.bf16.msra.mxu3 %v560_v12  ;;  %v540_v21 = vor.u32 %v592_v19, %v539_v18  ;;  %v541_v22 = vld [vmem:[#allocation2 + $0xd8] sm:$0xf0]  ;;  %v515_v23 = vld [vmem:[#allocation2 + $0xa0] sm:$0xf] }
   0xb   :  { %v587_v24 = vld [vmem:[#allocation2 + $0xac] sm:$0xf0]  ;;  %v544_v25 = vor.u32 %v590_v20, %v541_v22  ;;  %v585_v26 = vld [vmem:[#allocation2 + $0xa4] sm:$0xf]  ;;  %v517_v27 = vld [vmem:[#allocation2 + $0xb0] sm:$0xf0] }
   0xc   :  { %v523_v28 = vld [vmem:[#allocation2 + $0xa8] sm:$0xf]  ;;  %265 = vmatpush.bf16.msra.mxu0 %v532_v16  ;;  %v516_v29 = vor.u32 %v587_v24, %v515_v23  ;;  %v588_v30 = vld [vmem:[#allocation2 + $0xb4] sm:$0xf0]  ;;  %v586_v31 = vld [vmem:[#allocation2 + $0xac] sm:$0xf]  ;;  %v520_v33 = vor.u32 %v585_v26, %v517_v27 }
   0xd   :  { %v525_v32 = vld [vmem:[#allocation2 + $0xb8] sm:$0xf0]  ;;  %294 = vmatpush.bf16.msra.mxu1 %v536_v17  ;;  %v524_v34 = vor.u32 %v588_v30, %v523_v28  ;;  %v499_v35 = vld [vmem:[#allocation2 + $0x80] sm:$0xf]  ;;  %v583_v36 = vld [vmem:[#allocation2 + $0x8c] sm:$0xf0] }
   0xe   :  { %323 = vmatpush.bf16.msra.mxu2 %v540_v21  ;;  %v581_v37 = vld [vmem:[#allocation2 + $0x84] sm:$0xf]  ;;  %352 = vmatpush.bf16.msra.mxu3 %v544_v25  ;;  %v528_v38 = vor.u32 %v586_v31, %v525_v32  ;;  %v501_v39 = vld [vmem:[#allocation2 + $0x90] sm:$0xf0]  ;;  %v507_v40 = vld [vmem:[#allocation2 + $0x88] sm:$0xf]  ;;  %v500_v44 = vor.u32 %v583_v36, %v499_v35 }
   0xf   :  { %v584_v41 = vld [vmem:[#allocation2 + $0x94] sm:$0xf0]  ;;  %v582_v42 = vld [vmem:[#allocation2 + $0x8c] sm:$0xf]  ;;  %v509_v43 = vld [vmem:[#allocation2 + $0x98] sm:$0xf0]  ;;  %v504_v45 = vor.u32 %v581_v37, %v501_v39 }
  0x10   :  { %266 = vmatpush.bf16.msra.mxu0 %v516_v29  ;;  %v508_v46 = vor.u32 %v584_v41, %v507_v40  ;;  %v483_v47 = vld [vmem:[#allocation2 + $0x60] sm:$0xf]  ;;  %v579_v48 = vld [vmem:[#allocation2 + $0x6c] sm:$0xf0]  ;;  %v577_v49 = vld [vmem:[#allocation2 + $0x64] sm:$0xf]  ;;  %v512_v50 = vor.u32 %v582_v42, %v509_v43 }
  0x11   :  { %295 = vmatpush.bf16.msra.mxu1 %v520_v33  ;;  %v485_v51 = vld [vmem:[#allocation2 + $0x70] sm:$0xf0]  ;;  %v491_v52 = vld [vmem:[#allocation2 + $0x68] sm:$0xf]  ;;  %v580_v53 = vld [vmem:[#allocation2 + $0x74] sm:$0xf0]  ;;  %v484_v56 = vor.u32 %v579_v48, %v483_v47 }
  0x12   :  { %324 = vmatpush.bf16.msra.mxu2 %v524_v34  ;;  %353 = vmatpush.bf16.msra.mxu3 %v528_v38  ;;  %v578_v54 = vld [vmem:[#allocation2 + $0x6c] sm:$0xf]  ;;  %v493_v55 = vld [vmem:[#allocation2 + $0x78] sm:$0xf0]  ;;  %v488_v57 = vor.u32 %v577_v49, %v485_v51  ;;  %v492_v58 = vor.u32 %v580_v53, %v491_v52  ;;  %v467_v59 = vld [vmem:[#allocation2 + $0x40] sm:$0xf] }
  0x13   :  { %v575_v60 = vld [vmem:[#allocation2 + $0x4c] sm:$0xf0]  ;;  %v573_v61 = vld [vmem:[#allocation2 + $0x44] sm:$0xf]  ;;  %v496_v62 = vor.u32 %v578_v54, %v493_v55  ;;  %v469_v63 = vld [vmem:[#allocation2 + $0x50] sm:$0xf0] }
  0x14   :  { %267 = vmatpush.bf16.msra.mxu0 %v500_v44  ;;  %v475_v0 = vld [vmem:[#allocation2 + $0x48] sm:$0xf]  ;;  %v576_v1 = vld [vmem:[#allocation2 + $0x54] sm:$0xf0]  ;;  %v574_v2 = vld [vmem:[#allocation2 + $0x4c] sm:$0xf]  ;;  %v468_v4 = vor.u32 %v575_v60, %v467_v59  ;;  %v472_v5 = vor.u32 %v573_v61, %v469_v63 }
  0x15   :  { %296 = vmatpush.bf16.msra.mxu1 %v504_v45  ;;  %v477_v3 = vld [vmem:[#allocation2 + $0x58] sm:$0xf0]  ;;  %v476_v6 = vor.u32 %v576_v1, %v475_v0  ;;  %v451_v7 = vld [vmem:[#allocation2 + $0x20] sm:$0xf]  ;;  %v571_v8 = vld [vmem:[#allocation2 + $0x2c] sm:$0xf0] }
  0x16   :  { %325 = vmatpush.bf16.msra.mxu2 %v508_v46  ;;  %354 = vmatpush.bf16.msra.mxu3 %v512_v50  ;;  %v569_v9 = vld [vmem:[#allocation2 + $0x24] sm:$0xf]  ;;  %v480_v10 = vor.u32 %v574_v2, %v477_v3  ;;  %v453_v11 = vld [vmem:[#allocation2 + $0x30] sm:$0xf0]  ;;  %v459_v12 = vld [vmem:[#allocation2 + $0x28] sm:$0xf]  ;;  %v452_v16 = vor.u32 %v571_v8, %v451_v7 }
  0x17   :  { %v572_v13 = vld [vmem:[#allocation2 + $0x34] sm:$0xf0]  ;;  %v570_v14 = vld [vmem:[#allocation2 + $0x2c] sm:$0xf]  ;;  %v461_v15 = vld [vmem:[#allocation2 + $0x38] sm:$0xf0]  ;;  %v456_v17 = vor.u32 %v569_v9, %v453_v11 }
  0x18   :  { %268 = vmatpush.bf16.msra.mxu0 %v484_v56  ;;  %v460_v18 = vor.u32 %v572_v13, %v459_v12  ;;  %v435_v19 = vld [vmem:[#allocation2] sm:$0xf]  ;;  %v567_v20 = vld [vmem:[#allocation2 + $0xc] sm:$0xf0]  ;;  %v565_v21 = vld [vmem:[#allocation2 + $0x4] sm:$0xf]  ;;  %v464_v22 = vor.u32 %v570_v14, %v461_v15 }
  0x19   :  { %297 = vmatpush.bf16.msra.mxu1 %v488_v57  ;;  %v437_v23 = vld [vmem:[#allocation2 + $0x10] sm:$0xf0]  ;;  %v443_v24 = vld [vmem:[#allocation2 + $0x8] sm:$0xf]  ;;  %v568_v25 = vld [vmem:[#allocation2 + $0x14] sm:$0xf0]  ;;  %v436_v28 = vor.u32 %v567_v20, %v435_v19 }
  0x1a   :  { %326 = vmatpush.bf16.msra.mxu2 %v492_v58  ;;  %355 = vmatpush.bf16.msra.mxu3 %v496_v62  ;;  %v566_v26 = vld [vmem:[#allocation2 + $0xc] sm:$0xf]  ;;  %v445_v27 = vld [vmem:[#allocation2 + $0x18] sm:$0xf0]  ;;  %v440_v29 = vor.u32 %v565_v21, %v437_v23  ;;  %v444_v30 = vor.u32 %v568_v25, %v443_v24  ;;  %v561_v32 = vld [vmem:[%s755_s0] sm:$0xff] }
  0x1b   :  { %v448_v31 = vor.u32 %v566_v26, %v445_v27  ;;  %v562_v33 = vld [vmem:[%s755_s0 + $0x8] sm:$0xff]  ;;  %v563_v34 = vld [vmem:[%s755_s0 + $0x10] sm:$0xff]  ;;  %v564_v35 = vld [vmem:[%s755_s0 + $0x18] sm:$0xff] }
  0x1c   :  { %269 = vmatpush.bf16.msra.mxu0 %v468_v4  ;;  %v70_v36 = vld [vmem:[%s757_s2] sm:$0xf] }
  0x1d   :  { %298 = vmatpush.bf16.msra.mxu1 %v472_v5  ;;  %v667_v37 = vperm.slane %v70_v36, 0  ;;  %v669_v38 = vperm.slane %v70_v36, 1  ;;  %v673_v44 = vperm.slane %v70_v36, 2  ;;  %v675_v45 = vperm.slane %v70_v36, 3 }
  0x1e   :  { %327 = vmatpush.bf16.msra.mxu2 %v476_v6  ;;  %356 = vmatpush.bf16.msra.mxu3 %v480_v10 }
  0x20   :  { %270 = vmatpush.bf16.msra.mxu0 %v452_v16 }
  0x21   :  { %299 = vmatpush.bf16.msra.mxu1 %v456_v17 }
  0x22   :  { %328 = vmatpush.bf16.msra.mxu2 %v460_v18  ;;  %357 = vmatpush.bf16.msra.mxu3 %v464_v22 }
  0x24   :  { %271 = vmatpush.bf16.msra.mxu0 %v436_v28 }
  0x25   :  { %300 = vmatpush.bf16.msra.mxu1 %v440_v29 }
  0x26   :  { %329 = vmatpush.bf16.msra.mxu2 %v444_v30  ;;  %358 = vmatpush.bf16.msra.mxu3 %v448_v31 }
  0x27   :  { %272 = vmatmul.bf16.vlgmr.msra.gmra.mxu0 %v561_v32 }
  0x28   :  { %301 = vmatmul.bf16.vlgmr.msra.gmra.mxu1 %v561_v32 }
  0x29   :  { %330 = vmatmul.bf16.vlgmr.msra.gmra.mxu2 %v561_v32  ;;  %359 = vmatmul.bf16.vlgmr.msra.gmra.mxu3 %v561_v32 }
  0x37   :  { %277 = vmatmul.bf16.gmra.mxu0 %v562_v33 }
  0x38   :  { %306 = vmatmul.bf16.gmra.mxu1 %v562_v33 }
  0x39   :  { %335 = vmatmul.bf16.gmra.mxu2 %v562_v33  ;;  %364 = vmatmul.bf16.gmra.mxu3 %v562_v33 }
  0x47   :  { %282 = vmatmul.bf16.gmra.mxu0 %v563_v34 }
  0x48   :  { %311 = vmatmul.bf16.gmra.mxu1 %v563_v34 }
  0x49   :  { %340 = vmatmul.bf16.gmra.mxu2 %v563_v34  ;;  %369 = vmatmul.bf16.gmra.mxu3 %v563_v34 }
  0x57   :  { %287 = vmatmul.bf16.gmra.mxu0 %v564_v35 }
  0x58   :  { %316 = vmatmul.bf16.gmra.mxu1 %v564_v35 }
  0x59   :  { %345 = vmatmul.bf16.gmra.mxu2 %v564_v35  ;;  %374 = vmatmul.bf16.gmra.mxu3 %v564_v35 }
  0xa4   :  { %v273_v39 = vpop.f32.mrf.mxu0 }
  0xa5   :  { %v274_v40 = vadd.f32 %v273_v39, %v667_v37  ;;  %v302_v41 = vpop.f32.mrf.mxu1 }
  0xa6   :  { %v303_v42 = vadd.f32 %v302_v41, %v669_v38 }
  0xa8   :  { %v380_v43 = vpack.c.bf16 %v303_v42, %v274_v40 }
  0xaa   :  { %396 = vst [vmem:[%s758_s3] sm:$0xff] %v380_v43 }
  0xac   :  { %v331_v46 = vpop.f32.mrf.mxu2  ;;  %v360_v48 = vpop.f32.mrf.mxu3 }
  0xad   :  { %v332_v47 = vadd.f32 %v331_v46, %v673_v44  ;;  %v275_v49 = vpop.f32.mrf.mxu0  ;;  %v361_v50 = vadd.f32 %v360_v48, %v675_v45  ;;  %v304_v52 = vpop.f32.mrf.mxu1 }
  0xae   :  { %v276_v51 = vadd.f32 %v275_v49, %v667_v37  ;;  %v305_v53 = vadd.f32 %v304_v52, %v669_v38 }
  0xaf   :  { %v381_v54 = vpack.c.bf16 %v361_v50, %v332_v47 }
  0xb0   :  { %v382_v55 = vpack.c.bf16 %v305_v53, %v276_v51 }
  0xb1   :  { %397 = vst [vmem:[%s758_s3 + $0x8] sm:$0xff] %v381_v54 }
  0xb2   :  { %398 = vst [vmem:[%s758_s3 + $0x10] sm:$0xff] %v382_v55 }
  0xb4   :  { %v333_v56 = vpop.f32.mrf.mxu2  ;;  %v362_v58 = vpop.f32.mrf.mxu3 }
  0xb5   :  { %v334_v57 = vadd.f32 %v333_v56, %v673_v44  ;;  %v278_v59 = vpop.f32.mrf.mxu0  ;;  %v363_v60 = vadd.f32 %v362_v58, %v675_v45  ;;  %v307_v62 = vpop.f32.mrf.mxu1 }
  0xb6   :  { %v279_v61 = vadd.f32 %v278_v59, %v667_v37  ;;  %v308_v63 = vadd.f32 %v307_v62, %v669_v38 }
  0xb7   :  { %v383_v0 = vpack.c.bf16 %v363_v60, %v334_v57 }
  0xb8   :  { %v384_v1 = vpack.c.bf16 %v308_v63, %v279_v61 }
  0xb9   :  { %399 = vst [vmem:[%s758_s3 + $0x18] sm:$0xff] %v383_v0 }
  0xba   :  { %400 = vst [vmem:[%s758_s3 + $0x20] sm:$0xff] %v384_v1 }
  0xbc   :  { %v336_v2 = vpop.f32.mrf.mxu2  ;;  %v365_v4 = vpop.f32.mrf.mxu3 }
  0xbd   :  { %v337_v3 = vadd.f32 %v336_v2, %v673_v44  ;;  %v280_v5 = vpop.f32.mrf.mxu0  ;;  %v366_v6 = vadd.f32 %v365_v4, %v675_v45  ;;  %v309_v8 = vpop.f32.mrf.mxu1 }
  0xbe   :  { %v281_v7 = vadd.f32 %v280_v5, %v667_v37  ;;  %v310_v9 = vadd.f32 %v309_v8, %v669_v38 }
  0xbf   :  { %v385_v10 = vpack.c.bf16 %v366_v6, %v337_v3 }
  0xc0   :  { %v386_v11 = vpack.c.bf16 %v310_v9, %v281_v7 }
  0xc1   :  { %401 = vst [vmem:[%s758_s3 + $0x28] sm:$0xff] %v385_v10 }
  0xc2   :  { %402 = vst [vmem:[%s758_s3 + $0x30] sm:$0xff] %v386_v11 }
  0xc4   :  { %v338_v12 = vpop.f32.mrf.mxu2  ;;  %v367_v14 = vpop.f32.mrf.mxu3 }
  0xc5   :  { %v339_v13 = vadd.f32 %v338_v12, %v673_v44  ;;  %v283_v15 = vpop.f32.mrf.mxu0  ;;  %v368_v16 = vadd.f32 %v367_v14, %v675_v45  ;;  %v312_v18 = vpop.f32.mrf.mxu1 }
  0xc6   :  { %v284_v17 = vadd.f32 %v283_v15, %v667_v37  ;;  %v313_v19 = vadd.f32 %v312_v18, %v669_v38 }
  0xc7   :  { %v387_v20 = vpack.c.bf16 %v368_v16, %v339_v13 }
  0xc8   :  { %v388_v21 = vpack.c.bf16 %v313_v19, %v284_v17 }
  0xc9   :  { %403 = vst [vmem:[%s758_s3 + $0x38] sm:$0xff] %v387_v20 }
  0xca   :  { %404 = vst [vmem:[%s758_s3 + $0x40] sm:$0xff] %v388_v21 }
  0xcc   :  { %v341_v22 = vpop.f32.mrf.mxu2  ;;  %v370_v24 = vpop.f32.mrf.mxu3 }
  0xcd   :  { %v342_v23 = vadd.f32 %v341_v22, %v673_v44  ;;  %v285_v25 = vpop.f32.mrf.mxu0  ;;  %v371_v26 = vadd.f32 %v370_v24, %v675_v45  ;;  %v314_v28 = vpop.f32.mrf.mxu1 }
  0xce   :  { %v286_v27 = vadd.f32 %v285_v25, %v667_v37  ;;  %v315_v29 = vadd.f32 %v314_v28, %v669_v38 }
  0xcf   :  { %v389_v30 = vpack.c.bf16 %v371_v26, %v342_v23 }
  0xd0   :  { %v390_v31 = vpack.c.bf16 %v315_v29, %v286_v27 }
  0xd1   :  { %405 = vst [vmem:[%s758_s3 + $0x48] sm:$0xff] %v389_v30 }
  0xd2   :  { %406 = vst [vmem:[%s758_s3 + $0x50] sm:$0xff] %v390_v31 }
  0xd4   :  { %v343_v32 = vpop.f32.mrf.mxu2  ;;  %v372_v34 = vpop.f32.mrf.mxu3 }
  0xd5   :  { %v344_v33 = vadd.f32 %v343_v32, %v673_v44  ;;  %v288_v35 = vpop.f32.mrf.mxu0  ;;  %v373_v36 = vadd.f32 %v372_v34, %v675_v45  ;;  %v317_v40 = vpop.f32.mrf.mxu1 }
  0xd6   :  { %v289_v39 = vadd.f32 %v288_v35, %v667_v37  ;;  %v318_v41 = vadd.f32 %v317_v40, %v669_v38 }
  0xd7   :  { %v391_v42 = vpack.c.bf16 %v373_v36, %v344_v33 }
  0xd8   :  { %v392_v43 = vpack.c.bf16 %v318_v41, %v289_v39 }
  0xd9   :  { %407 = vst [vmem:[%s758_s3 + $0x58] sm:$0xff] %v391_v42 }
  0xda   :  { %408 = vst [vmem:[%s758_s3 + $0x60] sm:$0xff] %v392_v43 }
  0xdc   :  { %v346_v46 = vpop.f32.mrf.mxu2  ;;  %v375_v48 = vpop.f32.mrf.mxu3 }
  0xdd   :  { %v347_v47 = vadd.f32 %v346_v46, %v673_v44  ;;  %v290_v49 = vpop.f32.mrf.mxu0  ;;  %v376_v50 = vadd.f32 %v375_v48, %v675_v45  ;;  %v319_v52 = vpop.f32.mrf.mxu1 }
  0xde   :  { %v291_v51 = vadd.f32 %v290_v49, %v667_v37  ;;  %v320_v53 = vadd.f32 %v319_v52, %v669_v38 }
  0xdf   :  { %v393_v54 = vpack.c.bf16 %v376_v50, %v347_v47 }
  0xe0   :  { %v394_v55 = vpack.c.bf16 %v320_v53, %v291_v51 }
  0xe1   :  { %409 = vst [vmem:[%s758_s3 + $0x68] sm:$0xff] %v393_v54 }
  0xe2   :  { %410 = vst [vmem:[%s758_s3 + $0x70] sm:$0xff] %v394_v55 }
  0xe4   :  { %v348_v56 = vpop.f32.mrf.mxu2  ;;  %v377_v58 = vpop.f32.mrf.mxu3 }
  0xe5   :  { %v349_v57 = vadd.f32 %v348_v56, %v673_v44  ;;  %v378_v59 = vadd.f32 %v377_v58, %v675_v45 }
  0xe7   :  { %v395_v37 = vpack.c.bf16 %v378_v59, %v349_v57 }
  0xe9   :  { %411 = vst [vmem:[%s758_s3 + $0x78] sm:$0xff] %v395_v37 }
  0xea   :  { %416 = vsyncpa [#allocation3], 1 }

// kernel: rnn_model_forward.6
= control target key start
LH: loop header
LB: loop body
LE: loop exit
PB: predicated region body
PF: predicated region fallthrough
CT: control target
= control target key end

     0   :  { %13 = vsyncpa [#allocation3], 0  ;;  %s3824_s27 = smov [#allocation2]   ;;  %s3825_s29 = smov 256   ;;  %s4039_s0 = inlined_call_operand.vmem [shape: bf16[8,8,512], index: 0, kind: input, shape index: {}]   ;;  %s4040_s1 = inlined_call_operand.hbm [shape: bf16[128,512], index: 1, kind: input, shape index: {}]   ;;  %s4041_s2 = inlined_call_operand.vmem [shape: f32[8,128], index: 2, kind: input, shape index: {}]   ;;  %s4042_s3 = inlined_call_operand.vmem [shape: f32[8,128], index: 3, kind: input, shape index: {}]   ;;  %s4043_s4 = inlined_call_operand.vmem [shape: s32[8,1], index: 4, kind: input, shape index: {}]   ;;  %s4044_s5 = inlined_call_operand.vmem [shape: bf16[8,8,128], index: 5, kind: output, shape index: {0}]   ;;  %s4045_s6 = inlined_call_operand.vmem [shape: f32[8,128], index: 6, kind: output, shape index: {1}]   ;;  %s4046_s7 = inlined_call_operand.vmem [shape: f32[8,128], index: 7, kind: output, shape index: {2}]  }
   0x1   :  { %s20_s26 = sshll.u32 %s4040_s1, 4  ;;  %s22_s28 = sshll.u32 %s3824_s27, 4  ;;  %s21_s26 = int_to_ptr.hbm [resolvable:$true] %s20_s26  ;;  %s23_s28 = int_to_ptr.vmem [resolvable:$true] %s22_s28 }
   0x2   :  { %s3826_s30 = smov 16  }
   0x3   :  { %28 = dma.hbm_to_vmem [thread:$0]  %s21_s26, 4096, %s23_s28, [#allocation3], %s3825_s29, %s3825_s29, %s3826_s30  }
   0x4   :  { %3822 = dma.done.wait [#allocation3], 4096  }
   0x5   :  { %3823 = vsyncadd [#allocation3], 4294963200  ;;  %v2516_v0 = vld [vmem:[#allocation2 + $0xe0] sm:$0xf]  ;;  %v3485_v1 = vld [vmem:[#allocation2 + $0xec] sm:$0xf0] }
   0x6   :  { %v3483_v2 = vld [vmem:[#allocation2 + $0xe4] sm:$0xf]  ;;  %v2517_v3 = vor.u32 %v3485_v1, %v2516_v0  ;;  %v2518_v4 = vld [vmem:[#allocation2 + $0xf0] sm:$0xf0]  ;;  %v2524_v5 = vld [vmem:[#allocation2 + $0xe8] sm:$0xf] }
   0x7   :  { %v3486_v6 = vld [vmem:[#allocation2 + $0xf4] sm:$0xf0]  ;;  %v2521_v7 = vor.u32 %v3483_v2, %v2518_v4  ;;  %v3484_v9 = vld [vmem:[#allocation2 + $0xec] sm:$0xf]  ;;  %v2526_v10 = vld [vmem:[#allocation2 + $0xf8] sm:$0xf0] }
   0x8   :  { %v2525_v8 = vor.u32 %v3486_v6, %v2524_v5  ;;  %v2500_v11 = vld [vmem:[#allocation2 + $0xc0] sm:$0xf]  ;;  %249 = vmatpush.bf16.msra.mxu0 %v2517_v3  ;;  %v2529_v12 = vor.u32 %v3484_v9, %v2526_v10  ;;  %v3481_v13 = vld [vmem:[#allocation2 + $0xcc] sm:$0xf0]  ;;  %v3479_v14 = vld [vmem:[#allocation2 + $0xc4] sm:$0xf] }
   0x9   :  { %v2502_v15 = vld [vmem:[#allocation2 + $0xd0] sm:$0xf0]  ;;  %262 = vmatpush.bf16.msra.mxu1 %v2521_v7  ;;  %v2501_v16 = vor.u32 %v3481_v13, %v2500_v11  ;;  %v2508_v18 = vld [vmem:[#allocation2 + $0xc8] sm:$0xf]  ;;  %v3482_v19 = vld [vmem:[#allocation2 + $0xd4] sm:$0xf0] }
   0xa   :  { %275 = vmatpush.bf16.msra.mxu2 %v2525_v8  ;;  %v2505_v17 = vor.u32 %v3479_v14, %v2502_v15  ;;  %v3480_v20 = vld [vmem:[#allocation2 + $0xcc] sm:$0xf]  ;;  %288 = vmatpush.bf16.msra.mxu3 %v2529_v12  ;;  %v2509_v21 = vor.u32 %v3482_v19, %v2508_v18  ;;  %v2510_v22 = vld [vmem:[#allocation2 + $0xd8] sm:$0xf0]  ;;  %v2484_v23 = vld [vmem:[#allocation2 + $0xa0] sm:$0xf] }
   0xb   :  { %v3477_v24 = vld [vmem:[#allocation2 + $0xac] sm:$0xf0]  ;;  %v2513_v25 = vor.u32 %v3480_v20, %v2510_v22  ;;  %v3475_v26 = vld [vmem:[#allocation2 + $0xa4] sm:$0xf]  ;;  %v2486_v27 = vld [vmem:[#allocation2 + $0xb0] sm:$0xf0] }
   0xc   :  { %v2492_v28 = vld [vmem:[#allocation2 + $0xa8] sm:$0xf]  ;;  %250 = vmatpush.bf16.msra.mxu0 %v2501_v16  ;;  %v2485_v29 = vor.u32 %v3477_v24, %v2484_v23  ;;  %v3478_v30 = vld [vmem:[#allocation2 + $0xb4] sm:$0xf0]  ;;  %v3476_v31 = vld [vmem:[#allocation2 + $0xac] sm:$0xf]  ;;  %v2489_v33 = vor.u32 %v3475_v26, %v2486_v27 }
   0xd   :  { %v2494_v32 = vld [vmem:[#allocation2 + $0xb8] sm:$0xf0]  ;;  %263 = vmatpush.bf16.msra.mxu1 %v2505_v17  ;;  %v2493_v34 = vor.u32 %v3478_v30, %v2492_v28  ;;  %v2468_v35 = vld [vmem:[#allocation2 + $0x80] sm:$0xf]  ;;  %v3473_v36 = vld [vmem:[#allocation2 + $0x8c] sm:$0xf0] }
   0xe   :  { %276 = vmatpush.bf16.msra.mxu2 %v2509_v21  ;;  %v3471_v37 = vld [vmem:[#allocation2 + $0x84] sm:$0xf]  ;;  %289 = vmatpush.bf16.msra.mxu3 %v2513_v25  ;;  %v2497_v38 = vor.u32 %v3476_v31, %v2494_v32  ;;  %v2470_v39 = vld [vmem:[#allocation2 + $0x90] sm:$0xf0]  ;;  %v2476_v40 = vld [vmem:[#allocation2 + $0x88] sm:$0xf]  ;;  %v2469_v44 = vor.u32 %v3473_v36, %v2468_v35 }
   0xf   :  { %v3474_v41 = vld [vmem:[#allocation2 + $0x94] sm:$0xf0]  ;;  %v3472_v42 = vld [vmem:[#allocation2 + $0x8c] sm:$0xf]  ;;  %v2478_v43 = vld [vmem:[#allocation2 + $0x98] sm:$0xf0]  ;;  %v2473_v45 = vor.u32 %v3471_v37, %v2470_v39 }
  0x10   :  { %251 = vmatpush.bf16.msra.mxu0 %v2485_v29  ;;  %v2477_v46 = vor.u32 %v3474_v41, %v2476_v40  ;;  %v2452_v47 = vld [vmem:[#allocation2 + $0x60] sm:$0xf]  ;;  %v3469_v48 = vld [vmem:[#allocation2 + $0x6c] sm:$0xf0]  ;;  %v3467_v49 = vld [vmem:[#allocation2 + $0x64] sm:$0xf]  ;;  %v2481_v50 = vor.u32 %v3472_v42, %v2478_v43 }
  0x11   :  { %264 = vmatpush.bf16.msra.mxu1 %v2489_v33  ;;  %v2454_v51 = vld [vmem:[#allocation2 + $0x70] sm:$0xf0]  ;;  %v2460_v52 = vld [vmem:[#allocation2 + $0x68] sm:$0xf]  ;;  %v3470_v53 = vld [vmem:[#allocation2 + $0x74] sm:$0xf0]  ;;  %v2453_v56 = vor.u32 %v3469_v48, %v2452_v47 }
  0x12   :  { %277 = vmatpush.bf16.msra.mxu2 %v2493_v34  ;;  %290 = vmatpush.bf16.msra.mxu3 %v2497_v38  ;;  %v3468_v54 = vld [vmem:[#allocation2 + $0x6c] sm:$0xf]  ;;  %v2462_v55 = vld [vmem:[#allocation2 + $0x78] sm:$0xf0]  ;;  %v2457_v57 = vor.u32 %v3467_v49, %v2454_v51  ;;  %v2461_v58 = vor.u32 %v3470_v53, %v2460_v52  ;;  %v2436_v59 = vld [vmem:[#allocation2 + $0x40] sm:$0xf] }
  0x13   :  { %v3465_v60 = vld [vmem:[#allocation2 + $0x4c] sm:$0xf0]  ;;  %v3463_v61 = vld [vmem:[#allocation2 + $0x44] sm:$0xf]  ;;  %v2465_v62 = vor.u32 %v3468_v54, %v2462_v55  ;;  %v2438_v63 = vld [vmem:[#allocation2 + $0x50] sm:$0xf0] }
  0x14   :  { %252 = vmatpush.bf16.msra.mxu0 %v2469_v44  ;;  %v2444_v0 = vld [vmem:[#allocation2 + $0x48] sm:$0xf]  ;;  %v3466_v1 = vld [vmem:[#allocation2 + $0x54] sm:$0xf0]  ;;  %v3464_v2 = vld [vmem:[#allocation2 + $0x4c] sm:$0xf]  ;;  %v2437_v4 = vor.u32 %v3465_v60, %v2436_v59  ;;  %v2441_v6 = vor.u32 %v3463_v61, %v2438_v63 }
  0x15   :  { %265 = vmatpush.bf16.msra.mxu1 %v2473_v45  ;;  %v2446_v3 = vld [vmem:[#allocation2 + $0x58] sm:$0xf0]  ;;  %v2420_v5 = vld [vmem:[#allocation2 + $0x20] sm:$0xf]  ;;  %v2445_v7 = vor.u32 %v3466_v1, %v2444_v0  ;;  %v3461_v8 = vld [vmem:[#allocation2 + $0x2c] sm:$0xf0] }
  0x16   :  { %278 = vmatpush.bf16.msra.mxu2 %v2477_v46  ;;  %291 = vmatpush.bf16.msra.mxu3 %v2481_v50  ;;  %v3459_v9 = vld [vmem:[#allocation2 + $0x24] sm:$0xf]  ;;  %v2422_v10 = vld [vmem:[#allocation2 + $0x30] sm:$0xf0]  ;;  %v2449_v11 = vor.u32 %v3464_v2, %v2446_v3  ;;  %v2428_v12 = vld [vmem:[#allocation2 + $0x28] sm:$0xf]  ;;  %v2421_v18 = vor.u32 %v3461_v8, %v2420_v5 }
  0x17   :  { %v3462_v13 = vld [vmem:[#allocation2 + $0x34] sm:$0xf0]  ;;  %v3874_v14 = vld [vmem:[%s4043_s4] sm:$0xff]  ;;  %v3460_v15 = vld [vmem:[#allocation2 + $0x2c] sm:$0xf]  ;;  %v3827_v17 = vmov 0   ;;  %v2425_v20 = vor.u32 %v3459_v9, %v2422_v10 }
  0x18   :  { %253 = vmatpush.bf16.msra.mxu0 %v2453_v56  ;;  %v2430_v16 = vld [vmem:[#allocation2 + $0x38] sm:$0xf0]  ;;  %3715 = vset.pattern.permute.xlu0 %v3827_v17  ;;  %vm2530_vm0 = vcmp.gt.s32.totalorder %v3874_v14, 0  ;;  %v2429_v21 = vor.u32 %v3462_v13, %v2428_v12  ;;  %v2404_v22 = vld [vmem:[#allocation2] sm:$0xf]  ;;  %vm2661_vm1 = vcmp.gt.s32.totalorder %v3874_v14, 1 }
  0x19   :  { %266 = vmatpush.bf16.msra.mxu1 %v2457_v57  ;;  %3716 = vset.pattern.permute.xlu1 %v3827_v17  ;;  %v326_v19 = vsel %vm2530_vm0, 1, %v3827_v17  ;;  %v3457_v23 = vld [vmem:[#allocation2 + $0xc] sm:$0xf0]  ;;  %v3455_v24 = vld [vmem:[#allocation2 + $0x4] sm:$0xf]  ;;  %v2433_v25 = vor.u32 %v3460_v15, %v2430_v16  ;;  %v618_v37 = vsel %vm2661_vm1, 1, %v3827_v17 }
  0x1a   :  { %279 = vmatpush.bf16.msra.mxu2 %v2461_v58  ;;  %292 = vmatpush.bf16.msra.mxu3 %v2465_v62  ;;  %v2406_v26 = vld [vmem:[#allocation2 + $0x10] sm:$0xf0]  ;;  %v2412_v27 = vld [vmem:[#allocation2 + $0x8] sm:$0xf]  ;;  %v3458_v28 = vld [vmem:[#allocation2 + $0x14] sm:$0xf0]  ;;  %v2405_v31 = vor.u32 %v3457_v23, %v2404_v22 }
  0x1b   :  { %3717 = vset.pattern.permute.xlu2 %v3827_v17  ;;  %328 = vperm.xlu0 %3715, %v326_v19   ;;  %v3456_v29 = vld [vmem:[#allocation2 + $0xc] sm:$0xf]  ;;  %v2414_v30 = vld [vmem:[#allocation2 + $0x18] sm:$0xf0]  ;;  %v3884_v32 = vld [vmem:[%s4041_s2] sm:$0xff]  ;;  %v2409_v33 = vor.u32 %v3455_v24, %v2406_v26  ;;  %v2413_v34 = vor.u32 %v3458_v28, %v2412_v27  ;;  %vm3321_vm2 = vcmp.gt.s32.totalorder %v3874_v14, 6 }
  0x1c   :  { %254 = vmatpush.bf16.msra.mxu0 %v2437_v4  ;;  %v2417_v35 = vor.u32 %v3456_v29, %v2414_v30  ;;  %v56_v36 = vpack.c.bf16 %v3884_v32, %v3884_v32  ;;  %v2083_v38 = vsel %vm3321_vm2, 1, %v3827_v17  ;;  %v2647_v39 = vld [vmem:[#allocation2 + $0xe0] sm:$0xf]  ;;  %v3517_v40 = vld [vmem:[#allocation2 + $0xec] sm:$0xf0]  ;;  %vm2793_vm4 = vcmp.gt.s32.totalorder %v3874_v14, 2 }
  0x1d   :  { %267 = vmatpush.bf16.msra.mxu1 %v2441_v6  ;;  %v3515_v41 = vld [vmem:[#allocation2 + $0xe4] sm:$0xf]  ;;  %v2648_v42 = vor.u32 %v3517_v40, %v2647_v39  ;;  %v2649_v43 = vld [vmem:[#allocation2 + $0xf0] sm:$0xf0]  ;;  %v2655_v44 = vld [vmem:[#allocation2 + $0xe8] sm:$0xf] }
  0x1e   :  { %280 = vmatpush.bf16.msra.mxu2 %v2445_v7  ;;  %293 = vmatpush.bf16.msra.mxu3 %v2449_v11  ;;  %v3518_v45 = vld [vmem:[#allocation2 + $0xf4] sm:$0xf0]  ;;  %v2652_v46 = vor.u32 %v3515_v41, %v2649_v43  ;;  %v3516_v48 = vld [vmem:[#allocation2 + $0xec] sm:$0xf]  ;;  %v2657_v49 = vld [vmem:[#allocation2 + $0xf8] sm:$0xf0] }
  0x1f   :  { %v2656_v47 = vor.u32 %v3518_v45, %v2655_v44  ;;  %v2660_v50 = vor.u32 %v3516_v48, %v2657_v49  ;;  %v2631_v51 = vld [vmem:[#allocation2 + $0xc0] sm:$0xf]  ;;  %v3513_v52 = vld [vmem:[#allocation2 + $0xcc] sm:$0xf0]  ;;  %v3511_v53 = vld [vmem:[#allocation2 + $0xc4] sm:$0xf] }
  0x20   :  { %255 = vmatpush.bf16.msra.mxu0 %v2421_v18  ;;  %v2632_v54 = vor.u32 %v3513_v52, %v2631_v51  ;;  %v2633_v55 = vld [vmem:[#allocation2 + $0xd0] sm:$0xf0]  ;;  %v2639_v56 = vld [vmem:[#allocation2 + $0xc8] sm:$0xf]  ;;  %v3514_v57 = vld [vmem:[#allocation2 + $0xd4] sm:$0xf0] }
  0x21   :  { %268 = vmatpush.bf16.msra.mxu1 %v2425_v20  ;;  %v2636_v58 = vor.u32 %v3511_v53, %v2633_v55  ;;  %v2640_v59 = vor.u32 %v3514_v57, %v2639_v56  ;;  %v3512_v60 = vld [vmem:[#allocation2 + $0xcc] sm:$0xf]  ;;  %v2641_v61 = vld [vmem:[#allocation2 + $0xd8] sm:$0xf0]  ;;  %v2615_v63 = vld [vmem:[#allocation2 + $0xa0] sm:$0xf] }
  0x22   :  { %281 = vmatpush.bf16.msra.mxu2 %v2429_v21  ;;  %294 = vmatpush.bf16.msra.mxu3 %v2433_v25  ;;  %v2644_v62 = vor.u32 %v3512_v60, %v2641_v61  ;;  %v3509_v0 = vld [vmem:[#allocation2 + $0xac] sm:$0xf0]  ;;  %v3507_v1 = vld [vmem:[#allocation2 + $0xa4] sm:$0xf]  ;;  %v2617_v3 = vld [vmem:[#allocation2 + $0xb0] sm:$0xf0] }
  0x23   :  { %620 = vperm.xlu0 %3715, %v618_v37   ;;  %v2616_v2 = vor.u32 %v3509_v0, %v2615_v63  ;;  %v2623_v4 = vld [vmem:[#allocation2 + $0xa8] sm:$0xf]  ;;  %v3510_v5 = vld [vmem:[#allocation2 + $0xb4] sm:$0xf0]  ;;  %v2620_v6 = vor.u32 %v3507_v1, %v2617_v3  ;;  %v3508_v8 = vld [vmem:[#allocation2 + $0xac] sm:$0xf] }
  0x24   :  { %256 = vmatpush.bf16.msra.mxu0 %v2405_v31  ;;  %v2624_v7 = vor.u32 %v3510_v5, %v2623_v4  ;;  %v2625_v9 = vld [vmem:[#allocation2 + $0xb8] sm:$0xf0]  ;;  %v2599_v11 = vld [vmem:[#allocation2 + $0x80] sm:$0xf]  ;;  %v3505_v12 = vld [vmem:[#allocation2 + $0x8c] sm:$0xf0] }
  0x25   :  { %269 = vmatpush.bf16.msra.mxu1 %v2409_v33  ;;  %v2628_v10 = vor.u32 %v3508_v8, %v2625_v9  ;;  %v3503_v13 = vld [vmem:[#allocation2 + $0x84] sm:$0xf]  ;;  %v2600_v15 = vor.u32 %v3505_v12, %v2599_v11  ;;  %v2601_v16 = vld [vmem:[#allocation2 + $0x90] sm:$0xf0]  ;;  %v2607_v18 = vld [vmem:[#allocation2 + $0x88] sm:$0xf] }
  0x26   :  { %282 = vmatpush.bf16.msra.mxu2 %v2413_v34  ;;  %295 = vmatpush.bf16.msra.mxu3 %v2417_v35  ;;  %v3506_v19 = vld [vmem:[#allocation2 + $0x94] sm:$0xf0]  ;;  %v2604_v20 = vor.u32 %v3503_v13, %v2601_v16  ;;  %v3504_v22 = vld [vmem:[#allocation2 + $0x8c] sm:$0xf]  ;;  %v2609_v23 = vld [vmem:[#allocation2 + $0x98] sm:$0xf0] }
  0x27   :  { %257 = vmatmul.bf16.vlgmr.msra.gmra.mxu0 %v56_v36  ;;  %v2608_v21 = vor.u32 %v3506_v19, %v2607_v18  ;;  %v2612_v24 = vor.u32 %v3504_v22, %v2609_v23  ;;  %v2583_v25 = vld [vmem:[#allocation2 + $0x60] sm:$0xf]  ;;  %v3501_v26 = vld [vmem:[#allocation2 + $0x6c] sm:$0xf0]  ;;  %v3499_v27 = vld [vmem:[#allocation2 + $0x64] sm:$0xf] }
  0x28   :  { %270 = vmatmul.bf16.vlgmr.msra.gmra.mxu1 %v56_v36  ;;  %540 = vmatpush.bf16.msrb.mxu0 %v2648_v42  ;;  %v2584_v28 = vor.u32 %v3501_v26, %v2583_v25  ;;  %v2585_v29 = vld [vmem:[#allocation2 + $0x70] sm:$0xf0]  ;;  %v2591_v30 = vld [vmem:[#allocation2 + $0x68] sm:$0xf]  ;;  %v3502_v33 = vld [vmem:[#allocation2 + $0x74] sm:$0xf0] }
  0x29   :  { %283 = vmatmul.bf16.vlgmr.msra.gmra.mxu2 %v56_v36  ;;  %296 = vmatmul.bf16.vlgmr.msra.gmra.mxu3 %v56_v36  ;;  %v2588_v31 = vor.u32 %v3499_v27, %v2585_v29  ;;  %v3500_v34 = vld [vmem:[#allocation2 + $0x6c] sm:$0xf]  ;;  %v2593_v35 = vld [vmem:[#allocation2 + $0x78] sm:$0xf0]  ;;  %v2592_v36 = vor.u32 %v3502_v33, %v2591_v30  ;;  %v3497_v39 = vld [vmem:[#allocation2 + $0x4c] sm:$0xf0] }
  0x2a   :  { %553 = vmatpush.bf16.msrb.mxu1 %v2652_v46  ;;  %566 = vmatpush.bf16.msrb.mxu2 %v2656_v47  ;;  %v2596_v37 = vor.u32 %v3500_v34, %v2593_v35  ;;  %v3495_v40 = vld [vmem:[#allocation2 + $0x44] sm:$0xf]  ;;  %v2569_v42 = vld [vmem:[#allocation2 + $0x50] sm:$0xf0]  ;;  %v2575_v43 = vld [vmem:[#allocation2 + $0x48] sm:$0xf] }
  0x2b   :  { %2085 = vperm.xlu0 %3715, %v2083_v38   ;;  %579 = vmatpush.bf16.msrb.mxu3 %v2660_v50  ;;  %v2567_v38 = vld [vmem:[#allocation2 + $0x40] sm:$0xf]  ;;  %v2572_v44 = vor.u32 %v3495_v40, %v2569_v42  ;;  %v3498_v45 = vld [vmem:[#allocation2 + $0x54] sm:$0xf0]  ;;  %v3496_v46 = vld [vmem:[#allocation2 + $0x4c] sm:$0xf] }
  0x2c   :  { %541 = vmatpush.bf16.msrb.mxu0 %v2632_v54  ;;  %v2568_v41 = vor.u32 %v3497_v39, %v2567_v38  ;;  %v2577_v47 = vld [vmem:[#allocation2 + $0x58] sm:$0xf0]  ;;  %v2576_v48 = vor.u32 %v3498_v45, %v2575_v43  ;;  %v2551_v50 = vld [vmem:[#allocation2 + $0x20] sm:$0xf]  ;;  %v3493_v51 = vld [vmem:[#allocation2 + $0x2c] sm:$0xf0] }
  0x2d   :  { %v2580_v49 = vor.u32 %v3496_v46, %v2577_v47  ;;  %v3491_v52 = vld [vmem:[#allocation2 + $0x24] sm:$0xf]  ;;  %v2552_v53 = vor.u32 %v3493_v51, %v2551_v50  ;;  %v2553_v54 = vld [vmem:[#allocation2 + $0x30] sm:$0xf0]  ;;  %v2559_v55 = vld [vmem:[#allocation2 + $0x28] sm:$0xf] }
  0x2e   :  { %554 = vmatpush.bf16.msrb.mxu1 %v2636_v58  ;;  %567 = vmatpush.bf16.msrb.mxu2 %v2640_v59  ;;  %v3494_v56 = vld [vmem:[#allocation2 + $0x34] sm:$0xf0]  ;;  %v50_v57 = vld [vmem:[%s4039_s0] sm:$0xff]  ;;  %v2556_v58 = vor.u32 %v3491_v52, %v2553_v54  ;;  %v3492_v60 = vld [vmem:[#allocation2 + $0x2c] sm:$0xf]  ;;  %vm2925_vm5 = vcmp.gt.s32.totalorder %v3874_v14, 3 }
  0x2f   :  { %580 = vmatpush.bf16.msrb.mxu3 %v2644_v62  ;;  %v2560_v59 = vor.u32 %v3494_v56, %v2559_v55  ;;  %v2561_v61 = vld [vmem:[#allocation2 + $0x38] sm:$0xf0]  ;;  %v2535_v63 = vld [vmem:[#allocation2] sm:$0xf]  ;;  %v3489_v0 = vld [vmem:[#allocation2 + $0xc] sm:$0xf0] }
  0x30   :  { %542 = vmatpush.bf16.msrb.mxu0 %v2616_v2  ;;  %v2564_v62 = vor.u32 %v3492_v60, %v2561_v61  ;;  %v3487_v1 = vld [vmem:[#allocation2 + $0x4] sm:$0xf]  ;;  %v52_v2 = vunpack.c.l.bf16 %v50_v57  ;;  %v2536_v3 = vor.u32 %v3489_v0, %v2535_v63  ;;  %v2537_v4 = vld [vmem:[#allocation2 + $0x10] sm:$0xf0]  ;;  %v2543_v5 = vld [vmem:[#allocation2 + $0x8] sm:$0xf] }
  0x31   :  { %v2540_v8 = vor.u32 %v3487_v1, %v2537_v4  ;;  %v2545_v11 = vld [vmem:[#allocation2 + $0x18] sm:$0xf0]  ;;  %v51_v18 = vld [vmem:[%s4039_s0 + $0x8] sm:$0xff]  ;;  %v2779_v56 = vld [vmem:[#allocation2 + $0xe0] sm:$0xf]  ;;  %vm3453_vm6 = vcmp.gt.s32.totalorder %v3874_v14, 7 }
  0x32   :  { %555 = vmatpush.bf16.msrb.mxu1 %v2620_v6  ;;  %568 = vmatpush.bf16.msrb.mxu2 %v2624_v7  ;;  %v3490_v6 = vld [vmem:[#allocation2 + $0x14] sm:$0xf0]  ;;  %v53_v7 = vunpack.c.h.bf16 %v50_v57  ;;  %v54_v22 = vunpack.c.l.bf16 %v51_v18  ;;  %v55_v23 = vunpack.c.h.bf16 %v51_v18  ;;  %v3549_v57 = vld [vmem:[#allocation2 + $0xec] sm:$0xf0]  ;;  %v2781_v60 = vld [vmem:[#allocation2 + $0xf0] sm:$0xf0] }
  0x33   :  { %581 = vmatpush.bf16.msrb.mxu3 %v2628_v10  ;;  %v2544_v9 = vor.u32 %v3490_v6, %v2543_v5  ;;  %v3488_v10 = vld [vmem:[#allocation2 + $0xc] sm:$0xf]  ;;  %v3550_v61 = vld [vmem:[#allocation2 + $0xf4] sm:$0xf0]  ;;  %v2789_v1 = vld [vmem:[#allocation2 + $0xf8] sm:$0xf0] }
  0x34   :  { %543 = vmatpush.bf16.msrb.mxu0 %v2600_v15  ;;  %v2548_v12 = vor.u32 %v3488_v10, %v2545_v11  ;;  %v3548_v0 = vld [vmem:[#allocation2 + $0xec] sm:$0xf]  ;;  %v3545_v4 = vld [vmem:[#allocation2 + $0xcc] sm:$0xf0]  ;;  %v3543_v5 = vld [vmem:[#allocation2 + $0xc4] sm:$0xf] }
  0x35   :  { %v3541_v18 = vld [vmem:[#allocation2 + $0xac] sm:$0xf0] }
  0x36   :  { %556 = vmatpush.bf16.msrb.mxu1 %v2604_v20  ;;  %569 = vmatpush.bf16.msrb.mxu2 %v2608_v21 }
  0x37   :  { %582 = vmatpush.bf16.msrb.mxu3 %v2612_v24 }
  0x38   :  { %544 = vmatpush.bf16.msrb.mxu0 %v2584_v28 }
  0x3a   :  { %557 = vmatpush.bf16.msrb.mxu1 %v2588_v31  ;;  %570 = vmatpush.bf16.msrb.mxu2 %v2592_v36 }
  0x3b   :  { %583 = vmatpush.bf16.msrb.mxu3 %v2596_v37  ;;  %v45_v37 = vld [vmem:[%s4042_s3] sm:$0xff] }
  0x3c   :  { %545 = vmatpush.bf16.msrb.mxu0 %v2568_v41 }
  0x3e   :  { %558 = vmatpush.bf16.msrb.mxu1 %v2572_v44  ;;  %571 = vmatpush.bf16.msrb.mxu2 %v2576_v48 }
  0x3f   :  { %584 = vmatpush.bf16.msrb.mxu3 %v2580_v49 }
  0x40   :  { %546 = vmatpush.bf16.msrb.mxu0 %v2552_v53 }
  0x42   :  { %559 = vmatpush.bf16.msrb.mxu1 %v2556_v58  ;;  %572 = vmatpush.bf16.msrb.mxu2 %v2560_v59  ;;  %v3547_v58 = vld [vmem:[#allocation2 + $0xe4] sm:$0xf]  ;;  %v2780_v59 = vor.u32 %v3549_v57, %v2779_v56  ;;  %v2699_v56 = vld [vmem:[#allocation2 + $0x40] sm:$0xf]  ;;  %v3529_v57 = vld [vmem:[#allocation2 + $0x4c] sm:$0xf0] }
  0x43   :  { %585 = vmatpush.bf16.msrb.mxu3 %v2564_v62  ;;  %v2784_v62 = vor.u32 %v3547_v58, %v2781_v60  ;;  %v3527_v58 = vld [vmem:[#allocation2 + $0x44] sm:$0xf]  ;;  %v2701_v60 = vld [vmem:[#allocation2 + $0x50] sm:$0xf0] }
  0x44   :  { %547 = vmatpush.bf16.msrb.mxu0 %v2536_v3  ;;  %v2763_v3 = vld [vmem:[#allocation2 + $0xc0] sm:$0xf] }
  0x45   :  { %v2764_v6 = vor.u32 %v3545_v4, %v2763_v3  ;;  %v2683_v3 = vld [vmem:[#allocation2 + $0x20] sm:$0xf]  ;;  %v3525_v4 = vld [vmem:[#allocation2 + $0x2c] sm:$0xf0] }
  0x46   :  { %560 = vmatpush.bf16.msrb.mxu1 %v2540_v8  ;;  %573 = vmatpush.bf16.msrb.mxu2 %v2544_v9  ;;  %v2771_v8 = vld [vmem:[#allocation2 + $0xc8] sm:$0xf]  ;;  %v3546_v9 = vld [vmem:[#allocation2 + $0xd4] sm:$0xf0] }
  0x47   :  { %586 = vmatpush.bf16.msrb.mxu3 %v2548_v12  ;;  %v2772_v11 = vor.u32 %v3546_v9, %v2771_v8  ;;  %v3544_v12 = vld [vmem:[#allocation2 + $0xcc] sm:$0xf]  ;;  %v2691_v8 = vld [vmem:[#allocation2 + $0x28] sm:$0xf]  ;;  %v3526_v9 = vld [vmem:[#allocation2 + $0x34] sm:$0xf0] }
  0x48   :  { %833 = vmatpush.bf16.msra.mxu0 %v2780_v59  ;;  %v2700_v59 = vor.u32 %v3529_v57, %v2699_v56 }
  0x4a   :  { %846 = vmatpush.bf16.msra.mxu1 %v2784_v62  ;;  %v2704_v62 = vor.u32 %v3527_v58, %v2701_v60 }
  0x4c   :  { %834 = vmatpush.bf16.msra.mxu0 %v2764_v6  ;;  %v2684_v6 = vor.u32 %v3525_v4, %v2683_v3 }
  0x8d   :  { %v329_v43 = vpop.permute.xlu0 %328 }
  0x8e   :  { %vm330_vm3 = vcmp.eq.s32.totalorder %v329_v43, 1  ;;  %v3533_v43 = vld [vmem:[#allocation2 + $0x6c] sm:$0xf0] }
  0xa4   :  { %v258_v13 = vpop.f32.mrf.mxu0 }
  0xa5   :  { %v301_v15 = vadd.f32 %v258_v13, %v52_v2  ;;  %v271_v16 = vpop.f32.mrf.mxu1  ;;  %v2792_v2 = vor.u32 %v3548_v0, %v2789_v1  ;;  %v2773_v13 = vld [vmem:[#allocation2 + $0xd8] sm:$0xf0]  ;;  %v3528_v0 = vld [vmem:[#allocation2 + $0x4c] sm:$0xf] }
  0xa6   :  { %v302_v19 = vadd.f32 %v271_v16, %v53_v7  ;;  %v2765_v7 = vld [vmem:[#allocation2 + $0xd0] sm:$0xf0]  ;;  %v2747_v16 = vld [vmem:[#allocation2 + $0xa0] sm:$0xf]  ;;  %v2709_v1 = vld [vmem:[#allocation2 + $0x58] sm:$0xf0] }
  0xa7   :  { %v305_v20 = vmul.f32 0.5, %v301_v15  ;;  %872 = vmatpush.bf16.msra.mxu3 %v2792_v2  ;;  %v2768_v10 = vor.u32 %v3543_v5, %v2765_v7  ;;  %v2776_v15 = vor.u32 %v3544_v12, %v2773_v13  ;;  %v2712_v2 = vor.u32 %v3528_v0, %v2709_v1  ;;  %v3523_v5 = vld [vmem:[#allocation2 + $0x24] sm:$0xf]  ;;  %v2685_v7 = vld [vmem:[#allocation2 + $0x30] sm:$0xf0]  ;;  %v621_v1 = vpop.permute.xlu0 %620 }
  0xa8   :  { %v309_v21 = vmul.f32 0.5, %v302_v19  ;;  %v3539_v19 = vld [vmem:[#allocation2 + $0xa4] sm:$0xf]  ;;  %v3524_v12 = vld [vmem:[#allocation2 + $0x2c] sm:$0xf]  ;;  %vm622_vm7 = vcmp.eq.s32.totalorder %v621_v1, 1 }
  0xa9   :  { %3718 = vtanh.f32 %v305_v20  ;;  %847 = vmatpush.bf16.msra.mxu1 %v2768_v10  ;;  %v2748_v20 = vor.u32 %v3541_v18, %v2747_v16  ;;  %v2688_v10 = vor.u32 %v3523_v5, %v2685_v7  ;;  %v2693_v13 = vld [vmem:[#allocation2 + $0x38] sm:$0xf0]  ;;  %v2667_v18 = vld [vmem:[#allocation2] sm:$0xf]  ;;  %v2849_v1 = vld [vmem:[#allocation2 + $0x70] sm:$0xf0] }
  0xaa   :  { %3720 = vtanh.f32 %v309_v21  ;;  %v2749_v21 = vld [vmem:[#allocation2 + $0xb0] sm:$0xf0]  ;;  %v2696_v16 = vor.u32 %v3524_v12, %v2693_v13  ;;  %v3579_v12 = vld [vmem:[#allocation2 + $0xe4] sm:$0xf] }
  0xab   :  { %873 = vmatpush.bf16.msra.mxu3 %v2776_v15  ;;  %835 = vmatpush.bf16.msra.mxu0 %v2748_v20  ;;  %v2531_v15 = vld [vmem:[%s4039_s0 + $0x10] sm:$0xff]  ;;  %v3519_v20 = vld [vmem:[#allocation2 + $0x4] sm:$0xf] }
  0xac   :  { %v284_v24 = vpop.f32.mrf.mxu2  ;;  %v297_v26 = vpop.f32.mrf.mxu3 }
  0xad   :  { %v303_v25 = vadd.f32 %v284_v24, %v54_v22  ;;  %v260_v27 = vpop.f32.mrf.mxu0  ;;  %v304_v28 = vadd.f32 %v297_v26, %v55_v23  ;;  %v273_v29 = vpop.f32.mrf.mxu1  ;;  %v2755_v22 = vld [vmem:[#allocation2 + $0xa8] sm:$0xf]  ;;  %v3542_v23 = vld [vmem:[#allocation2 + $0xb4] sm:$0xf0]  ;;  %v2752_v24 = vor.u32 %v3539_v19, %v2749_v21  ;;  %v3540_v26 = vld [vmem:[#allocation2 + $0xac] sm:$0xf] }
  0xae   :  { %v2757_v27 = vld [vmem:[#allocation2 + $0xb8] sm:$0xf0]  ;;  %v2731_v29 = vld [vmem:[#allocation2 + $0x80] sm:$0xf]  ;;  %v3521_v19 = vld [vmem:[#allocation2 + $0xc] sm:$0xf0] }
  0xaf   :  { %3722 = vtanh.f32 %v303_v25  ;;  %v3719_v30 = vpop.eup %3718  ;;  %v314_v31 = vmul.f32 0.5, %v304_v28  ;;  %v2756_v25 = vor.u32 %v3542_v23, %v2755_v22  ;;  %v2760_v28 = vor.u32 %v3540_v26, %v2757_v27  ;;  %848 = vmatpush.bf16.msra.mxu1 %v2752_v24  ;;  %v2669_v22 = vld [vmem:[#allocation2 + $0x10] sm:$0xf0]  ;;  %v2675_v23 = vld [vmem:[#allocation2 + $0x8] sm:$0xf] }
  0xb0   :  { %v3721_v33 = vpop.eup %3720  ;;  %v307_v34 = vmul.f32 0.5, %v3719_v30  ;;  %v3537_v30 = vld [vmem:[#allocation2 + $0x8c] sm:$0xf0]  ;;  %v2668_v21 = vor.u32 %v3521_v19, %v2667_v18  ;;  %v3522_v24 = vld [vmem:[#allocation2 + $0x14] sm:$0xf0]  ;;  %v344_v26 = vunpack.c.h.bf16 %v2531_v15  ;;  %v2672_v27 = vor.u32 %v3519_v20, %v2669_v22 }
  0xb1   :  { %v311_v35 = vmul.f32 0.5, %v3721_v33  ;;  %3724 = vtanh.f32 %v314_v31  ;;  %v3535_v31 = vld [vmem:[#allocation2 + $0x84] sm:$0xf]  ;;  %874 = vmatpush.bf16.msra.mxu3 %v2760_v28  ;;  %v2732_v33 = vor.u32 %v3537_v30, %v2731_v29  ;;  %v2676_v28 = vor.u32 %v3522_v24, %v2675_v23  ;;  %v3520_v29 = vld [vmem:[#allocation2 + $0xc] sm:$0xf] }
  0xb2   :  { %v308_v36 = vadd.f32 0.5, %v307_v34  ;;  %v2733_v34 = vld [vmem:[#allocation2 + $0x90] sm:$0xf0]  ;;  %v2677_v30 = vld [vmem:[#allocation2 + $0x18] sm:$0xf0] }
  0xb3   :  { %v312_v38 = vadd.f32 0.5, %v311_v35  ;;  %v2739_v35 = vld [vmem:[#allocation2 + $0x88] sm:$0xf]  ;;  %836 = vmatpush.bf16.msra.mxu0 %v2732_v33  ;;  %v3580_v20 = vld [vmem:[#allocation2 + $0xec] sm:$0xf] }
  0xb4   :  { %v286_v39 = vpop.f32.mrf.mxu2  ;;  %v299_v41 = vpop.f32.mrf.mxu3  ;;  %v2895_v23 = vld [vmem:[#allocation2 + $0xc0] sm:$0xf]  ;;  %v3577_v24 = vld [vmem:[#allocation2 + $0xcc] sm:$0xf0] }
  0xb5   :  { %v3723_v40 = vpop.eup %3722  ;;  %v318_v44 = vmul.f32 %v312_v38, %v45_v37  ;;  %v3536_v39 = vld [vmem:[#allocation2 + $0x8c] sm:$0xf] }
  0xb6   :  { %v319_v42 = vmul.f32 %v3723_v40, %v308_v36  ;;  %v3538_v36 = vld [vmem:[#allocation2 + $0x94] sm:$0xf0]  ;;  %v2741_v40 = vld [vmem:[#allocation2 + $0x98] sm:$0xf0] }
  0xb7   :  { %v3725_v45 = vpop.eup %3724  ;;  %v2740_v38 = vor.u32 %v3538_v36, %v2739_v35  ;;  %v2744_v41 = vor.u32 %v3536_v39, %v2741_v40  ;;  %v911_v40 = vsel %vm2793_vm4, 1, %v3827_v17 }
  0xb8   :  { %v320_v46 = vadd.f32 %v319_v42, %v318_v44  ;;  %v316_v47 = vmul.f32 0.5, %v3725_v45  ;;  %v2715_v42 = vld [vmem:[#allocation2 + $0x60] sm:$0xf]  ;;  %v3531_v44 = vld [vmem:[#allocation2 + $0x64] sm:$0xf]  ;;  %913 = vperm.xlu1 %3716, %v911_v40  }
  0xb9   :  { %875 = vmatpush.bf16.msra.mxu3 %v2744_v41  ;;  %v2716_v45 = vor.u32 %v3533_v43, %v2715_v42  ;;  %v2881_v40 = vld [vmem:[#allocation2 + $0xb0] sm:$0xf0] }
  0xba   :  { %3726 = vtanh.f32 %v320_v46  ;;  %v3901_v48 = vsel %vm330_vm3, %v320_v46, %v45_v37  ;;  %v317_v49 = vadd.f32 0.5, %v316_v47  ;;  %v2736_v37 = vor.u32 %v3535_v31, %v2733_v34  ;;  %v2717_v46 = vld [vmem:[#allocation2 + $0x70] sm:$0xf0]  ;;  %v2723_v47 = vld [vmem:[#allocation2 + $0x68] sm:$0xf] }
  0xbb   :  { %837 = vmatpush.bf16.msra.mxu0 %v2716_v45  ;;  %v2680_v31 = vor.u32 %v3520_v29, %v2677_v30  ;;  %v3578_v29 = vld [vmem:[#allocation2 + $0xd4] sm:$0xf0] }
  0xbc   :  { %849 = vmatpush.bf16.msra.mxu1 %v2736_v37  ;;  %v2532_v37 = vld [vmem:[%s4039_s0 + $0x18] sm:$0xff] }
  0xbd   :  { %v345_v41 = vunpack.c.l.bf16 %v2532_v37  ;;  %v346_v42 = vunpack.c.h.bf16 %v2532_v37  ;;  %v3573_v37 = vld [vmem:[#allocation2 + $0xac] sm:$0xf0] }
  0xbf   :  { %838 = vmatpush.bf16.msra.mxu0 %v2700_v59 }
  0xc0   :  { %v3727_v50 = vpop.eup %3726 }
  0xc1   :  { %v322_v51 = vmul.f32 %v3727_v50, %v317_v49  ;;  %v3534_v49 = vld [vmem:[#allocation2 + $0x74] sm:$0xf0]  ;;  %v2720_v50 = vor.u32 %v3531_v44, %v2717_v46 }
  0xc3   :  { %v3904_v52 = vsel %vm330_vm3, %v322_v51, %v3884_v32  ;;  %v335_v53 = vsel %vm330_vm3, %v322_v51, 0.0  ;;  %v2787_v32 = vld [vmem:[#allocation2 + $0xe8] sm:$0xf]  ;;  %v2724_v51 = vor.u32 %v3534_v49, %v2723_v47  ;;  %850 = vmatpush.bf16.msra.mxu1 %v2720_v50  ;;  %839 = vmatpush.bf16.msra.mxu0 %v2684_v6  ;;  %v1204_v50 = vsel %vm2925_vm5, 1, %v3827_v17 }
  0xc4   :  { %v336_v54 = vpack.c.bf16 %v335_v53, %v335_v53  ;;  %v347_v55 = vpack.c.bf16 %v3904_v52, %v3904_v52  ;;  %v2788_v63 = vor.u32 %v3550_v61, %v2787_v32  ;;  %v3532_v53 = vld [vmem:[#allocation2 + $0x6c] sm:$0xf]  ;;  %v2707_v32 = vld [vmem:[#allocation2 + $0x48] sm:$0xf]  ;;  %v3530_v61 = vld [vmem:[#allocation2 + $0x54] sm:$0xf0]  ;;  %1206 = vperm.xlu1 %3716, %v1204_v50  }
  0xc5   :  { %v3569_v50 = vld [vmem:[#allocation2 + $0x8c] sm:$0xf0] }
  0xc6   :  { %337 = vst [vmem:[%s4044_s5] sm:$0xf] %v336_v54  ;;  %548 = vmatmul.bf16.vlgmr.msrb.gmra.mxu0 %v347_v55  ;;  %561 = vmatmul.bf16.vlgmr.msrb.gmra.mxu1 %v347_v55  ;;  %v2725_v54 = vld [vmem:[#allocation2 + $0x78] sm:$0xf0] }
  0xc7   :  { %574 = vmatmul.bf16.vlgmr.msrb.gmra.mxu2 %v347_v55  ;;  %587 = vmatmul.bf16.vlgmr.msrb.gmra.mxu3 %v347_v55  ;;  %v2728_v55 = vor.u32 %v3532_v53, %v2725_v54 }
  0xc8   :  { %859 = vmatpush.bf16.msra.mxu2 %v2788_v63  ;;  %v2708_v63 = vor.u32 %v3530_v61, %v2707_v32  ;;  %851 = vmatpush.bf16.msra.mxu1 %v2704_v62 }
  0xc9   :  { %876 = vmatpush.bf16.msra.mxu3 %v2728_v55  ;;  %840 = vmatpush.bf16.msra.mxu0 %v2668_v21  ;;  %v2921_v21 = vld [vmem:[#allocation2 + $0xf8] sm:$0xf0] }
  0xca   :  { %v2924_v22 = vor.u32 %v3580_v20, %v2921_v21 }
  0xcc   :  { %860 = vmatpush.bf16.msra.mxu2 %v2772_v11  ;;  %v2692_v11 = vor.u32 %v3526_v9, %v2691_v8  ;;  %852 = vmatpush.bf16.msra.mxu1 %v2688_v10 }
  0xcd   :  { %877 = vmatpush.bf16.msra.mxu3 %v2712_v2 }
  0xd0   :  { %861 = vmatpush.bf16.msra.mxu2 %v2756_v25  ;;  %v343_v25 = vunpack.c.l.bf16 %v2531_v15  ;;  %853 = vmatpush.bf16.msra.mxu1 %v2672_v27  ;;  %v2913_v15 = vld [vmem:[#allocation2 + $0xf0] sm:$0xf0] }
  0xd1   :  { %878 = vmatpush.bf16.msra.mxu3 %v2696_v16  ;;  %v3582_v16 = vld [vmem:[#allocation2 + $0xf4] sm:$0xf0]  ;;  %v2916_v18 = vor.u32 %v3579_v12, %v2913_v15  ;;  %v2897_v27 = vld [vmem:[#allocation2 + $0xd0] sm:$0xf0]  ;;  %v2839_v15 = vld [vmem:[#allocation2 + $0x48] sm:$0xf] }
  0xd4   :  { %862 = vmatpush.bf16.msra.mxu2 %v2740_v38  ;;  %1139 = vmatpush.bf16.msrb.mxu1 %v2916_v18  ;;  %v3560_v18 = vld [vmem:[#allocation2 + $0x4c] sm:$0xf] }
  0xd5   :  { %879 = vmatpush.bf16.msra.mxu3 %v2680_v31 }
  0xd8   :  { %863 = vmatpush.bf16.msra.mxu2 %v2724_v51 }
  0xd9   :  { %1165 = vmatpush.bf16.msrb.mxu3 %v2924_v22  ;;  %v2815_v22 = vld [vmem:[#allocation2 + $0x20] sm:$0xf] }
  0xdc   :  { %864 = vmatpush.bf16.msra.mxu2 %v2708_v63  ;;  %v2376_v63 = vsel %vm3453_vm6, 1, %v3827_v17 }
  0xdd   :  { %2378 = vperm.xlu1 %3716, %v2376_v63   ;;  %v3563_v63 = vld [vmem:[#allocation2 + $0x64] sm:$0xf] }
  0xe0   :  { %865 = vmatpush.bf16.msra.mxu2 %v2692_v11  ;;  %v3581_v11 = vld [vmem:[#allocation2 + $0xec] sm:$0xf0] }
  0xe4   :  { %866 = vmatpush.bf16.msra.mxu2 %v2676_v28  ;;  %v2903_v28 = vld [vmem:[#allocation2 + $0xc8] sm:$0xf] }
  0xe5   :  { %v2904_v31 = vor.u32 %v3578_v29, %v2903_v28  ;;  %v3558_v28 = vld [vmem:[#allocation2 + $0x34] sm:$0xf0] }
 0x143   :  { %v549_v33 = vpop.f32.mrf.mxu0  ;;  %v562_v34 = vpop.f32.mrf.mxu1 }
 0x144   :  { %v592_v35 = vadd.f32 %v549_v33, %v343_v25  ;;  %v593_v36 = vadd.f32 %v562_v34, %v344_v26  ;;  %v3575_v25 = vld [vmem:[#allocation2 + $0xc4] sm:$0xf]  ;;  %v2896_v26 = vor.u32 %v3577_v24, %v2895_v23  ;;  %v3576_v33 = vld [vmem:[#allocation2 + $0xcc] sm:$0xf]  ;;  %v2905_v34 = vld [vmem:[#allocation2 + $0xd8] sm:$0xf0] }
 0x145   :  { %v2900_v30 = vor.u32 %v3575_v25, %v2897_v27  ;;  %v3557_v23 = vld [vmem:[#allocation2 + $0x2c] sm:$0xf0]  ;;  %v3555_v24 = vld [vmem:[#allocation2 + $0x24] sm:$0xf]  ;;  %v2823_v27 = vld [vmem:[#allocation2 + $0x28] sm:$0xf] }
 0x146   :  { %v596_v38 = vmul.f32 0.5, %v592_v35  ;;  %v600_v39 = vmul.f32 0.5, %v593_v36  ;;  %v2908_v35 = vor.u32 %v3576_v33, %v2905_v34  ;;  %v2879_v36 = vld [vmem:[#allocation2 + $0xa0] sm:$0xf]  ;;  %v2816_v25 = vor.u32 %v3557_v23, %v2815_v22  ;;  %v2825_v33 = vld [vmem:[#allocation2 + $0x38] sm:$0xf0] }
 0x147   :  { %1140 = vmatpush.bf16.msrb.mxu1 %v2900_v30  ;;  %v2824_v30 = vor.u32 %v3558_v28, %v2823_v27  ;;  %v2663_v34 = vld [vmem:[%s4039_s0 + $0x20] sm:$0xff]  ;;  %v3613_v27 = vld [vmem:[#allocation2 + $0xec] sm:$0xf0] }
 0x148   :  { %3728 = vtanh.f32 %v596_v38  ;;  %v3571_v38 = vld [vmem:[#allocation2 + $0xa4] sm:$0xf]  ;;  %1166 = vmatpush.bf16.msrb.mxu3 %v2908_v35 }
 0x149   :  { %3730 = vtanh.f32 %v600_v39  ;;  %v2880_v39 = vor.u32 %v3573_v37, %v2879_v36  ;;  %v2799_v36 = vld [vmem:[#allocation2] sm:$0xf]  ;;  %v3553_v37 = vld [vmem:[#allocation2 + $0xc] sm:$0xf0]  ;;  %v3611_v28 = vld [vmem:[#allocation2 + $0xe4] sm:$0xf] }
 0x14a   :  { %v575_v43 = vpop.f32.mrf.mxu2  ;;  %v588_v44 = vpop.f32.mrf.mxu3 }
 0x14b   :  { %v594_v45 = vadd.f32 %v575_v43, %v345_v41  ;;  %v595_v46 = vadd.f32 %v588_v44, %v346_v42  ;;  %v551_v47 = vpop.f32.mrf.mxu0  ;;  %v564_v49 = vpop.f32.mrf.mxu1  ;;  %v2887_v41 = vld [vmem:[#allocation2 + $0xa8] sm:$0xf]  ;;  %v3574_v42 = vld [vmem:[#allocation2 + $0xb4] sm:$0xf0]  ;;  %v2884_v43 = vor.u32 %v3571_v38, %v2881_v40  ;;  %v3551_v38 = vld [vmem:[#allocation2 + $0x4] sm:$0xf] }
 0x14c   :  { %v2888_v44 = vor.u32 %v3574_v42, %v2887_v41  ;;  %v2863_v49 = vld [vmem:[#allocation2 + $0x80] sm:$0xf]  ;;  %v2801_v40 = vld [vmem:[#allocation2 + $0x10] sm:$0xf0]  ;;  %v2807_v41 = vld [vmem:[#allocation2 + $0x8] sm:$0xf] }
 0x14d   :  { %3732 = vtanh.f32 %v594_v45  ;;  %v605_v51 = vmul.f32 0.5, %v595_v46  ;;  %v3572_v45 = vld [vmem:[#allocation2 + $0xac] sm:$0xf]  ;;  %v2889_v46 = vld [vmem:[#allocation2 + $0xb8] sm:$0xf0]  ;;  %1141 = vmatpush.bf16.msrb.mxu1 %v2884_v43  ;;  %v636_v43 = vunpack.c.l.bf16 %v2663_v34 }
 0x14e   :  { %v3729_v53 = vpop.eup %3728  ;;  %v2892_v47 = vor.u32 %v3572_v45, %v2889_v46  ;;  %v3554_v42 = vld [vmem:[#allocation2 + $0x14] sm:$0xf0]  ;;  %v2804_v45 = vor.u32 %v3551_v38, %v2801_v40  ;;  %v3027_v38 = vld [vmem:[#allocation2 + $0xc0] sm:$0xf]  ;;  %v3607_v40 = vld [vmem:[#allocation2 + $0xc4] sm:$0xf] }
 0x14f   :  { %v3731_v54 = vpop.eup %3730  ;;  %v598_v55 = vmul.f32 0.5, %v3729_v53  ;;  %3734 = vtanh.f32 %v605_v51  ;;  %v3567_v51 = vld [vmem:[#allocation2 + $0x84] sm:$0xf]  ;;  %v2864_v53 = vor.u32 %v3569_v50, %v2863_v49  ;;  %v2808_v46 = vor.u32 %v3554_v42, %v2807_v41  ;;  %v2809_v49 = vld [vmem:[#allocation2 + $0x18] sm:$0xf0] }
 0x150   :  { %v602_v56 = vmul.f32 0.5, %v3731_v54  ;;  %1167 = vmatpush.bf16.msrb.mxu3 %v2892_v47  ;;  %v2865_v54 = vld [vmem:[#allocation2 + $0x90] sm:$0xf0]  ;;  %v3552_v47 = vld [vmem:[#allocation2 + $0xc] sm:$0xf] }
 0x151   :  { %v599_v57 = vadd.f32 0.5, %v598_v55  ;;  %v2871_v55 = vld [vmem:[#allocation2 + $0x88] sm:$0xf]  ;;  %v2812_v50 = vor.u32 %v3552_v47, %v2809_v49  ;;  %v3029_v42 = vld [vmem:[#allocation2 + $0xd0] sm:$0xf0] }
 0x152   :  { %v603_v58 = vadd.f32 0.5, %v602_v56  ;;  %v577_v59 = vpop.f32.mrf.mxu2  ;;  %v590_v60 = vpop.f32.mrf.mxu3  ;;  %v3570_v56 = vld [vmem:[#allocation2 + $0x94] sm:$0xf0]  ;;  %v3608_v47 = vld [vmem:[#allocation2 + $0xcc] sm:$0xf] }
 0x153   :  { %v3733_v32 = vpop.eup %3732  ;;  %v3568_v59 = vld [vmem:[#allocation2 + $0x8c] sm:$0xf]  ;;  %v2873_v60 = vld [vmem:[#allocation2 + $0x98] sm:$0xf0] }
 0x154   :  { %v609_v61 = vmul.f32 %v603_v58, %v3901_v48  ;;  %v610_v62 = vmul.f32 %v3733_v32, %v599_v57  ;;  %v2868_v57 = vor.u32 %v3567_v51, %v2865_v54  ;;  %v2872_v58 = vor.u32 %v3570_v56, %v2871_v55  ;;  %v2664_v56 = vld [vmem:[%s4039_s0 + $0x28] sm:$0xff]  ;;  %v3037_v49 = vld [vmem:[#allocation2 + $0xd8] sm:$0xf0] }
 0x155   :  { %v3735_v0 = vpop.eup %3734  ;;  %v2876_v32 = vor.u32 %v3568_v59, %v2873_v60  ;;  %v638_v59 = vunpack.c.l.bf16 %v2664_v56  ;;  %v639_v60 = vunpack.c.h.bf16 %v2664_v56  ;;  %v3013_v56 = vld [vmem:[#allocation2 + $0xb0] sm:$0xf0] }
 0x156   :  { %v611_v2 = vadd.f32 %v610_v62, %v609_v61  ;;  %v607_v4 = vmul.f32 0.5, %v3735_v0  ;;  %1142 = vmatpush.bf16.msrb.mxu1 %v2868_v57  ;;  %v2847_v61 = vld [vmem:[#allocation2 + $0x60] sm:$0xf]  ;;  %v3565_v62 = vld [vmem:[#allocation2 + $0x6c] sm:$0xf0] }
 0x157   :  { %1168 = vmatpush.bf16.msrb.mxu3 %v2876_v32  ;;  %v2848_v0 = vor.u32 %v3565_v62, %v2847_v61 }
 0x158   :  { %3736 = vtanh.f32 %v611_v2  ;;  %v3925_v3 = vsel %vm622_vm7, %v611_v2, %v3901_v48  ;;  %v608_v14 = vadd.f32 0.5, %v607_v4  ;;  %v2911_v48 = vld [vmem:[#allocation2 + $0xe0] sm:$0xf]  ;;  %v2855_v2 = vld [vmem:[#allocation2 + $0x68] sm:$0xf] }
 0x159   :  { %v2912_v13 = vor.u32 %v3581_v11, %v2911_v48  ;;  %v3566_v4 = vld [vmem:[#allocation2 + $0x74] sm:$0xf0]  ;;  %v3561_v48 = vld [vmem:[#allocation2 + $0x4c] sm:$0xf0]  ;;  %v3559_v11 = vld [vmem:[#allocation2 + $0x44] sm:$0xf] }
 0x15b   :  { %1126 = vmatpush.bf16.msrb.mxu0 %v2912_v13  ;;  %v2833_v13 = vld [vmem:[#allocation2 + $0x50] sm:$0xf0] }
 0x15e   :  { %v3737_v5 = vpop.eup %3736 }
 0x15f   :  { %v613_v6 = vmul.f32 %v3737_v5, %v608_v14  ;;  %1127 = vmatpush.bf16.msrb.mxu0 %v2896_v26  ;;  %v2852_v14 = vor.u32 %v3563_v63, %v2849_v1  ;;  %v2856_v5 = vor.u32 %v3566_v4, %v2855_v2  ;;  %v2817_v26 = vld [vmem:[#allocation2 + $0x30] sm:$0xf0] }
 0x160   :  { %v2820_v29 = vor.u32 %v3555_v24, %v2817_v26 }
 0x161   :  { %v3928_v7 = vsel %vm622_vm7, %v613_v6, %v3904_v52  ;;  %v627_v8 = vsel %vm622_vm7, %v613_v6, 0.0  ;;  %v2919_v52 = vld [vmem:[#allocation2 + $0xe8] sm:$0xf]  ;;  %v3564_v6 = vld [vmem:[#allocation2 + $0x6c] sm:$0xf]  ;;  %1143 = vmatpush.bf16.msrb.mxu1 %v2852_v14 }
 0x162   :  { %v628_v9 = vpack.c.bf16 %v627_v8, %v627_v8  ;;  %v640_v10 = vpack.c.bf16 %v3928_v7, %v3928_v7  ;;  %v2920_v19 = vor.u32 %v3582_v16, %v2919_v52  ;;  %v2857_v8 = vld [vmem:[#allocation2 + $0x78] sm:$0xf0]  ;;  %v2836_v52 = vor.u32 %v3559_v11, %v2833_v13  ;;  %v3562_v16 = vld [vmem:[#allocation2 + $0x54] sm:$0xf0]  ;;  %v914_v13 = vpop.permute.xlu1 %913 }
 0x163   :  { %1128 = vmatpush.bf16.msrb.mxu0 %v2880_v39  ;;  %v2840_v20 = vor.u32 %v3562_v16, %v2839_v15  ;;  %v2800_v39 = vor.u32 %v3553_v37, %v2799_v36  ;;  %vm915_vm8 = vcmp.eq.s32.totalorder %v914_v13, 1  ;;  %v3053_v36 = vld [vmem:[#allocation2 + $0xf8] sm:$0xf0]  ;;  %v3595_v13 = vld [vmem:[#allocation2 + $0x64] sm:$0xf] }
 0x164   :  { %2662 = vst [vmem:[%s4044_s5 + $0x4] sm:$0xf] %v628_v9  ;;  %841 = vmatmul.bf16.vlgmr.msra.gmra.mxu0 %v640_v10  ;;  %854 = vmatmul.bf16.vlgmr.msra.gmra.mxu1 %v640_v10  ;;  %v2860_v9 = vor.u32 %v3564_v6, %v2857_v8 }
 0x165   :  { %867 = vmatmul.bf16.vlgmr.msra.gmra.mxu2 %v640_v10  ;;  %880 = vmatmul.bf16.vlgmr.msra.gmra.mxu3 %v640_v10  ;;  %v2831_v10 = vld [vmem:[#allocation2 + $0x40] sm:$0xf] }
 0x166   :  { %1152 = vmatpush.bf16.msrb.mxu2 %v2920_v19  ;;  %1169 = vmatpush.bf16.msrb.mxu3 %v2860_v9  ;;  %v2832_v12 = vor.u32 %v3561_v48, %v2831_v10  ;;  %v2841_v19 = vld [vmem:[#allocation2 + $0x58] sm:$0xf0] }
 0x167   :  { %1129 = vmatpush.bf16.msrb.mxu0 %v2864_v53  ;;  %v2844_v21 = vor.u32 %v3560_v18, %v2841_v19  ;;  %1144 = vmatpush.bf16.msrb.mxu1 %v2836_v52 }
 0x16a   :  { %1153 = vmatpush.bf16.msrb.mxu2 %v2904_v31  ;;  %1170 = vmatpush.bf16.msrb.mxu3 %v2844_v21  ;;  %v3556_v31 = vld [vmem:[#allocation2 + $0x2c] sm:$0xf] }
 0x16b   :  { %1130 = vmatpush.bf16.msrb.mxu0 %v2848_v0  ;;  %v2828_v35 = vor.u32 %v3556_v31, %v2825_v33  ;;  %1145 = vmatpush.bf16.msrb.mxu1 %v2820_v29  ;;  %v3614_v31 = vld [vmem:[#allocation2 + $0xf4] sm:$0xf0] }
 0x16e   :  { %1154 = vmatpush.bf16.msrb.mxu2 %v2888_v44  ;;  %1171 = vmatpush.bf16.msrb.mxu3 %v2828_v35  ;;  %v637_v44 = vunpack.c.h.bf16 %v2663_v34  ;;  %v3612_v35 = vld [vmem:[#allocation2 + $0xec] sm:$0xf] }
 0x16f   :  { %1131 = vmatpush.bf16.msrb.mxu0 %v2832_v12  ;;  %1146 = vmatpush.bf16.msrb.mxu1 %v2804_v45  ;;  %v3056_v37 = vor.u32 %v3612_v35, %v3053_v36  ;;  %v3032_v45 = vor.u32 %v3607_v40, %v3029_v42  ;;  %v2973_v35 = vld [vmem:[#allocation2 + $0x58] sm:$0xf0]  ;;  %v2955_v42 = vld [vmem:[#allocation2 + $0x28] sm:$0xf] }
 0x172   :  { %1155 = vmatpush.bf16.msrb.mxu2 %v2872_v58  ;;  %1172 = vmatpush.bf16.msrb.mxu3 %v2812_v50  ;;  %v3040_v50 = vor.u32 %v3608_v47, %v3037_v49  ;;  %v2957_v47 = vld [vmem:[#allocation2 + $0x38] sm:$0xf0]  ;;  %v2795_v49 = vld [vmem:[%s4039_s0 + $0x30] sm:$0xff] }
 0x173   :  { %1132 = vmatpush.bf16.msrb.mxu0 %v2816_v25 }
 0x176   :  { %1156 = vmatpush.bf16.msrb.mxu2 %v2856_v5  ;;  %1458 = vmatpush.bf16.msra.mxu3 %v3056_v37  ;;  %v2947_v37 = vld [vmem:[#allocation2 + $0x20] sm:$0xf] }
 0x177   :  { %1133 = vmatpush.bf16.msrb.mxu0 %v2800_v39  ;;  %v3609_v39 = vld [vmem:[#allocation2 + $0xcc] sm:$0xf0] }
 0x178   :  { %v3028_v41 = vor.u32 %v3609_v39, %v3027_v38  ;;  %v3589_v38 = vld [vmem:[#allocation2 + $0x2c] sm:$0xf0]  ;;  %v3587_v39 = vld [vmem:[#allocation2 + $0x24] sm:$0xf] }
 0x179   :  { %v2948_v40 = vor.u32 %v3589_v38, %v2947_v37 }
 0x17a   :  { %1157 = vmatpush.bf16.msrb.mxu2 %v2840_v20  ;;  %1459 = vmatpush.bf16.msra.mxu3 %v3040_v50 }
 0x17e   :  { %1158 = vmatpush.bf16.msrb.mxu2 %v2824_v30  ;;  %v3045_v30 = vld [vmem:[#allocation2 + $0xf0] sm:$0xf0] }
 0x17f   :  { %v3048_v33 = vor.u32 %v3611_v28, %v3045_v30  ;;  %v2971_v30 = vld [vmem:[#allocation2 + $0x48] sm:$0xf] }
 0x181   :  { %1432 = vmatpush.bf16.msra.mxu1 %v3048_v33 }
 0x182   :  { %1159 = vmatpush.bf16.msrb.mxu2 %v2808_v46 }
 0x185   :  { %1433 = vmatpush.bf16.msra.mxu1 %v3032_v45 }
 0x1e1   :  { %v842_v51 = vpop.f32.mrf.mxu0  ;;  %v855_v53 = vpop.f32.mrf.mxu1 }
 0x1e2   :  { %v885_v54 = vadd.f32 %v842_v51, %v636_v43  ;;  %v886_v55 = vadd.f32 %v855_v53, %v637_v44  ;;  %v3035_v43 = vld [vmem:[#allocation2 + $0xc8] sm:$0xf]  ;;  %v3610_v44 = vld [vmem:[#allocation2 + $0xd4] sm:$0xf0]  ;;  %v3011_v51 = vld [vmem:[#allocation2 + $0xa0] sm:$0xf] }
 0x1e3   :  { %v3036_v46 = vor.u32 %v3610_v44, %v3035_v43  ;;  %v3605_v53 = vld [vmem:[#allocation2 + $0xac] sm:$0xf0]  ;;  %v3590_v43 = vld [vmem:[#allocation2 + $0x34] sm:$0xf0] }
 0x1e4   :  { %v889_v57 = vmul.f32 0.5, %v885_v54  ;;  %v893_v58 = vmul.f32 0.5, %v886_v55  ;;  %v3603_v54 = vld [vmem:[#allocation2 + $0xa4] sm:$0xf]  ;;  %v3012_v55 = vor.u32 %v3605_v53, %v3011_v51  ;;  %v2956_v45 = vor.u32 %v3590_v43, %v2955_v42  ;;  %v2931_v51 = vld [vmem:[#allocation2] sm:$0xf] }
 0x1e5   :  { %v3585_v53 = vld [vmem:[#allocation2 + $0xc] sm:$0xf0] }
 0x1e6   :  { %3738 = vtanh.f32 %v889_v57  ;;  %v3019_v57 = vld [vmem:[#allocation2 + $0xa8] sm:$0xf] }
 0x1e7   :  { %3740 = vtanh.f32 %v893_v58  ;;  %v3606_v58 = vld [vmem:[#allocation2 + $0xb4] sm:$0xf0] }
 0x1e8   :  { %v868_v32 = vpop.f32.mrf.mxu2  ;;  %v881_v61 = vpop.f32.mrf.mxu3 }
 0x1e9   :  { %v887_v62 = vadd.f32 %v868_v32, %v638_v59  ;;  %v888_v63 = vadd.f32 %v881_v61, %v639_v60  ;;  %v844_v0 = vpop.f32.mrf.mxu0  ;;  %v857_v1 = vpop.f32.mrf.mxu1  ;;  %v3016_v59 = vor.u32 %v3603_v54, %v3013_v56  ;;  %v3020_v60 = vor.u32 %v3606_v58, %v3019_v57  ;;  %v3604_v32 = vld [vmem:[#allocation2 + $0xac] sm:$0xf]  ;;  %v3021_v61 = vld [vmem:[#allocation2 + $0xb8] sm:$0xf0]  ;;  %v3583_v54 = vld [vmem:[#allocation2 + $0x4] sm:$0xf] }
 0x1ea   :  { %v3601_v0 = vld [vmem:[#allocation2 + $0x8c] sm:$0xf0]  ;;  %v3599_v1 = vld [vmem:[#allocation2 + $0x84] sm:$0xf]  ;;  %v2933_v56 = vld [vmem:[#allocation2 + $0x10] sm:$0xf0] }
 0x1eb   :  { %3742 = vtanh.f32 %v887_v62  ;;  %v898_v2 = vmul.f32 0.5, %v888_v63  ;;  %v3024_v62 = vor.u32 %v3604_v32, %v3021_v61  ;;  %1434 = vmatpush.bf16.msra.mxu1 %v3016_v59  ;;  %v2995_v63 = vld [vmem:[#allocation2 + $0x80] sm:$0xf]  ;;  %v2939_v57 = vld [vmem:[#allocation2 + $0x8] sm:$0xf]  ;;  %v929_v59 = vunpack.c.l.bf16 %v2795_v49 }
 0x1ec   :  { %v3739_v4 = vpop.eup %3738  ;;  %v3586_v58 = vld [vmem:[#allocation2 + $0x14] sm:$0xf0]  ;;  %v2936_v32 = vor.u32 %v3583_v54, %v2933_v56  ;;  %v3185_v54 = vld [vmem:[#allocation2 + $0xf8] sm:$0xf0]  ;;  %v3159_v56 = vld [vmem:[#allocation2 + $0xc0] sm:$0xf] }
 0x1ed   :  { %v3741_v14 = vpop.eup %3740  ;;  %v891_v5 = vmul.f32 0.5, %v3739_v4  ;;  %3744 = vtanh.f32 %v898_v2  ;;  %1460 = vmatpush.bf16.msra.mxu3 %v3024_v62  ;;  %v2996_v2 = vor.u32 %v3601_v0, %v2995_v63  ;;  %v2997_v4 = vld [vmem:[#allocation2 + $0x90] sm:$0xf0]  ;;  %v2940_v61 = vor.u32 %v3586_v58, %v2939_v57  ;;  %v3584_v62 = vld [vmem:[#allocation2 + $0xc] sm:$0xf] }
 0x1ee   :  { %v895_v6 = vmul.f32 0.5, %v3741_v14  ;;  %v3003_v14 = vld [vmem:[#allocation2 + $0x88] sm:$0xf]  ;;  %v2941_v63 = vld [vmem:[#allocation2 + $0x18] sm:$0xf0] }
 0x1ef   :  { %v892_v8 = vadd.f32 0.5, %v891_v5  ;;  %v3602_v5 = vld [vmem:[#allocation2 + $0x94] sm:$0xf0]  ;;  %v2944_v0 = vor.u32 %v3584_v62, %v2941_v63  ;;  %v3641_v57 = vld [vmem:[#allocation2 + $0xcc] sm:$0xf0] }
 0x1f0   :  { %v896_v9 = vadd.f32 0.5, %v895_v6  ;;  %v870_v10 = vpop.f32.mrf.mxu2  ;;  %v883_v48 = vpop.f32.mrf.mxu3  ;;  %v3000_v6 = vor.u32 %v3599_v1, %v2997_v4  ;;  %v3639_v58 = vld [vmem:[#allocation2 + $0xc4] sm:$0xf] }
 0x1f1   :  { %v3743_v11 = vpop.eup %3742  ;;  %v3005_v10 = vld [vmem:[#allocation2 + $0x98] sm:$0xf0] }
 0x1f2   :  { %v903_v12 = vmul.f32 %v3743_v11, %v892_v8  ;;  %v902_v15 = vmul.f32 %v896_v9, %v3925_v3  ;;  %v3004_v8 = vor.u32 %v3602_v5, %v3003_v14  ;;  %v3600_v9 = vld [vmem:[#allocation2 + $0x8c] sm:$0xf]  ;;  %1435 = vmatpush.bf16.msra.mxu1 %v3000_v6  ;;  %v2979_v11 = vld [vmem:[#allocation2 + $0x60] sm:$0xf]  ;;  %v2796_v5 = vld [vmem:[%s4039_s0 + $0x38] sm:$0xff] }
 0x1f3   :  { %v3745_v52 = vpop.eup %3744  ;;  %v3008_v48 = vor.u32 %v3600_v9, %v3005_v10  ;;  %v1494_v6 = vld [vmem:[%s4043_s4] sm:$0xff]  ;;  %v931_v10 = vunpack.c.l.bf16 %v2796_v5 }
 0x1f4   :  { %v904_v16 = vadd.f32 %v903_v12, %v902_v15  ;;  %v900_v19 = vmul.f32 0.5, %v3745_v52  ;;  %v3597_v12 = vld [vmem:[#allocation2 + $0x6c] sm:$0xf0]  ;;  %v2981_v52 = vld [vmem:[#allocation2 + $0x70] sm:$0xf0]  ;;  %vm3057_vm9 = vcmp.gt.s32.totalorder %v1494_v6, 4 }
 0x1f5   :  { %1461 = vmatpush.bf16.msra.mxu3 %v3008_v48  ;;  %v2980_v15 = vor.u32 %v3597_v12, %v2979_v11  ;;  %v932_v48 = vunpack.c.h.bf16 %v2796_v5  ;;  %v1497_v11 = vsel %vm3057_vm9, 1, %v3827_v17  ;;  %vm3189_vm10 = vcmp.gt.s32.totalorder %v1494_v6, 5  ;;  %v3635_v5 = vld [vmem:[#allocation2 + $0xa4] sm:$0xf] }
 0x1f6   :  { %3746 = vtanh.f32 %v904_v16  ;;  %v3943_v18 = vsel %vm915_vm8, %v904_v16, %v3925_v3  ;;  %v901_v20 = vadd.f32 0.5, %v900_v19  ;;  %v3043_v3 = vld [vmem:[#allocation2 + $0xe0] sm:$0xf]  ;;  %v2987_v16 = vld [vmem:[#allocation2 + $0x68] sm:$0xf]  ;;  %1499 = vperm.xlu2 %3717, %v1497_v11  }
 0x1f7   :  { %v3044_v29 = vor.u32 %v3613_v27, %v3043_v3  ;;  %v3598_v19 = vld [vmem:[#allocation2 + $0x74] sm:$0xf0]  ;;  %v3593_v3 = vld [vmem:[#allocation2 + $0x4c] sm:$0xf0]  ;;  %v3591_v27 = vld [vmem:[#allocation2 + $0x44] sm:$0xf] }
 0x1f9   :  { %1419 = vmatpush.bf16.msra.mxu0 %v3044_v29  ;;  %v2965_v29 = vld [vmem:[#allocation2 + $0x50] sm:$0xf0] }
 0x1fc   :  { %v3747_v21 = vpop.eup %3746 }
 0x1fd   :  { %v906_v22 = vmul.f32 %v3747_v21, %v901_v20  ;;  %1420 = vmatpush.bf16.msra.mxu0 %v3028_v41  ;;  %v2984_v20 = vor.u32 %v3595_v13, %v2981_v52  ;;  %v2988_v21 = vor.u32 %v3598_v19, %v2987_v16  ;;  %v2949_v41 = vld [vmem:[#allocation2 + $0x30] sm:$0xf0] }
 0x1fe   :  { %v2952_v44 = vor.u32 %v3587_v39, %v2949_v41 }
 0x1ff   :  { %v3946_v23 = vsel %vm915_vm8, %v906_v22, %v3928_v7  ;;  %v920_v24 = vsel %vm915_vm8, %v906_v22, 0.0  ;;  %v3051_v7 = vld [vmem:[#allocation2 + $0xe8] sm:$0xf]  ;;  %v3596_v22 = vld [vmem:[#allocation2 + $0x6c] sm:$0xf]  ;;  %1436 = vmatpush.bf16.msra.mxu1 %v2984_v20 }
 0x200   :  { %v921_v25 = vpack.c.bf16 %v920_v24, %v920_v24  ;;  %v933_v26 = vpack.c.bf16 %v3946_v23, %v3946_v23  ;;  %v3052_v34 = vor.u32 %v3614_v31, %v3051_v7  ;;  %v2989_v24 = vld [vmem:[#allocation2 + $0x78] sm:$0xf0]  ;;  %v3594_v7 = vld [vmem:[#allocation2 + $0x54] sm:$0xf0]  ;;  %v2968_v31 = vor.u32 %v3591_v27, %v2965_v29 }
 0x201   :  { %1421 = vmatpush.bf16.msra.mxu0 %v3012_v55  ;;  %v2972_v33 = vor.u32 %v3594_v7, %v2971_v30  ;;  %v2932_v55 = vor.u32 %v3585_v53, %v2931_v51  ;;  %v3644_v53 = vld [vmem:[#allocation2 + $0xec] sm:$0xf] }
 0x202   :  { %2794 = vst [vmem:[%s4044_s5 + $0x8] sm:$0xf] %v921_v25  ;;  %1134 = vmatmul.bf16.vlgmr.msrb.gmra.mxu0 %v933_v26  ;;  %1147 = vmatmul.bf16.vlgmr.msrb.gmra.mxu1 %v933_v26  ;;  %v2992_v25 = vor.u32 %v3596_v22, %v2989_v24 }
 0x203   :  { %1160 = vmatmul.bf16.vlgmr.msrb.gmra.mxu2 %v933_v26  ;;  %1173 = vmatmul.bf16.vlgmr.msrb.gmra.mxu3 %v933_v26  ;;  %v2963_v26 = vld [vmem:[#allocation2 + $0x40] sm:$0xf] }
 0x204   :  { %1445 = vmatpush.bf16.msra.mxu2 %v3052_v34  ;;  %1462 = vmatpush.bf16.msra.mxu3 %v2992_v25  ;;  %v2964_v28 = vor.u32 %v3593_v3, %v2963_v26  ;;  %v3592_v34 = vld [vmem:[#allocation2 + $0x4c] sm:$0xf] }
 0x205   :  { %1422 = vmatpush.bf16.msra.mxu0 %v2996_v2  ;;  %v2976_v36 = vor.u32 %v3592_v34, %v2973_v35  ;;  %1437 = vmatpush.bf16.msra.mxu1 %v2968_v31  ;;  %v1207_v34 = vpop.permute.xlu1 %1206 }
 0x206   :  { %vm1208_vm11 = vcmp.eq.s32.totalorder %v1207_v34, 1  ;;  %v3119_v34 = vld [vmem:[#allocation2 + $0x68] sm:$0xf] }
 0x208   :  { %1446 = vmatpush.bf16.msra.mxu2 %v3036_v46  ;;  %1463 = vmatpush.bf16.msra.mxu3 %v2976_v36  ;;  %v3588_v46 = vld [vmem:[#allocation2 + $0x2c] sm:$0xf] }
 0x209   :  { %1423 = vmatpush.bf16.msra.mxu0 %v2980_v15  ;;  %v2960_v50 = vor.u32 %v3588_v46, %v2957_v47  ;;  %1438 = vmatpush.bf16.msra.mxu1 %v2952_v44  ;;  %v3645_v44 = vld [vmem:[#allocation2 + $0xec] sm:$0xf0]  ;;  %v3177_v47 = vld [vmem:[#allocation2 + $0xf0] sm:$0xf0] }
 0x20c   :  { %1447 = vmatpush.bf16.msra.mxu2 %v3020_v60  ;;  %1464 = vmatpush.bf16.msra.mxu3 %v2960_v50  ;;  %v930_v60 = vunpack.c.h.bf16 %v2795_v49  ;;  %v3646_v49 = vld [vmem:[#allocation2 + $0xf4] sm:$0xf0] }
 0x20d   :  { %1424 = vmatpush.bf16.msra.mxu0 %v2964_v28  ;;  %1439 = vmatpush.bf16.msra.mxu1 %v2936_v32  ;;  %v3167_v32 = vld [vmem:[#allocation2 + $0xc8] sm:$0xf] }
 0x210   :  { %1448 = vmatpush.bf16.msra.mxu2 %v3004_v8  ;;  %1465 = vmatpush.bf16.msra.mxu3 %v2944_v0  ;;  %v3640_v0 = vld [vmem:[#allocation2 + $0xcc] sm:$0xf] }
 0x211   :  { %1425 = vmatpush.bf16.msra.mxu0 %v2948_v40 }
 0x214   :  { %1449 = vmatpush.bf16.msra.mxu2 %v2988_v21  ;;  %v1790_v21 = vsel %vm3189_vm10, 1, %v3827_v17 }
 0x215   :  { %1426 = vmatpush.bf16.msra.mxu0 %v2932_v55  ;;  %1792 = vperm.xlu2 %3717, %v1790_v21   ;;  %v3188_v55 = vor.u32 %v3644_v53, %v3185_v54  ;;  %v3129_v21 = vld [vmem:[#allocation2 + $0x90] sm:$0xf0]  ;;  %v3079_v54 = vld [vmem:[#allocation2 + $0x20] sm:$0xf] }
 0x217   :  { %1751 = vmatpush.bf16.msrb.mxu3 %v3188_v55  ;;  %v3621_v55 = vld [vmem:[#allocation2 + $0x2c] sm:$0xf0] }
 0x218   :  { %1450 = vmatpush.bf16.msra.mxu2 %v2972_v33 }
 0x21c   :  { %1451 = vmatpush.bf16.msra.mxu2 %v2956_v45  ;;  %v3643_v45 = vld [vmem:[#allocation2 + $0xe4] sm:$0xf] }
 0x21d   :  { %v3180_v50 = vor.u32 %v3643_v45, %v3177_v47  ;;  %v3097_v45 = vld [vmem:[#allocation2 + $0x50] sm:$0xf0] }
 0x21f   :  { %1725 = vmatpush.bf16.msrb.mxu1 %v3180_v50  ;;  %v3105_v50 = vld [vmem:[#allocation2 + $0x58] sm:$0xf0] }
 0x220   :  { %1452 = vmatpush.bf16.msra.mxu2 %v2940_v61  ;;  %v3642_v61 = vld [vmem:[#allocation2 + $0xd4] sm:$0xf0] }
 0x221   :  { %v3168_v63 = vor.u32 %v3642_v61, %v3167_v32 }
 0x27f   :  { %v1135_v1 = vpop.f32.mrf.mxu0  ;;  %v1148_v2 = vpop.f32.mrf.mxu1 }
 0x280   :  { %v1178_v4 = vadd.f32 %v1135_v1, %v929_v59  ;;  %v1179_v14 = vadd.f32 %v1148_v2, %v930_v60  ;;  %v3160_v59 = vor.u32 %v3641_v57, %v3159_v56  ;;  %v3161_v60 = vld [vmem:[#allocation2 + $0xd0] sm:$0xf0]  ;;  %v3169_v1 = vld [vmem:[#allocation2 + $0xd8] sm:$0xf0]  ;;  %v3619_v56 = vld [vmem:[#allocation2 + $0x24] sm:$0xf]  ;;  %v3080_v57 = vor.u32 %v3621_v55, %v3079_v54 }
 0x281   :  { %v3164_v62 = vor.u32 %v3639_v58, %v3161_v60  ;;  %v3172_v2 = vor.u32 %v3640_v0, %v3169_v1  ;;  %v3081_v58 = vld [vmem:[#allocation2 + $0x30] sm:$0xf0]  ;;  %v3622_v60 = vld [vmem:[#allocation2 + $0x34] sm:$0xf0]  ;;  %v2927_v0 = vld [vmem:[%s4039_s0 + $0x40] sm:$0xff] }
 0x282   :  { %v1182_v8 = vmul.f32 0.5, %v1178_v4  ;;  %v1186_v9 = vmul.f32 0.5, %v1179_v14  ;;  %v3143_v4 = vld [vmem:[#allocation2 + $0xa0] sm:$0xf]  ;;  %v3637_v14 = vld [vmem:[#allocation2 + $0xac] sm:$0xf0]  ;;  %v3084_v32 = vor.u32 %v3619_v56, %v3081_v58 }
 0x283   :  { %1726 = vmatpush.bf16.msrb.mxu1 %v3164_v62  ;;  %1752 = vmatpush.bf16.msrb.mxu3 %v3172_v2  ;;  %v3144_v6 = vor.u32 %v3637_v14, %v3143_v4  ;;  %v3620_v62 = vld [vmem:[#allocation2 + $0x2c] sm:$0xf]  ;;  %v3063_v2 = vld [vmem:[#allocation2] sm:$0xf]  ;;  %v3617_v4 = vld [vmem:[#allocation2 + $0xc] sm:$0xf0] }
 0x284   :  { %3748 = vtanh.f32 %v1182_v8  ;;  %v3145_v8 = vld [vmem:[#allocation2 + $0xb0] sm:$0xf0]  ;;  %v3615_v14 = vld [vmem:[#allocation2 + $0x4] sm:$0xf]  ;;  %v3677_v58 = vld [vmem:[#allocation2 + $0xec] sm:$0xf0] }
 0x285   :  { %3750 = vtanh.f32 %v1186_v9  ;;  %v3151_v9 = vld [vmem:[#allocation2 + $0xa8] sm:$0xf] }
 0x286   :  { %v1161_v12 = vpop.f32.mrf.mxu2  ;;  %v1174_v13 = vpop.f32.mrf.mxu3 }
 0x287   :  { %v1180_v15 = vadd.f32 %v1161_v12, %v931_v10  ;;  %v1181_v52 = vadd.f32 %v1174_v13, %v932_v48  ;;  %v1137_v16 = vpop.f32.mrf.mxu0  ;;  %v1150_v19 = vpop.f32.mrf.mxu1  ;;  %v3638_v10 = vld [vmem:[#allocation2 + $0xb4] sm:$0xf0]  ;;  %v3148_v48 = vor.u32 %v3635_v5, %v3145_v8  ;;  %v3636_v12 = vld [vmem:[#allocation2 + $0xac] sm:$0xf]  ;;  %v3153_v13 = vld [vmem:[#allocation2 + $0xb8] sm:$0xf0]  ;;  %v3064_v5 = vor.u32 %v3617_v4, %v3063_v2 }
 0x288   :  { %v3152_v11 = vor.u32 %v3638_v10, %v3151_v9  ;;  %v3633_v16 = vld [vmem:[#allocation2 + $0x8c] sm:$0xf0]  ;;  %v3631_v19 = vld [vmem:[#allocation2 + $0x84] sm:$0xf]  ;;  %v3071_v8 = vld [vmem:[#allocation2 + $0x8] sm:$0xf]  ;;  %v1222_v10 = vunpack.c.l.bf16 %v2927_v0 }
 0x289   :  { %3752 = vtanh.f32 %v1180_v15  ;;  %v1191_v20 = vmul.f32 0.5, %v1181_v52  ;;  %v3156_v15 = vor.u32 %v3636_v12, %v3153_v13  ;;  %1727 = vmatpush.bf16.msrb.mxu1 %v3148_v48  ;;  %v3127_v52 = vld [vmem:[#allocation2 + $0x80] sm:$0xf]  ;;  %v3618_v9 = vld [vmem:[#allocation2 + $0x14] sm:$0xf0]  ;;  %v1223_v48 = vunpack.c.h.bf16 %v2927_v0 }
 0x28a   :  { %v3749_v22 = vpop.eup %3748  ;;  %v3072_v12 = vor.u32 %v3618_v9, %v3071_v8  ;;  %v3616_v13 = vld [vmem:[#allocation2 + $0xc] sm:$0xf]  ;;  %v3291_v4 = vld [vmem:[#allocation2 + $0xc0] sm:$0xf]  ;;  %v3293_v8 = vld [vmem:[#allocation2 + $0xd0] sm:$0xf0] }
 0x28b   :  { %v3751_v24 = vpop.eup %3750  ;;  %v1184_v25 = vmul.f32 0.5, %v3749_v22  ;;  %3754 = vtanh.f32 %v1191_v20  ;;  %1753 = vmatpush.bf16.msrb.mxu3 %v3156_v15  ;;  %v3128_v20 = vor.u32 %v3633_v16, %v3127_v52  ;;  %v3135_v22 = vld [vmem:[#allocation2 + $0x88] sm:$0xf]  ;;  %v3073_v15 = vld [vmem:[#allocation2 + $0x18] sm:$0xf0] }
 0x28c   :  { %v1188_v26 = vmul.f32 0.5, %v3751_v24  ;;  %v3634_v24 = vld [vmem:[#allocation2 + $0x94] sm:$0xf0]  ;;  %v3076_v52 = vor.u32 %v3616_v13, %v3073_v15  ;;  %v3676_v0 = vld [vmem:[#allocation2 + $0xec] sm:$0xf] }
 0x28d   :  { %v1185_v3 = vadd.f32 0.5, %v1184_v25  ;;  %v3132_v25 = vor.u32 %v3631_v19, %v3129_v21  ;;  %v3299_v9 = vld [vmem:[#allocation2 + $0xc8] sm:$0xf]  ;;  %v3301_v13 = vld [vmem:[#allocation2 + $0xd8] sm:$0xf0] }
 0x28e   :  { %v1189_v27 = vadd.f32 0.5, %v1188_v26  ;;  %v1163_v28 = vpop.f32.mrf.mxu2  ;;  %v1176_v29 = vpop.f32.mrf.mxu3  ;;  %v3136_v26 = vor.u32 %v3634_v24, %v3135_v22  ;;  %v2928_v22 = vld [vmem:[%s4039_s0 + $0x48] sm:$0xff] }
 0x28f   :  { %v3753_v30 = vpop.eup %3752  ;;  %1728 = vmatpush.bf16.msrb.mxu1 %v3132_v25  ;;  %v3111_v29 = vld [vmem:[#allocation2 + $0x60] sm:$0xf] }
 0x290   :  { %v1195_v7 = vmul.f32 %v1189_v27, %v3943_v18  ;;  %v1196_v31 = vmul.f32 %v3753_v30, %v1185_v3  ;;  %v3632_v3 = vld [vmem:[#allocation2 + $0x8c] sm:$0xf]  ;;  %v3137_v27 = vld [vmem:[#allocation2 + $0x98] sm:$0xf0]  ;;  %v3629_v30 = vld [vmem:[#allocation2 + $0x6c] sm:$0xf0] }
 0x291   :  { %v3755_v33 = vpop.eup %3754  ;;  %v3140_v28 = vor.u32 %v3632_v3, %v3137_v27  ;;  %v1225_v3 = vunpack.c.h.bf16 %v2928_v22 }
 0x292   :  { %v1197_v35 = vadd.f32 %v1196_v31, %v1195_v7  ;;  %v1193_v36 = vmul.f32 0.5, %v3755_v33  ;;  %v3627_v7 = vld [vmem:[#allocation2 + $0x64] sm:$0xf]  ;;  %v3112_v31 = vor.u32 %v3629_v30, %v3111_v29  ;;  %v3113_v33 = vld [vmem:[#allocation2 + $0x70] sm:$0xf0] }
 0x293   :  { %1754 = vmatpush.bf16.msrb.mxu3 %v3140_v28 }
 0x294   :  { %3756 = vtanh.f32 %v1197_v35  ;;  %v3966_v17 = vsel %vm1208_vm11, %v1197_v35, %v3943_v18  ;;  %v1194_v37 = vadd.f32 0.5, %v1193_v36  ;;  %v3175_v18 = vld [vmem:[#allocation2 + $0xe0] sm:$0xf]  ;;  %v3630_v35 = vld [vmem:[#allocation2 + $0x74] sm:$0xf0]  ;;  %v3116_v36 = vor.u32 %v3627_v7, %v3113_v33 }
 0x295   :  { %v3176_v46 = vor.u32 %v3645_v44, %v3175_v18  ;;  %v3623_v18 = vld [vmem:[#allocation2 + $0x44] sm:$0xf] }
 0x296   :  { %1729 = vmatpush.bf16.msrb.mxu1 %v3116_v36  ;;  %v3100_v47 = vor.u32 %v3623_v18, %v3097_v45 }
 0x297   :  { %1712 = vmatpush.bf16.msrb.mxu0 %v3176_v46  ;;  %v3103_v46 = vld [vmem:[#allocation2 + $0x48] sm:$0xf] }
 0x29a   :  { %v3757_v38 = vpop.eup %3756  ;;  %1730 = vmatpush.bf16.msrb.mxu1 %v3100_v47 }
 0x29b   :  { %v1199_v39 = vmul.f32 %v3757_v38, %v1194_v37  ;;  %1713 = vmatpush.bf16.msrb.mxu0 %v3160_v59  ;;  %v3120_v37 = vor.u32 %v3630_v35, %v3119_v34  ;;  %v3628_v38 = vld [vmem:[#allocation2 + $0x6c] sm:$0xf]  ;;  %v3087_v59 = vld [vmem:[#allocation2 + $0x28] sm:$0xf] }
 0x29c   :  { %v3088_v61 = vor.u32 %v3622_v60, %v3087_v59  ;;  %v3675_v59 = vld [vmem:[#allocation2 + $0xe4] sm:$0xf] }
 0x29d   :  { %v3969_v40 = vsel %vm1208_vm11, %v1199_v39, %v3946_v23  ;;  %v1213_v41 = vsel %vm1208_vm11, %v1199_v39, 0.0  ;;  %v3183_v23 = vld [vmem:[#allocation2 + $0xe8] sm:$0xf]  ;;  %v3121_v39 = vld [vmem:[#allocation2 + $0x78] sm:$0xf0] }
 0x29e   :  { %v1214_v42 = vpack.c.bf16 %v1213_v41, %v1213_v41  ;;  %v1226_v43 = vpack.c.bf16 %v3969_v40, %v3969_v40  ;;  %v3184_v51 = vor.u32 %v3646_v49, %v3183_v23  ;;  %v3124_v41 = vor.u32 %v3628_v38, %v3121_v39  ;;  %v3626_v23 = vld [vmem:[#allocation2 + $0x54] sm:$0xf0]  ;;  %v3624_v49 = vld [vmem:[#allocation2 + $0x4c] sm:$0xf]  ;;  %1731 = vmatpush.bf16.msrb.mxu1 %v3084_v32  ;;  %v1500_v39 = vpop.permute.xlu2 %1499  ;;  %v3309_v32 = vld [vmem:[#allocation2 + $0xf0] sm:$0xf0] }
 0x29f   :  { %1714 = vmatpush.bf16.msrb.mxu0 %v3144_v6  ;;  %v3108_v53 = vor.u32 %v3624_v49, %v3105_v50  ;;  %v3065_v6 = vld [vmem:[#allocation2 + $0x10] sm:$0xf0]  ;;  %vm1501_vm12 = vcmp.eq.s32.totalorder %v1500_v39, 1  ;;  %v3269_v39 = vld [vmem:[#allocation2 + $0x98] sm:$0xf0] }
 0x2a0   :  { %2926 = vst [vmem:[%s4044_s5 + $0xc] sm:$0xf] %v1214_v42  ;;  %1427 = vmatmul.bf16.vlgmr.msra.gmra.mxu0 %v1226_v43  ;;  %1440 = vmatmul.bf16.vlgmr.msra.gmra.mxu1 %v1226_v43  ;;  %v3095_v42 = vld [vmem:[#allocation2 + $0x40] sm:$0xf] }
 0x2a1   :  { %1453 = vmatmul.bf16.vlgmr.msra.gmra.mxu2 %v1226_v43  ;;  %1466 = vmatmul.bf16.vlgmr.msra.gmra.mxu3 %v1226_v43  ;;  %v3625_v43 = vld [vmem:[#allocation2 + $0x4c] sm:$0xf0] }
 0x2a2   :  { %1738 = vmatpush.bf16.msrb.mxu2 %v3184_v51  ;;  %1755 = vmatpush.bf16.msrb.mxu3 %v3124_v41  ;;  %v3096_v44 = vor.u32 %v3625_v43, %v3095_v42  ;;  %v3104_v51 = vor.u32 %v3626_v23, %v3103_v46 }
 0x2a3   :  { %1715 = vmatpush.bf16.msrb.mxu0 %v3128_v20 }
 0x2a6   :  { %1739 = vmatpush.bf16.msrb.mxu2 %v3168_v63  ;;  %1756 = vmatpush.bf16.msrb.mxu3 %v3108_v53  ;;  %v3089_v63 = vld [vmem:[#allocation2 + $0x38] sm:$0xf0] }
 0x2a7   :  { %1716 = vmatpush.bf16.msrb.mxu0 %v3112_v31  ;;  %v3092_v1 = vor.u32 %v3620_v62, %v3089_v63  ;;  %v3312_v62 = vor.u32 %v3675_v59, %v3309_v32  ;;  %v3229_v59 = vld [vmem:[#allocation2 + $0x50] sm:$0xf0]  ;;  %v3658_v32 = vld [vmem:[#allocation2 + $0x54] sm:$0xf0] }
 0x2aa   :  { %1740 = vmatpush.bf16.msrb.mxu2 %v3152_v11  ;;  %1757 = vmatpush.bf16.msrb.mxu3 %v3092_v1  ;;  %v3068_v11 = vor.u32 %v3615_v14, %v3065_v6  ;;  %v3317_v1 = vld [vmem:[#allocation2 + $0xf8] sm:$0xf0]  ;;  %v3673_v14 = vld [vmem:[#allocation2 + $0xcc] sm:$0xf0] }
 0x2ab   :  { %1717 = vmatpush.bf16.msrb.mxu0 %v3096_v44  ;;  %v3320_v2 = vor.u32 %v3676_v0, %v3317_v1  ;;  %v3292_v6 = vor.u32 %v3673_v14, %v3291_v4  ;;  %v3211_v1 = vld [vmem:[#allocation2 + $0x20] sm:$0xf]  ;;  %v3651_v4 = vld [vmem:[#allocation2 + $0x24] sm:$0xf] }
 0x2ac   :  { %1732 = vmatpush.bf16.msrb.mxu1 %v3068_v11 }
 0x2ae   :  { %1741 = vmatpush.bf16.msrb.mxu2 %v3136_v26  ;;  %1758 = vmatpush.bf16.msrb.mxu3 %v3076_v52  ;;  %v1224_v26 = vunpack.c.l.bf16 %v2928_v22  ;;  %v3275_v52 = vld [vmem:[#allocation2 + $0xa0] sm:$0xf]  ;;  %v3283_v22 = vld [vmem:[#allocation2 + $0xa8] sm:$0xf] }
 0x2af   :  { %1718 = vmatpush.bf16.msrb.mxu0 %v3080_v57 }
 0x2b0   :  { %2018 = vmatpush.bf16.msra.mxu1 %v3312_v62  ;;  %v3656_v62 = vld [vmem:[#allocation2 + $0x4c] sm:$0xf] }
 0x2b2   :  { %1742 = vmatpush.bf16.msrb.mxu2 %v3120_v37  ;;  %2044 = vmatpush.bf16.msra.mxu3 %v3320_v2  ;;  %v3653_v2 = vld [vmem:[#allocation2 + $0x2c] sm:$0xf0] }
 0x2b3   :  { %1719 = vmatpush.bf16.msrb.mxu0 %v3064_v5  ;;  %v3671_v5 = vld [vmem:[#allocation2 + $0xc4] sm:$0xf]  ;;  %v3212_v14 = vor.u32 %v3653_v2, %v3211_v1 }
 0x2b6   :  { %1743 = vmatpush.bf16.msrb.mxu2 %v3104_v51 }
 0x2ba   :  { %1744 = vmatpush.bf16.msrb.mxu2 %v3088_v61  ;;  %v3678_v61 = vld [vmem:[#allocation2 + $0xf4] sm:$0xf0] }
 0x2be   :  { %1745 = vmatpush.bf16.msrb.mxu2 %v3072_v12  ;;  %v3672_v12 = vld [vmem:[#allocation2 + $0xcc] sm:$0xf] }
 0x2bf   :  { %v3304_v15 = vor.u32 %v3672_v12, %v3301_v13  ;;  %v3059_v12 = vld [vmem:[%s4039_s0 + $0x50] sm:$0xff] }
 0x2c1   :  { %2045 = vmatpush.bf16.msra.mxu3 %v3304_v15  ;;  %v3195_v15 = vld [vmem:[#allocation2] sm:$0xf] }
 0x31d   :  { %v1428_v16 = vpop.f32.mrf.mxu0  ;;  %v1441_v19 = vpop.f32.mrf.mxu1 }
 0x31e   :  { %v1471_v20 = vadd.f32 %v1428_v16, %v1222_v10  ;;  %v1472_v21 = vadd.f32 %v1441_v19, %v1223_v48  ;;  %v3674_v10 = vld [vmem:[#allocation2 + $0xd4] sm:$0xf0]  ;;  %v3296_v48 = vor.u32 %v3671_v5, %v3293_v8  ;;  %v3669_v16 = vld [vmem:[#allocation2 + $0xac] sm:$0xf0]  ;;  %v3667_v19 = vld [vmem:[#allocation2 + $0xa4] sm:$0xf] }
 0x31f   :  { %v3300_v11 = vor.u32 %v3674_v10, %v3299_v9  ;;  %v3213_v5 = vld [vmem:[#allocation2 + $0x30] sm:$0xf0]  ;;  %v3654_v8 = vld [vmem:[#allocation2 + $0x34] sm:$0xf0] }
 0x320   :  { %v1475_v24 = vmul.f32 0.5, %v1471_v20  ;;  %v1479_v25 = vmul.f32 0.5, %v1472_v21  ;;  %2019 = vmatpush.bf16.msra.mxu1 %v3296_v48  ;;  %v3276_v20 = vor.u32 %v3669_v16, %v3275_v52  ;;  %v3277_v21 = vld [vmem:[#allocation2 + $0xb0] sm:$0xf0]  ;;  %v3216_v9 = vor.u32 %v3651_v4, %v3213_v5  ;;  %v3652_v48 = vld [vmem:[#allocation2 + $0x2c] sm:$0xf] }
 0x321   :  { %v3649_v52 = vld [vmem:[#allocation2 + $0xc] sm:$0xf0]  ;;  %v3647_v16 = vld [vmem:[#allocation2 + $0x4] sm:$0xf] }
 0x322   :  { %3758 = vtanh.f32 %v1475_v24  ;;  %v3670_v24 = vld [vmem:[#allocation2 + $0xb4] sm:$0xf0]  ;;  %v3709_v5 = vld [vmem:[#allocation2 + $0xec] sm:$0xf0] }
 0x323   :  { %3760 = vtanh.f32 %v1479_v25  ;;  %v3280_v25 = vor.u32 %v3667_v19, %v3277_v21  ;;  %v3196_v19 = vor.u32 %v3649_v52, %v3195_v15  ;;  %v3203_v21 = vld [vmem:[#allocation2 + $0x8] sm:$0xf]  ;;  %v3423_v52 = vld [vmem:[#allocation2 + $0xc0] sm:$0xf] }
 0x324   :  { %v1454_v27 = vpop.f32.mrf.mxu2  ;;  %v1467_v28 = vpop.f32.mrf.mxu3 }
 0x325   :  { %v1473_v29 = vadd.f32 %v1454_v27, %v1224_v26  ;;  %v1474_v30 = vadd.f32 %v1467_v28, %v1225_v3  ;;  %v1430_v7 = vpop.f32.mrf.mxu0  ;;  %v1443_v31 = vpop.f32.mrf.mxu1  ;;  %v3284_v26 = vor.u32 %v3670_v24, %v3283_v22  ;;  %v3668_v3 = vld [vmem:[#allocation2 + $0xac] sm:$0xf]  ;;  %v3285_v27 = vld [vmem:[#allocation2 + $0xb8] sm:$0xf0]  ;;  %2020 = vmatpush.bf16.msra.mxu1 %v3280_v25  ;;  %v3650_v22 = vld [vmem:[#allocation2 + $0x14] sm:$0xf0]  ;;  %v1515_v24 = vunpack.c.l.bf16 %v3059_v12 }
 0x326   :  { %v3288_v28 = vor.u32 %v3668_v3, %v3285_v27  ;;  %v3663_v7 = vld [vmem:[#allocation2 + $0x84] sm:$0xf]  ;;  %v1516_v25 = vunpack.c.h.bf16 %v3059_v12  ;;  %v3204_v3 = vor.u32 %v3650_v22, %v3203_v21  ;;  %v3648_v27 = vld [vmem:[#allocation2 + $0xc] sm:$0xf]  ;;  %v3425_v21 = vld [vmem:[#allocation2 + $0xd0] sm:$0xf0] }
 0x327   :  { %3762 = vtanh.f32 %v1473_v29  ;;  %v1484_v33 = vmul.f32 0.5, %v1474_v30  ;;  %v3259_v29 = vld [vmem:[#allocation2 + $0x80] sm:$0xf]  ;;  %v3665_v30 = vld [vmem:[#allocation2 + $0x8c] sm:$0xf0] }
 0x328   :  { %v3759_v34 = vpop.eup %3758  ;;  %2046 = vmatpush.bf16.msra.mxu3 %v3288_v28  ;;  %v3260_v31 = vor.u32 %v3665_v30, %v3259_v29  ;;  %v3205_v28 = vld [vmem:[#allocation2 + $0x18] sm:$0xf0]  ;;  %v3708_v12 = vld [vmem:[#allocation2 + $0xec] sm:$0xf]  ;;  %v3431_v22 = vld [vmem:[#allocation2 + $0xc8] sm:$0xf] }
 0x329   :  { %v3761_v35 = vpop.eup %3760  ;;  %v1477_v36 = vmul.f32 0.5, %v3759_v34  ;;  %3764 = vtanh.f32 %v1484_v33  ;;  %v3261_v33 = vld [vmem:[#allocation2 + $0x90] sm:$0xf0]  ;;  %v3267_v34 = vld [vmem:[#allocation2 + $0x88] sm:$0xf]  ;;  %v3208_v29 = vor.u32 %v3648_v27, %v3205_v28 }
 0x32a   :  { %v1481_v37 = vmul.f32 0.5, %v3761_v35  ;;  %v3666_v35 = vld [vmem:[#allocation2 + $0x94] sm:$0xf0]  ;;  %v3433_v27 = vld [vmem:[#allocation2 + $0xd8] sm:$0xf0] }
 0x32b   :  { %v1478_v38 = vadd.f32 0.5, %v1477_v36  ;;  %v3264_v36 = vor.u32 %v3663_v7, %v3261_v33 }
 0x32c   :  { %v1482_v41 = vadd.f32 0.5, %v1481_v37  ;;  %v1456_v42 = vpop.f32.mrf.mxu2  ;;  %v1469_v43 = vpop.f32.mrf.mxu3  ;;  %v3268_v37 = vor.u32 %v3666_v35, %v3267_v34  ;;  %v3060_v34 = vld [vmem:[%s4039_s0 + $0x58] sm:$0xff] }
 0x32d   :  { %v3763_v18 = vpop.eup %3762  ;;  %2021 = vmatpush.bf16.msra.mxu1 %v3264_v36  ;;  %v3243_v42 = vld [vmem:[#allocation2 + $0x60] sm:$0xf]  ;;  %v3661_v43 = vld [vmem:[#allocation2 + $0x6c] sm:$0xf0] }
 0x32e   :  { %v1489_v44 = vmul.f32 %v3763_v18, %v1478_v38  ;;  %v1488_v45 = vmul.f32 %v1482_v41, %v3966_v17  ;;  %v3664_v38 = vld [vmem:[#allocation2 + $0x8c] sm:$0xf]  ;;  %v3659_v18 = vld [vmem:[#allocation2 + $0x64] sm:$0xf] }
 0x32f   :  { %v3765_v46 = vpop.eup %3764  ;;  %v3272_v41 = vor.u32 %v3664_v38, %v3269_v39  ;;  %v1518_v38 = vunpack.c.h.bf16 %v3060_v34 }
 0x330   :  { %v1490_v47 = vadd.f32 %v1489_v44, %v1488_v45  ;;  %v1486_v49 = vmul.f32 0.5, %v3765_v46  ;;  %v3244_v44 = vor.u32 %v3661_v43, %v3243_v42  ;;  %v3245_v45 = vld [vmem:[#allocation2 + $0x70] sm:$0xf0]  ;;  %v3251_v46 = vld [vmem:[#allocation2 + $0x68] sm:$0xf] }
 0x331   :  { %2047 = vmatpush.bf16.msra.mxu3 %v3272_v41 }
 0x332   :  { %3766 = vtanh.f32 %v1490_v47  ;;  %v3984_v23 = vsel %vm1501_vm12, %v1490_v47, %v3966_v17  ;;  %v1487_v50 = vadd.f32 0.5, %v1486_v49  ;;  %v3307_v17 = vld [vmem:[#allocation2 + $0xe0] sm:$0xf]  ;;  %v3662_v47 = vld [vmem:[#allocation2 + $0x74] sm:$0xf0]  ;;  %v3248_v49 = vor.u32 %v3659_v18, %v3245_v45 }
 0x333   :  { %v3308_v60 = vor.u32 %v3677_v58, %v3307_v17  ;;  %v3655_v17 = vld [vmem:[#allocation2 + $0x44] sm:$0xf] }
 0x334   :  { %2022 = vmatpush.bf16.msra.mxu1 %v3248_v49 }
 0x335   :  { %2005 = vmatpush.bf16.msra.mxu0 %v3308_v60  ;;  %v3235_v60 = vld [vmem:[#allocation2 + $0x48] sm:$0xf] }
 0x338   :  { %v3767_v51 = vpop.eup %3766 }
 0x339   :  { %v1492_v53 = vmul.f32 %v3767_v51, %v1487_v50  ;;  %2006 = vmatpush.bf16.msra.mxu0 %v3292_v6  ;;  %v3252_v50 = vor.u32 %v3662_v47, %v3251_v46  ;;  %v3660_v51 = vld [vmem:[#allocation2 + $0x6c] sm:$0xf]  ;;  %v3219_v6 = vld [vmem:[#allocation2 + $0x28] sm:$0xf] }
 0x33a   :  { %v3220_v10 = vor.u32 %v3654_v8, %v3219_v6  ;;  %v3707_v6 = vld [vmem:[#allocation2 + $0xe4] sm:$0xf] }
 0x33b   :  { %v3987_v54 = vsel %vm1501_vm12, %v1492_v53, %v3969_v40  ;;  %v1506_v55 = vsel %vm1501_vm12, %v1492_v53, 0.0  ;;  %v3315_v40 = vld [vmem:[#allocation2 + $0xe8] sm:$0xf]  ;;  %v3253_v53 = vld [vmem:[#allocation2 + $0x78] sm:$0xf0] }
 0x33c   :  { %v1507_v56 = vpack.c.bf16 %v1506_v55, %v1506_v55  ;;  %v1519_v57 = vpack.c.bf16 %v3987_v54, %v3987_v54  ;;  %v3316_v63 = vor.u32 %v3678_v61, %v3315_v40  ;;  %v3256_v55 = vor.u32 %v3660_v51, %v3253_v53 }
 0x33d   :  { %2007 = vmatpush.bf16.msra.mxu0 %v3276_v20  ;;  %v3232_v40 = vor.u32 %v3655_v17, %v3229_v59  ;;  %v3236_v61 = vor.u32 %v3658_v32, %v3235_v60  ;;  %v3197_v20 = vld [vmem:[#allocation2 + $0x10] sm:$0xf0]  ;;  %v1793_v17 = vpop.permute.xlu2 %1792 }
 0x33e   :  { %3058 = vst [vmem:[%s4044_s5 + $0x10] sm:$0xf] %v1507_v56  ;;  %1720 = vmatmul.bf16.vlgmr.msrb.gmra.mxu0 %v1519_v57  ;;  %1733 = vmatmul.bf16.vlgmr.msrb.gmra.mxu1 %v1519_v57  ;;  %v3227_v56 = vld [vmem:[#allocation2 + $0x40] sm:$0xf]  ;;  %vm1794_vm13 = vcmp.eq.s32.totalorder %v1793_v17, 1 }
 0x33f   :  { %1746 = vmatmul.bf16.vlgmr.msrb.gmra.mxu2 %v1519_v57  ;;  %1759 = vmatmul.bf16.vlgmr.msrb.gmra.mxu3 %v1519_v57  ;;  %v3657_v57 = vld [vmem:[#allocation2 + $0x4c] sm:$0xf0]  ;;  %v3691_v17 = vld [vmem:[#allocation2 + $0x64] sm:$0xf] }
 0x340   :  { %2031 = vmatpush.bf16.msra.mxu2 %v3316_v63  ;;  %2048 = vmatpush.bf16.msra.mxu3 %v3256_v55  ;;  %v3228_v58 = vor.u32 %v3657_v57, %v3227_v56  ;;  %v3237_v63 = vld [vmem:[#allocation2 + $0x58] sm:$0xf0] }
 0x341   :  { %2008 = vmatpush.bf16.msra.mxu0 %v3260_v31  ;;  %v3240_v0 = vor.u32 %v3656_v62, %v3237_v63  ;;  %2023 = vmatpush.bf16.msra.mxu1 %v3232_v40 }
 0x344   :  { %2032 = vmatpush.bf16.msra.mxu2 %v3300_v11  ;;  %2049 = vmatpush.bf16.msra.mxu3 %v3240_v0  ;;  %v3221_v11 = vld [vmem:[#allocation2 + $0x38] sm:$0xf0] }
 0x345   :  { %2009 = vmatpush.bf16.msra.mxu0 %v3244_v44  ;;  %v3224_v13 = vor.u32 %v3652_v48, %v3221_v11  ;;  %2024 = vmatpush.bf16.msra.mxu1 %v3216_v9  ;;  %v3441_v9 = vld [vmem:[#allocation2 + $0xf0] sm:$0xf0] }
 0x346   :  { %v3444_v48 = vor.u32 %v3707_v6, %v3441_v9  ;;  %v3361_v6 = vld [vmem:[#allocation2 + $0x50] sm:$0xf0]  ;;  %v3690_v9 = vld [vmem:[#allocation2 + $0x54] sm:$0xf0] }
 0x348   :  { %2033 = vmatpush.bf16.msra.mxu2 %v3284_v26  ;;  %2050 = vmatpush.bf16.msra.mxu3 %v3224_v13  ;;  %v3200_v26 = vor.u32 %v3647_v16, %v3197_v20  ;;  %v3449_v13 = vld [vmem:[#allocation2 + $0xf8] sm:$0xf0]  ;;  %v3705_v16 = vld [vmem:[#allocation2 + $0xcc] sm:$0xf0] }
 0x349   :  { %2010 = vmatpush.bf16.msra.mxu0 %v3228_v58  ;;  %v3452_v15 = vor.u32 %v3708_v12, %v3449_v13  ;;  %v3424_v20 = vor.u32 %v3705_v16, %v3423_v52  ;;  %v3343_v13 = vld [vmem:[#allocation2 + $0x20] sm:$0xf]  ;;  %v3683_v52 = vld [vmem:[#allocation2 + $0x24] sm:$0xf] }
 0x34a   :  { %2025 = vmatpush.bf16.msra.mxu1 %v3200_v26 }
 0x34c   :  { %2034 = vmatpush.bf16.msra.mxu2 %v3268_v37  ;;  %2051 = vmatpush.bf16.msra.mxu3 %v3208_v29  ;;  %v1517_v37 = vunpack.c.l.bf16 %v3060_v34  ;;  %v3407_v29 = vld [vmem:[#allocation2 + $0xa0] sm:$0xf]  ;;  %v3415_v34 = vld [vmem:[#allocation2 + $0xa8] sm:$0xf] }
 0x34d   :  { %2011 = vmatpush.bf16.msra.mxu0 %v3212_v14 }
 0x34e   :  { %2311 = vmatpush.bf16.msrb.mxu1 %v3444_v48  ;;  %v3688_v48 = vld [vmem:[#allocation2 + $0x4c] sm:$0xf] }
 0x350   :  { %2035 = vmatpush.bf16.msra.mxu2 %v3252_v50  ;;  %2337 = vmatpush.bf16.msrb.mxu3 %v3452_v15  ;;  %v3685_v15 = vld [vmem:[#allocation2 + $0x2c] sm:$0xf0] }
 0x351   :  { %2012 = vmatpush.bf16.msra.mxu0 %v3196_v19  ;;  %v3703_v19 = vld [vmem:[#allocation2 + $0xc4] sm:$0xf]  ;;  %v3344_v16 = vor.u32 %v3685_v15, %v3343_v13 }
 0x354   :  { %2036 = vmatpush.bf16.msra.mxu2 %v3236_v61 }
 0x358   :  { %2037 = vmatpush.bf16.msra.mxu2 %v3220_v10  ;;  %v3710_v10 = vld [vmem:[#allocation2 + $0xf4] sm:$0xf0] }
 0x35c   :  { %2038 = vmatpush.bf16.msra.mxu2 %v3204_v3  ;;  %v3704_v3 = vld [vmem:[#allocation2 + $0xcc] sm:$0xf] }
 0x35d   :  { %v3436_v28 = vor.u32 %v3704_v3, %v3433_v27  ;;  %v3191_v3 = vld [vmem:[%s4039_s0 + $0x60] sm:$0xff] }
 0x35f   :  { %2338 = vmatpush.bf16.msrb.mxu3 %v3436_v28  ;;  %v3327_v28 = vld [vmem:[#allocation2] sm:$0xf] }
 0x3bb   :  { %v1721_v30 = vpop.f32.mrf.mxu0  ;;  %v1734_v7 = vpop.f32.mrf.mxu1 }
 0x3bc   :  { %v1764_v31 = vadd.f32 %v1721_v30, %v1515_v24  ;;  %v1765_v33 = vadd.f32 %v1734_v7, %v1516_v25  ;;  %v3706_v24 = vld [vmem:[#allocation2 + $0xd4] sm:$0xf0]  ;;  %v3428_v25 = vor.u32 %v3703_v19, %v3425_v21  ;;  %v3701_v30 = vld [vmem:[#allocation2 + $0xac] sm:$0xf0]  ;;  %v3699_v7 = vld [vmem:[#allocation2 + $0xa4] sm:$0xf] }
 0x3bd   :  { %v3432_v26 = vor.u32 %v3706_v24, %v3431_v22  ;;  %v3345_v19 = vld [vmem:[#allocation2 + $0x30] sm:$0xf0]  ;;  %v3686_v21 = vld [vmem:[#allocation2 + $0x34] sm:$0xf0] }
 0x3be   :  { %v1768_v35 = vmul.f32 0.5, %v1764_v31  ;;  %v1772_v36 = vmul.f32 0.5, %v1765_v33  ;;  %2312 = vmatpush.bf16.msrb.mxu1 %v3428_v25  ;;  %v3408_v31 = vor.u32 %v3701_v30, %v3407_v29  ;;  %v3409_v33 = vld [vmem:[#allocation2 + $0xb0] sm:$0xf0]  ;;  %v3348_v22 = vor.u32 %v3683_v52, %v3345_v19  ;;  %v3684_v25 = vld [vmem:[#allocation2 + $0x2c] sm:$0xf] }
 0x3bf   :  { %v3681_v29 = vld [vmem:[#allocation2 + $0xc] sm:$0xf0]  ;;  %v3679_v30 = vld [vmem:[#allocation2 + $0x4] sm:$0xf] }
 0x3c0   :  { %3768 = vtanh.f32 %v1768_v35  ;;  %v3702_v35 = vld [vmem:[#allocation2 + $0xb4] sm:$0xf0] }
 0x3c1   :  { %3770 = vtanh.f32 %v1772_v36  ;;  %v3412_v36 = vor.u32 %v3699_v7, %v3409_v33  ;;  %v3328_v7 = vor.u32 %v3681_v29, %v3327_v28  ;;  %v3335_v33 = vld [vmem:[#allocation2 + $0x8] sm:$0xf] }
 0x3c2   :  { %v1747_v39 = vpop.f32.mrf.mxu2  ;;  %v1760_v41 = vpop.f32.mrf.mxu3 }
 0x3c3   :  { %v1766_v42 = vadd.f32 %v1747_v39, %v1517_v37  ;;  %v1767_v43 = vadd.f32 %v1760_v41, %v1518_v38  ;;  %v1723_v18 = vpop.f32.mrf.mxu0  ;;  %v1736_v44 = vpop.f32.mrf.mxu1  ;;  %v3416_v37 = vor.u32 %v3702_v35, %v3415_v34  ;;  %v3700_v38 = vld [vmem:[#allocation2 + $0xac] sm:$0xf]  ;;  %v3417_v39 = vld [vmem:[#allocation2 + $0xb8] sm:$0xf0]  ;;  %2313 = vmatpush.bf16.msrb.mxu1 %v3412_v36  ;;  %v3682_v34 = vld [vmem:[#allocation2 + $0x14] sm:$0xf0]  ;;  %v1808_v35 = vunpack.c.l.bf16 %v3191_v3 }
 0x3c4   :  { %v3420_v41 = vor.u32 %v3700_v38, %v3417_v39  ;;  %v3695_v18 = vld [vmem:[#allocation2 + $0x84] sm:$0xf]  ;;  %v1809_v36 = vunpack.c.h.bf16 %v3191_v3  ;;  %v3336_v38 = vor.u32 %v3682_v34, %v3335_v33  ;;  %v3680_v39 = vld [vmem:[#allocation2 + $0xc] sm:$0xf] }
 0x3c5   :  { %3772 = vtanh.f32 %v1766_v42  ;;  %v1777_v45 = vmul.f32 0.5, %v1767_v43  ;;  %v3391_v42 = vld [vmem:[#allocation2 + $0x80] sm:$0xf]  ;;  %v3697_v43 = vld [vmem:[#allocation2 + $0x8c] sm:$0xf0] }
 0x3c6   :  { %v3769_v46 = vpop.eup %3768  ;;  %2339 = vmatpush.bf16.msrb.mxu3 %v3420_v41  ;;  %v3392_v44 = vor.u32 %v3697_v43, %v3391_v42  ;;  %v3337_v41 = vld [vmem:[#allocation2 + $0x18] sm:$0xf0] }
 0x3c7   :  { %v3771_v47 = vpop.eup %3770  ;;  %v1770_v49 = vmul.f32 0.5, %v3769_v46  ;;  %3774 = vtanh.f32 %v1777_v45  ;;  %v3393_v45 = vld [vmem:[#allocation2 + $0x90] sm:$0xf0]  ;;  %v3399_v46 = vld [vmem:[#allocation2 + $0x88] sm:$0xf]  ;;  %v3340_v42 = vor.u32 %v3680_v39, %v3337_v41 }
 0x3c8   :  { %v1774_v50 = vmul.f32 0.5, %v3771_v47  ;;  %v3698_v47 = vld [vmem:[#allocation2 + $0x94] sm:$0xf0] }
 0x3c9   :  { %v1771_v51 = vadd.f32 0.5, %v1770_v49  ;;  %v3396_v49 = vor.u32 %v3695_v18, %v3393_v45 }
 0x3ca   :  { %v1775_v53 = vadd.f32 0.5, %v1774_v50  ;;  %v1749_v55 = vpop.f32.mrf.mxu2  ;;  %v1762_v56 = vpop.f32.mrf.mxu3  ;;  %v3400_v50 = vor.u32 %v3698_v47, %v3399_v46  ;;  %v3192_v46 = vld [vmem:[%s4039_s0 + $0x68] sm:$0xff] }
 0x3cb   :  { %v3773_v57 = vpop.eup %3772  ;;  %2314 = vmatpush.bf16.msrb.mxu1 %v3396_v49  ;;  %v3375_v56 = vld [vmem:[#allocation2 + $0x60] sm:$0xf] }
 0x3cc   :  { %v1781_v58 = vmul.f32 %v1775_v53, %v3984_v23  ;;  %v1782_v59 = vmul.f32 %v3773_v57, %v1771_v51  ;;  %v3696_v51 = vld [vmem:[#allocation2 + $0x8c] sm:$0xf]  ;;  %v3401_v53 = vld [vmem:[#allocation2 + $0x98] sm:$0xf0]  ;;  %v3693_v57 = vld [vmem:[#allocation2 + $0x6c] sm:$0xf0] }
 0x3cd   :  { %v3775_v60 = vpop.eup %3774  ;;  %v3404_v55 = vor.u32 %v3696_v51, %v3401_v53  ;;  %v1811_v51 = vunpack.c.h.bf16 %v3192_v46 }
 0x3ce   :  { %v1783_v32 = vadd.f32 %v1782_v59, %v1781_v58  ;;  %v1779_v61 = vmul.f32 0.5, %v3775_v60  ;;  %v3376_v58 = vor.u32 %v3693_v57, %v3375_v56  ;;  %v3377_v59 = vld [vmem:[#allocation2 + $0x70] sm:$0xf0]  ;;  %v3383_v60 = vld [vmem:[#allocation2 + $0x68] sm:$0xf] }
 0x3cf   :  { %2340 = vmatpush.bf16.msrb.mxu3 %v3404_v55 }
 0x3d0   :  { %3776 = vtanh.f32 %v1783_v32  ;;  %v4002_v40 = vsel %vm1794_vm13, %v1783_v32, %v3984_v23  ;;  %v1780_v62 = vadd.f32 0.5, %v1779_v61  ;;  %v3439_v23 = vld [vmem:[#allocation2 + $0xe0] sm:$0xf]  ;;  %v3694_v32 = vld [vmem:[#allocation2 + $0x74] sm:$0xf0]  ;;  %v3380_v61 = vor.u32 %v3691_v17, %v3377_v59 }
 0x3d1   :  { %v3440_v8 = vor.u32 %v3709_v5, %v3439_v23  ;;  %v3687_v23 = vld [vmem:[#allocation2 + $0x44] sm:$0xf] }
 0x3d2   :  { %2315 = vmatpush.bf16.msrb.mxu1 %v3380_v61 }
 0x3d3   :  { %2298 = vmatpush.bf16.msrb.mxu0 %v3440_v8  ;;  %v3367_v8 = vld [vmem:[#allocation2 + $0x48] sm:$0xf] }
 0x3d6   :  { %v3777_v63 = vpop.eup %3776 }
 0x3d7   :  { %v1785_v0 = vmul.f32 %v3777_v63, %v1780_v62  ;;  %2299 = vmatpush.bf16.msrb.mxu0 %v3424_v20  ;;  %v3384_v62 = vor.u32 %v3694_v32, %v3383_v60  ;;  %v3692_v63 = vld [vmem:[#allocation2 + $0x6c] sm:$0xf]  ;;  %v3351_v20 = vld [vmem:[#allocation2 + $0x28] sm:$0xf] }
 0x3d8   :  { %v3352_v24 = vor.u32 %v3686_v21, %v3351_v20 }
 0x3d9   :  { %v4005_v1 = vsel %vm1794_vm13, %v1785_v0, %v3987_v54  ;;  %v1799_v2 = vsel %vm1794_vm13, %v1785_v0, 0.0  ;;  %v3447_v54 = vld [vmem:[#allocation2 + $0xe8] sm:$0xf]  ;;  %v3385_v0 = vld [vmem:[#allocation2 + $0x78] sm:$0xf0] }
 0x3da   :  { %v1800_v4 = vpack.c.bf16 %v1799_v2, %v1799_v2  ;;  %v1812_v14 = vpack.c.bf16 %v4005_v1, %v4005_v1  ;;  %v3448_v11 = vor.u32 %v3710_v10, %v3447_v54  ;;  %v3388_v2 = vor.u32 %v3692_v63, %v3385_v0 }
 0x3db   :  { %2300 = vmatpush.bf16.msrb.mxu0 %v3408_v31  ;;  %v3364_v54 = vor.u32 %v3687_v23, %v3361_v6  ;;  %v3368_v10 = vor.u32 %v3690_v9, %v3367_v8  ;;  %v3329_v31 = vld [vmem:[#allocation2 + $0x10] sm:$0xf0]  ;;  %v2086_v23 = vpop.permute.xlu0 %2085 }
 0x3dc   :  { %3190 = vst [vmem:[%s4044_s5 + $0x14] sm:$0xf] %v1800_v4  ;;  %2013 = vmatmul.bf16.vlgmr.msra.gmra.mxu0 %v1812_v14  ;;  %2026 = vmatmul.bf16.vlgmr.msra.gmra.mxu1 %v1812_v14  ;;  %v3359_v4 = vld [vmem:[#allocation2 + $0x40] sm:$0xf]  ;;  %vm2087_vm14 = vcmp.eq.s32.totalorder %v2086_v23, 1 }
 0x3dd   :  { %2039 = vmatmul.bf16.vlgmr.msra.gmra.mxu2 %v1812_v14  ;;  %2052 = vmatmul.bf16.vlgmr.msra.gmra.mxu3 %v1812_v14  ;;  %v3689_v14 = vld [vmem:[#allocation2 + $0x4c] sm:$0xf0] }
 0x3de   :  { %2324 = vmatpush.bf16.msrb.mxu2 %v3448_v11  ;;  %2341 = vmatpush.bf16.msrb.mxu3 %v3388_v2  ;;  %v3360_v5 = vor.u32 %v3689_v14, %v3359_v4  ;;  %v3369_v11 = vld [vmem:[#allocation2 + $0x58] sm:$0xf0] }
 0x3df   :  { %2301 = vmatpush.bf16.msrb.mxu0 %v3392_v44  ;;  %v3372_v12 = vor.u32 %v3688_v48, %v3369_v11  ;;  %2316 = vmatpush.bf16.msrb.mxu1 %v3364_v54 }
 0x3e2   :  { %2325 = vmatpush.bf16.msrb.mxu2 %v3432_v26  ;;  %2342 = vmatpush.bf16.msrb.mxu3 %v3372_v12  ;;  %v3353_v26 = vld [vmem:[#allocation2 + $0x38] sm:$0xf0] }
 0x3e3   :  { %2302 = vmatpush.bf16.msrb.mxu0 %v3376_v58  ;;  %v3356_v27 = vor.u32 %v3684_v25, %v3353_v26  ;;  %2317 = vmatpush.bf16.msrb.mxu1 %v3348_v22  ;;  %v3324_v25 = vld [vmem:[%s4039_s0 + $0x78] sm:$0xff] }
 0x3e4   :  { %v2104_v28 = vunpack.c.h.bf16 %v3324_v25 }
 0x3e6   :  { %2326 = vmatpush.bf16.msrb.mxu2 %v3416_v37  ;;  %2343 = vmatpush.bf16.msrb.mxu3 %v3356_v27  ;;  %v3332_v37 = vor.u32 %v3679_v30, %v3329_v31  ;;  %v2103_v27 = vunpack.c.l.bf16 %v3324_v25 }
 0x3e7   :  { %2303 = vmatpush.bf16.msrb.mxu0 %v3360_v5 }
 0x3e8   :  { %2318 = vmatpush.bf16.msrb.mxu1 %v3332_v37 }
 0x3ea   :  { %2327 = vmatpush.bf16.msrb.mxu2 %v3400_v50  ;;  %2344 = vmatpush.bf16.msrb.mxu3 %v3340_v42  ;;  %v1810_v50 = vunpack.c.l.bf16 %v3192_v46 }
 0x3eb   :  { %2304 = vmatpush.bf16.msrb.mxu0 %v3344_v16 }
 0x3ee   :  { %2328 = vmatpush.bf16.msrb.mxu2 %v3384_v62 }
 0x3ef   :  { %2305 = vmatpush.bf16.msrb.mxu0 %v3328_v7 }
 0x3f2   :  { %2329 = vmatpush.bf16.msrb.mxu2 %v3368_v10 }
 0x3f6   :  { %2330 = vmatpush.bf16.msrb.mxu2 %v3352_v24 }
 0x3fa   :  { %2331 = vmatpush.bf16.msrb.mxu2 %v3336_v38 }
 0x459   :  { %v2014_v43 = vpop.f32.mrf.mxu0  ;;  %v2027_v18 = vpop.f32.mrf.mxu1 }
 0x45a   :  { %v2057_v44 = vadd.f32 %v2014_v43, %v1808_v35  ;;  %v2058_v45 = vadd.f32 %v2027_v18, %v1809_v36 }
 0x45c   :  { %v2061_v47 = vmul.f32 0.5, %v2057_v44  ;;  %v2065_v49 = vmul.f32 0.5, %v2058_v45  ;;  %v2379_v45 = vpop.permute.xlu1 %2378 }
 0x45d   :  { %vm2380_vm15 = vcmp.eq.s32.totalorder %v2379_v45, 1 }
 0x45e   :  { %3778 = vtanh.f32 %v2061_v47 }
 0x45f   :  { %3780 = vtanh.f32 %v2065_v49 }
 0x460   :  { %v2040_v53 = vpop.f32.mrf.mxu2  ;;  %v2053_v55 = vpop.f32.mrf.mxu3 }
 0x461   :  { %v2059_v56 = vadd.f32 %v2040_v53, %v1810_v50  ;;  %v2060_v57 = vadd.f32 %v2053_v55, %v1811_v51  ;;  %v2016_v17 = vpop.f32.mrf.mxu0  ;;  %v2029_v58 = vpop.f32.mrf.mxu1 }
 0x463   :  { %3782 = vtanh.f32 %v2059_v56  ;;  %v2070_v59 = vmul.f32 0.5, %v2060_v57 }
 0x464   :  { %v3779_v60 = vpop.eup %3778 }
 0x465   :  { %v3781_v32 = vpop.eup %3780  ;;  %v2063_v61 = vmul.f32 0.5, %v3779_v60  ;;  %3784 = vtanh.f32 %v2070_v59 }
 0x466   :  { %v2067_v62 = vmul.f32 0.5, %v3781_v32 }
 0x467   :  { %v2064_v63 = vadd.f32 0.5, %v2063_v61 }
 0x468   :  { %v2068_v0 = vadd.f32 0.5, %v2067_v62  ;;  %v2042_v2 = vpop.f32.mrf.mxu2  ;;  %v2055_v4 = vpop.f32.mrf.mxu3 }
 0x469   :  { %v3783_v14 = vpop.eup %3782 }
 0x46a   :  { %v2074_v5 = vmul.f32 %v2068_v0, %v4002_v40  ;;  %v2075_v6 = vmul.f32 %v3783_v14, %v2064_v63 }
 0x46b   :  { %v3785_v8 = vpop.eup %3784 }
 0x46c   :  { %v2076_v9 = vadd.f32 %v2075_v6, %v2074_v5  ;;  %v2072_v10 = vmul.f32 0.5, %v3785_v8 }
 0x46e   :  { %3786 = vtanh.f32 %v2076_v9  ;;  %v2090_v54 = vsel %vm2087_vm14, %v2076_v9, %v4002_v40  ;;  %v2073_v48 = vadd.f32 0.5, %v2072_v10  ;;  %v3323_v40 = vld [vmem:[%s4039_s0 + $0x70] sm:$0xff] }
 0x46f   :  { %v2101_v19 = vunpack.c.l.bf16 %v3323_v40  ;;  %v2102_v20 = vunpack.c.h.bf16 %v3323_v40 }
 0x474   :  { %v3787_v11 = vpop.eup %3786 }
 0x475   :  { %v2078_v12 = vmul.f32 %v3787_v11, %v2073_v48 }
 0x477   :  { %v2088_v13 = vsel %vm2087_vm14, %v2078_v12, %v4005_v1  ;;  %v2092_v15 = vsel %vm2087_vm14, %v2078_v12, 0.0 }
 0x478   :  { %v2093_v52 = vpack.c.bf16 %v2092_v15, %v2092_v15  ;;  %v2105_v16 = vpack.c.bf16 %v2088_v13, %v2088_v13 }
 0x47a   :  { %3322 = vst [vmem:[%s4044_s5 + $0x18] sm:$0xf] %v2093_v52  ;;  %2306 = vmatmul.bf16.vlgmr.msrb.gmra.mxu0 %v2105_v16  ;;  %2319 = vmatmul.bf16.vlgmr.msrb.gmra.mxu1 %v2105_v16 }
 0x47b   :  { %2332 = vmatmul.bf16.vlgmr.msrb.gmra.mxu2 %v2105_v16  ;;  %2345 = vmatmul.bf16.vlgmr.msrb.gmra.mxu3 %v2105_v16 }
 0x4f7   :  { %v2307_v21 = vpop.f32.mrf.mxu0  ;;  %v2320_v22 = vpop.f32.mrf.mxu1 }
 0x4f8   :  { %v2350_v1 = vadd.f32 %v2307_v21, %v2101_v19  ;;  %v2351_v24 = vadd.f32 %v2320_v22, %v2102_v20 }
 0x4fa   :  { %v2354_v26 = vmul.f32 0.5, %v2350_v1  ;;  %v2358_v3 = vmul.f32 0.5, %v2351_v24 }
 0x4fc   :  { %3788 = vtanh.f32 %v2354_v26 }
 0x4fd   :  { %3790 = vtanh.f32 %v2358_v3 }
 0x4fe   :  { %v2333_v29 = vpop.f32.mrf.mxu2  ;;  %v2346_v30 = vpop.f32.mrf.mxu3 }
 0x4ff   :  { %v2352_v7 = vadd.f32 %v2333_v29, %v2103_v27  ;;  %v2353_v31 = vadd.f32 %v2346_v30, %v2104_v28  ;;  %v2309_v33 = vpop.f32.mrf.mxu0  ;;  %v2322_v34 = vpop.f32.mrf.mxu1 }
 0x501   :  { %3792 = vtanh.f32 %v2352_v7  ;;  %v2363_v35 = vmul.f32 0.5, %v2353_v31 }
 0x502   :  { %v3789_v36 = vpop.eup %3788 }
 0x503   :  { %v3791_v37 = vpop.eup %3790  ;;  %v2356_v38 = vmul.f32 0.5, %v3789_v36  ;;  %3794 = vtanh.f32 %v2363_v35 }
 0x504   :  { %v2360_v39 = vmul.f32 0.5, %v3791_v37 }
 0x505   :  { %v2357_v41 = vadd.f32 0.5, %v2356_v38 }
 0x506   :  { %v2361_v42 = vadd.f32 0.5, %v2360_v39  ;;  %v2335_v43 = vpop.f32.mrf.mxu2  ;;  %v2348_v18 = vpop.f32.mrf.mxu3 }
 0x507   :  { %v3793_v44 = vpop.eup %3792 }
 0x508   :  { %v2367_v46 = vmul.f32 %v2361_v42, %v2090_v54  ;;  %v2368_v47 = vmul.f32 %v3793_v44, %v2357_v41 }
 0x509   :  { %v3795_v49 = vpop.eup %3794 }
 0x50a   :  { %v2369_v50 = vadd.f32 %v2368_v47, %v2367_v46  ;;  %v2365_v53 = vmul.f32 0.5, %v3795_v49 }
 0x50c   :  { %3796 = vtanh.f32 %v2369_v50  ;;  %v2383_v51 = vsel %vm2380_vm15, %v2369_v50, %v2090_v54  ;;  %v2366_v55 = vadd.f32 0.5, %v2365_v53 }
 0x50d   :  { %2384 = vst [vmem:[%s4046_s7] sm:$0xff] %v2383_v51 }
 0x512   :  { %v3797_v56 = vpop.eup %3796 }
 0x513   :  { %v2371_v57 = vmul.f32 %v3797_v56, %v2366_v55 }
 0x515   :  { %v2381_v17 = vsel %vm2380_vm15, %v2371_v57, %v2088_v13  ;;  %v2385_v58 = vsel %vm2380_vm15, %v2371_v57, 0.0 }
 0x516   :  { %2382 = vst [vmem:[%s4045_s6] sm:$0xff] %v2381_v17  ;;  %v2386_v59 = vpack.c.bf16 %v2385_v58, %v2385_v58 }
 0x518   :  { %3454 = vst [vmem:[%s4044_s5 + $0x1c] sm:$0xf] %v2386_v59 }
 0x519   :  { %2401 = vsyncpa [#allocation3], 1 }

</bundles_post_ra>
